<compile_context>
chip_gen: v7x
topology: tpu7x:2x2x1
jax: 0.10.0
libtpu: 0.0.40
codegen_flags: <defaults>
</compile_context>

<pallas_src>
import jax
import jax.numpy as jnp
from jax.experimental import pallas as pl
from jax.experimental.pallas import tpu as pltpu


LATENT_DIM = 16
IMG = 64
IN_DIM = IMG * IMG  # 4096

# (in, out) sizes of the 8 linear layers, in forward order.
LAYER_DIMS = [
    (IN_DIM, 256), (256, 128), (128, 64), (64, LATENT_DIM),      # encoder
    (LATENT_DIM, 64), (64, 128), (128, 256), (256, IN_DIM),      # decoder
]
N_LAYERS = len(LAYER_DIMS)


def _ae_fc_kernel(x_ref, *refs):
    """One batch tile through all 8 fused Linear layers.

    refs = (w1, b1, ..., w8, b8, o_ref).  Weights are bf16 (in, out), biases f32 (1, out).
    Matmuls hit the MXU with f32 accumulation; ReLU / Sigmoid run on the VPU / EUP.
    """
    o_ref = refs[-1]
    param_refs = refs[:-1]

    h = x_ref[...]                                   # (TM, 4096) bf16
    for li in range(N_LAYERS):
        w = param_refs[2 * li][...]                  # bf16 (in, out)
        b = param_refs[2 * li + 1][...]              # f32  (1, out)
        y = jnp.dot(h.astype(jnp.bfloat16), w,
                    preferred_element_type=jnp.float32) + b
        if li == N_LAYERS - 1:
            h = jax.nn.sigmoid(y)                    # final decoder layer
        elif li == 3:
            h = y                                    # encoder output -> latent: no act.
        else:
            h = jnp.maximum(y, 0.0)                  # ReLU
    o_ref[...] = h.astype(o_ref.dtype)               # lane-dense (TM, 4096) f32 store


def _vmem_capacity_bytes():
    try:
        return int(pltpu.get_tpu_info().vmem_capacity_bytes)
    except Exception:
        return 64 * 1024 * 1024  # conservative (v7x per-TensorCore)


def _round_up(n, m):
    return (n + m - 1) // m * m


@jax.jit
def autoencoder_fc_forward(x, params):
    """x: (B, 1, 64, 64) f32 -> (B, 1, 64, 64) f32 reconstruction."""
    B = x.shape[0]

    # Per-generation tile size / VMEM budget.
    if _vmem_capacity_bytes() >= 100 * 1024 * 1024:   # v5e / v6e: 128 MiB physical VMEM
        tm_max, vmem_limit = 1024, 96 * 1024 * 1024
    else:                                             # v7x: 64 MiB per TensorCore
        tm_max, vmem_limit = 512, 48 * 1024 * 1024

    # Batch tile: multiple of 8 sublanes, never bigger than the (padded) batch.
    TM = min(tm_max, _round_up(B, 8))
    B_pad = _round_up(B, TM)

    # bf16 input / weights halve HBM traffic; padding rows are zeros (sliced off below).
    x_flat = x.reshape(B, IN_DIM).astype(jnp.bfloat16)
    if B_pad != B:
        x_flat = jnp.pad(x_flat, ((0, B_pad - B), (0, 0)))

    flat_params = []
    in_specs = [pl.BlockSpec((TM, IN_DIM), lambda i: (i, 0))]
    for (w, b) in params:
        wb = w.astype(jnp.bfloat16)
        flat_params.append(wb)
        flat_params.append(b)
        # Constant index_map: weights/biases are loaded once and stay VMEM-resident
        # while batch tiles stream through the grid.
        in_specs.append(pl.BlockSpec(wb.shape, lambda i: (0, 0)))
        in_specs.append(pl.BlockSpec(b.shape, lambda i: (0, 0)))

    out_flat = pl.pallas_call(
        _ae_fc_kernel,
        out_shape=jax.ShapeDtypeStruct((B_pad, IN_DIM), jnp.float32),
        grid=(B_pad // TM,),
        in_specs=in_specs,
        out_specs=pl.BlockSpec((TM, IN_DIM), lambda i: (i, 0)),
        compiler_params=pltpu.CompilerParams(
            dimension_semantics=("parallel",),        # shard batch tiles across TCs (v7x)
            vmem_limit_bytes=vmem_limit,
        ),
    )(x_flat, *flat_params)

    return out_flat[:B].reshape(B, 1, IMG, IMG)


def init_params(key):
    """Deterministic init mimicking nn.Linear's U(-1/sqrt(fan_in), 1/sqrt(fan_in)).
    Weights are stored pre-transposed as (in, out); biases as (1, out)."""
    params = []
    for (din, dout) in LAYER_DIMS:
        key, kw, kb = jax.random.split(key, 3)
        bound = 1.0 / jnp.sqrt(jnp.float32(din))
        w = jax.random.uniform(kw, (din, dout), jnp.float32, -bound, bound)
        b = jax.random.uniform(kb, (1, dout), jnp.float32, -bound, bound)
        params.append((w, b))
    return params


def _reference_forward(x, params, compute_dtype):
    """Plain-JAX reference.  compute_dtype=bf16 mirrors the kernel's casts exactly;
    compute_dtype=f32 is the pure-f32 PyTorch-equivalent forward."""
    B = x.shape[0]
    h = x.reshape(B, IN_DIM).astype(compute_dtype)
    for li, (w, b) in enumerate(params):
        y = jnp.dot(h.astype(compute_dtype), w.astype(compute_dtype),
                    preferred_element_type=jnp.float32) + b
        if li == N_LAYERS - 1:
            h = jax.nn.sigmoid(y)
        elif li == 3:
            h = y
        else:
            h = jnp.maximum(y, 0.0)
    return h.reshape(B, 1, IMG, IMG)


if __name__ == "__main__":
    key = jax.random.PRNGKey(0)
    key, kx = jax.random.split(key)

    B = 2
    x = jax.random.normal(kx, (B, 1, IMG, IMG), jnp.float32)
    params = init_params(key)

    out = autoencoder_fc_forward(x, params)
    out = jax.block_until_ready(out)

    assert out.shape == (B, 1, IMG, IMG), out.shape
    assert out.dtype == jnp.float32
    # Sigmoid output must lie in [0, 1]
    assert bool(jnp.all(out >= 0.0)) and bool(jnp.all(out <= 1.0))

    # Tight check vs a reference using the same bf16 weight/activation casts.
    ref_bf16 = _reference_forward(x, params, jnp.bfloat16)
    max_err = float(jnp.max(jnp.abs(out - ref_bf16)))
    assert bool(jnp.allclose(out, ref_bf16, atol=1e-4, rtol=1e-4)), max_err

    # Loose sanity check vs the pure-f32 forward (only bf16 quantization differs).
    ref_f32 = _reference_forward(x, params, jnp.float32)
    max_err_f32 = float(jnp.max(jnp.abs(out - ref_f32)))
    assert bool(jnp.allclose(out, ref_f32, atol=5e-2)), max_err_f32

    print("KERNEL_OK")
</pallas_src>

<mosaic_0001>
module attributes {stable_mosaic.version = 11 : i64} {
  func.func @_ae_fc_kernel(%arg0: i32, %arg1: memref<8x4096xbf16, #tpu.memory_space<vmem>>, %arg2: memref<4096x256xbf16, #tpu.memory_space<vmem>>, %arg3: memref<1x256xf32, #tpu.memory_space<vmem>>, %arg4: memref<256x128xbf16, #tpu.memory_space<vmem>>, %arg5: memref<1x128xf32, #tpu.memory_space<vmem>>, %arg6: memref<128x64xbf16, #tpu.memory_space<vmem>>, %arg7: memref<1x64xf32, #tpu.memory_space<vmem>>, %arg8: memref<64x16xbf16, #tpu.memory_space<vmem>>, %arg9: memref<1x16xf32, #tpu.memory_space<vmem>>, %arg10: memref<16x64xbf16, #tpu.memory_space<vmem>>, %arg11: memref<1x64xf32, #tpu.memory_space<vmem>>, %arg12: memref<64x128xbf16, #tpu.memory_space<vmem>>, %arg13: memref<1x128xf32, #tpu.memory_space<vmem>>, %arg14: memref<128x256xbf16, #tpu.memory_space<vmem>>, %arg15: memref<1x256xf32, #tpu.memory_space<vmem>>, %arg16: memref<256x4096xbf16, #tpu.memory_space<vmem>>, %arg17: memref<1x4096xf32, #tpu.memory_space<vmem>>, %arg18: memref<8x4096xf32, #tpu.memory_space<vmem>>) attributes {dimension_semantics = [#tpu.dimension_semantics<parallel>], iteration_bounds = array<i64: 1>, scalar_prefetch = 0 : i64, scratch_operands = 0 : i64, tpu.core_type = #tpu.core_type<tc>, window_params = [{transform_indices = @transform_0, window_bounds = array<i64: 8, 4096>}, {pipeline_mode = #tpu.pipeline_mode<synchronous>, transform_indices = @transform_1, window_bounds = array<i64: 4096, 256>}, {pipeline_mode = #tpu.pipeline_mode<synchronous>, transform_indices = @transform_2, window_bounds = array<i64: 1, 256>}, {pipeline_mode = #tpu.pipeline_mode<synchronous>, transform_indices = @transform_3, window_bounds = array<i64: 256, 128>}, {pipeline_mode = #tpu.pipeline_mode<synchronous>, transform_indices = @transform_4, window_bounds = array<i64: 1, 128>}, {pipeline_mode = #tpu.pipeline_mode<synchronous>, transform_indices = @transform_5, window_bounds = array<i64: 128, 64>}, {pipeline_mode = #tpu.pipeline_mode<synchronous>, transform_indices = @transform_6, window_bounds = array<i64: 1, 64>}, {pipeline_mode = #tpu.pipeline_mode<synchronous>, transform_indices = @transform_7, window_bounds = array<i64: 64, 16>}, {pipeline_mode = #tpu.pipeline_mode<synchronous>, transform_indices = @transform_8, window_bounds = array<i64: 1, 16>}, {pipeline_mode = #tpu.pipeline_mode<synchronous>, transform_indices = @transform_9, window_bounds = array<i64: 16, 64>}, {pipeline_mode = #tpu.pipeline_mode<synchronous>, transform_indices = @transform_10, window_bounds = array<i64: 1, 64>}, {pipeline_mode = #tpu.pipeline_mode<synchronous>, transform_indices = @transform_11, window_bounds = array<i64: 64, 128>}, {pipeline_mode = #tpu.pipeline_mode<synchronous>, transform_indices = @transform_12, window_bounds = array<i64: 1, 128>}, {pipeline_mode = #tpu.pipeline_mode<synchronous>, transform_indices = @transform_13, window_bounds = array<i64: 128, 256>}, {pipeline_mode = #tpu.pipeline_mode<synchronous>, transform_indices = @transform_14, window_bounds = array<i64: 1, 256>}, {pipeline_mode = #tpu.pipeline_mode<synchronous>, transform_indices = @transform_15, window_bounds = array<i64: 256, 4096>}, {pipeline_mode = #tpu.pipeline_mode<synchronous>, transform_indices = @transform_16, window_bounds = array<i64: 1, 4096>}, {transform_indices = @transform_17, window_bounds = array<i64: 8, 4096>}]} {
    %c0 = arith.constant 0 : index
    %c0_0 = arith.constant 0 : index
    %0 = vector.load %arg1[%c0, %c0_0] : memref<8x4096xbf16, #tpu.memory_space<vmem>>, vector<8x4096xbf16>
    %c0_1 = arith.constant 0 : index
    %c0_2 = arith.constant 0 : index
    %1 = vector.load %arg2[%c0_1, %c0_2] : memref<4096x256xbf16, #tpu.memory_space<vmem>>, vector<4096x256xbf16>
    %c0_3 = arith.constant 0 : index
    %c0_4 = arith.constant 0 : index
    %2 = vector.load %arg3[%c0_3, %c0_4] : memref<1x256xf32, #tpu.memory_space<vmem>>, vector<1x256xf32>
    %cst = arith.constant dense<0.000000e+00> : vector<8x256xf32>
    %3 = tpu.matmul %0, %1, %cst {dimension_numbers = #tpu.dot_dimension_numbers<[1], [0], [0], [1], [0, 0, 1, 1], [], []>} : vector<8x4096xbf16>, vector<4096x256xbf16>, vector<8x256xf32> -> vector<8x256xf32>
    %4 = vector.broadcast %2 : vector<1x256xf32> to vector<8x256xf32>
    %5 = arith.addf %3, %4 : vector<8x256xf32>
    %cst_5 = arith.constant 0.000000e+00 : f32
    %6 = vector.broadcast %cst_5 : f32 to vector<8x256xf32>
    %7 = arith.maximumf %5, %6 : vector<8x256xf32>
    %c0_6 = arith.constant 0 : index
    %c0_7 = arith.constant 0 : index
    %8 = vector.load %arg4[%c0_6, %c0_7] : memref<256x128xbf16, #tpu.memory_space<vmem>>, vector<256x128xbf16>
    %c0_8 = arith.constant 0 : index
    %c0_9 = arith.constant 0 : index
    %9 = vector.load %arg5[%c0_8, %c0_9] : memref<1x128xf32, #tpu.memory_space<vmem>>, vector<1x128xf32>
    %10 = arith.truncf %7 : vector<8x256xf32> to vector<8x256xbf16>
    %cst_10 = arith.constant dense<0.000000e+00> : vector<8x128xf32>
    %11 = tpu.matmul %10, %8, %cst_10 {dimension_numbers = #tpu.dot_dimension_numbers<[1], [0], [0], [1], [0, 0, 1, 1], [], []>} : vector<8x256xbf16>, vector<256x128xbf16>, vector<8x128xf32> -> vector<8x128xf32>
    %12 = vector.broadcast %9 : vector<1x128xf32> to vector<8x128xf32>
    %13 = arith.addf %11, %12 : vector<8x128xf32>
    %cst_11 = arith.constant 0.000000e+00 : f32
    %14 = vector.broadcast %cst_11 : f32 to vector<8x128xf32>
    %15 = arith.maximumf %13, %14 : vector<8x128xf32>
    %c0_12 = arith.constant 0 : index
    %c0_13 = arith.constant 0 : index
    %16 = vector.load %arg6[%c0_12, %c0_13] : memref<128x64xbf16, #tpu.memory_space<vmem>>, vector<128x64xbf16>
    %c0_14 = arith.constant 0 : index
    %c0_15 = arith.constant 0 : index
    %17 = vector.load %arg7[%c0_14, %c0_15] : memref<1x64xf32, #tpu.memory_space<vmem>>, vector<1x64xf32>
    %18 = arith.truncf %15 : vector<8x128xf32> to vector<8x128xbf16>
    %cst_16 = arith.constant dense<0.000000e+00> : vector<8x64xf32>
    %19 = tpu.matmul %18, %16, %cst_16 {dimension_numbers = #tpu.dot_dimension_numbers<[1], [0], [0], [1], [0, 0, 1, 1], [], []>} : vector<8x128xbf16>, vector<128x64xbf16>, vector<8x64xf32> -> vector<8x64xf32>
    %20 = vector.broadcast %17 : vector<1x64xf32> to vector<8x64xf32>
    %21 = arith.addf %19, %20 : vector<8x64xf32>
    %cst_17 = arith.constant 0.000000e+00 : f32
    %22 = vector.broadcast %cst_17 : f32 to vector<8x64xf32>
    %23 = arith.maximumf %21, %22 : vector<8x64xf32>
    %c0_18 = arith.constant 0 : index
    %c0_19 = arith.constant 0 : index
    %24 = vector.load %arg8[%c0_18, %c0_19] : memref<64x16xbf16, #tpu.memory_space<vmem>>, vector<64x16xbf16>
    %c0_20 = arith.constant 0 : index
    %c0_21 = arith.constant 0 : index
    %25 = vector.load %arg9[%c0_20, %c0_21] : memref<1x16xf32, #tpu.memory_space<vmem>>, vector<1x16xf32>
    %26 = arith.truncf %23 : vector<8x64xf32> to vector<8x64xbf16>
    %cst_22 = arith.constant dense<0.000000e+00> : vector<8x16xf32>
    %27 = tpu.matmul %26, %24, %cst_22 {dimension_numbers = #tpu.dot_dimension_numbers<[1], [0], [0], [1], [0, 0, 1, 1], [], []>} : vector<8x64xbf16>, vector<64x16xbf16>, vector<8x16xf32> -> vector<8x16xf32>
    %28 = vector.broadcast %25 : vector<1x16xf32> to vector<8x16xf32>
    %29 = arith.addf %27, %28 : vector<8x16xf32>
    %c0_23 = arith.constant 0 : index
    %c0_24 = arith.constant 0 : index
    %30 = vector.load %arg10[%c0_23, %c0_24] : memref<16x64xbf16, #tpu.memory_space<vmem>>, vector<16x64xbf16>
    %c0_25 = arith.constant 0 : index
    %c0_26 = arith.constant 0 : index
    %31 = vector.load %arg11[%c0_25, %c0_26] : memref<1x64xf32, #tpu.memory_space<vmem>>, vector<1x64xf32>
    %32 = arith.truncf %29 : vector<8x16xf32> to vector<8x16xbf16>
    %cst_27 = arith.constant dense<0.000000e+00> : vector<8x64xf32>
    %33 = tpu.matmul %32, %30, %cst_27 {dimension_numbers = #tpu.dot_dimension_numbers<[1], [0], [0], [1], [0, 0, 1, 1], [], []>} : vector<8x16xbf16>, vector<16x64xbf16>, vector<8x64xf32> -> vector<8x64xf32>
    %34 = vector.broadcast %31 : vector<1x64xf32> to vector<8x64xf32>
    %35 = arith.addf %33, %34 : vector<8x64xf32>
    %cst_28 = arith.constant 0.000000e+00 : f32
    %36 = vector.broadcast %cst_28 : f32 to vector<8x64xf32>
    %37 = arith.maximumf %35, %36 : vector<8x64xf32>
    %c0_29 = arith.constant 0 : index
    %c0_30 = arith.constant 0 : index
    %38 = vector.load %arg12[%c0_29, %c0_30] : memref<64x128xbf16, #tpu.memory_space<vmem>>, vector<64x128xbf16>
    %c0_31 = arith.constant 0 : index
    %c0_32 = arith.constant 0 : index
    %39 = vector.load %arg13[%c0_31, %c0_32] : memref<1x128xf32, #tpu.memory_space<vmem>>, vector<1x128xf32>
    %40 = arith.truncf %37 : vector<8x64xf32> to vector<8x64xbf16>
    %cst_33 = arith.constant dense<0.000000e+00> : vector<8x128xf32>
    %41 = tpu.matmul %40, %38, %cst_33 {dimension_numbers = #tpu.dot_dimension_numbers<[1], [0], [0], [1], [0, 0, 1, 1], [], []>} : vector<8x64xbf16>, vector<64x128xbf16>, vector<8x128xf32> -> vector<8x128xf32>
    %42 = vector.broadcast %39 : vector<1x128xf32> to vector<8x128xf32>
    %43 = arith.addf %41, %42 : vector<8x128xf32>
    %cst_34 = arith.constant 0.000000e+00 : f32
    %44 = vector.broadcast %cst_34 : f32 to vector<8x128xf32>
    %45 = arith.maximumf %43, %44 : vector<8x128xf32>
    %c0_35 = arith.constant 0 : index
    %c0_36 = arith.constant 0 : index
    %46 = vector.load %arg14[%c0_35, %c0_36] : memref<128x256xbf16, #tpu.memory_space<vmem>>, vector<128x256xbf16>
    %c0_37 = arith.constant 0 : index
    %c0_38 = arith.constant 0 : index
    %47 = vector.load %arg15[%c0_37, %c0_38] : memref<1x256xf32, #tpu.memory_space<vmem>>, vector<1x256xf32>
    %48 = arith.truncf %45 : vector<8x128xf32> to vector<8x128xbf16>
    %cst_39 = arith.constant dense<0.000000e+00> : vector<8x256xf32>
    %49 = tpu.matmul %48, %46, %cst_39 {dimension_numbers = #tpu.dot_dimension_numbers<[1], [0], [0], [1], [0, 0, 1, 1], [], []>} : vector<8x128xbf16>, vector<128x256xbf16>, vector<8x256xf32> -> vector<8x256xf32>
    %50 = vector.broadcast %47 : vector<1x256xf32> to vector<8x256xf32>
    %51 = arith.addf %49, %50 : vector<8x256xf32>
    %cst_40 = arith.constant 0.000000e+00 : f32
    %52 = vector.broadcast %cst_40 : f32 to vector<8x256xf32>
    %53 = arith.maximumf %51, %52 : vector<8x256xf32>
    %c0_41 = arith.constant 0 : index
    %c0_42 = arith.constant 0 : index
    %54 = vector.load %arg16[%c0_41, %c0_42] : memref<256x4096xbf16, #tpu.memory_space<vmem>>, vector<256x4096xbf16>
    %c0_43 = arith.constant 0 : index
    %c0_44 = arith.constant 0 : index
    %55 = vector.load %arg17[%c0_43, %c0_44] : memref<1x4096xf32, #tpu.memory_space<vmem>>, vector<1x4096xf32>
    %56 = arith.truncf %53 : vector<8x256xf32> to vector<8x256xbf16>
    %cst_45 = arith.constant dense<0.000000e+00> : vector<8x4096xf32>
    %57 = tpu.matmul %56, %54, %cst_45 {dimension_numbers = #tpu.dot_dimension_numbers<[1], [0], [0], [1], [0, 0, 1, 1], [], []>} : vector<8x256xbf16>, vector<256x4096xbf16>, vector<8x4096xf32> -> vector<8x4096xf32>
    %58 = vector.broadcast %55 : vector<1x4096xf32> to vector<8x4096xf32>
    %59 = arith.addf %57, %58 : vector<8x4096xf32>
    %60 = arith.negf %59 : vector<8x4096xf32>
    %61 = math.exp %60 : vector<8x4096xf32>
    %cst_46 = arith.constant 1.000000e+00 : f32
    %62 = vector.broadcast %cst_46 : f32 to vector<8x4096xf32>
    %63 = arith.addf %62, %61 : vector<8x4096xf32>
    %64 = arith.divf %62, %63 : vector<8x4096xf32>
    %c0_47 = arith.constant 0 : index
    %c0_48 = arith.constant 0 : index
    %65 = vector.load %arg18[%c0_47, %c0_48] : memref<8x4096xf32, #tpu.memory_space<vmem>>, vector<8x4096xf32>
    tpu.vector_store %arg18[%c0_47, %c0_48], %64 {strides = array<i32>} : memref<8x4096xf32, #tpu.memory_space<vmem>>, vector<8x4096xf32>,
    return
  }
  func.func @transform_0(%arg0: i32) -> (i32, i32) {
    %c0_i32 = arith.constant 0 : i32
    %c0_i32_0 = arith.constant 0 : i32
    return %arg0, %c0_i32 : i32, i32
  }
  func.func @transform_1(%arg0: i32) -> (i32, i32) {
    %c0_i32 = arith.constant 0 : i32
    %c0_i32_0 = arith.constant 0 : i32
    %c0_i32_1 = arith.constant 0 : i32
    return %c0_i32, %c0_i32_0 : i32, i32
  }
  func.func @transform_2(%arg0: i32) -> (i32, i32) {
    %c0_i32 = arith.constant 0 : i32
    %c0_i32_0 = arith.constant 0 : i32
    %c0_i32_1 = arith.constant 0 : i32
    return %c0_i32, %c0_i32_0 : i32, i32
  }
  func.func @transform_3(%arg0: i32) -> (i32, i32) {
    %c0_i32 = arith.constant 0 : i32
    %c0_i32_0 = arith.constant 0 : i32
    %c0_i32_1 = arith.constant 0 : i32
    return %c0_i32, %c0_i32_0 : i32, i32
  }
  func.func @transform_4(%arg0: i32) -> (i32, i32) {
    %c0_i32 = arith.constant 0 : i32
    %c0_i32_0 = arith.constant 0 : i32
    %c0_i32_1 = arith.constant 0 : i32
    return %c0_i32, %c0_i32_0 : i32, i32
  }
  func.func @transform_5(%arg0: i32) -> (i32, i32) {
    %c0_i32 = arith.constant 0 : i32
    %c0_i32_0 = arith.constant 0 : i32
    %c0_i32_1 = arith.constant 0 : i32
    return %c0_i32, %c0_i32_0 : i32, i32
  }
  func.func @transform_6(%arg0: i32) -> (i32, i32) {
    %c0_i32 = arith.constant 0 : i32
    %c0_i32_0 = arith.constant 0 : i32
    %c0_i32_1 = arith.constant 0 : i32
    return %c0_i32, %c0_i32_0 : i32, i32
  }
  func.func @transform_7(%arg0: i32) -> (i32, i32) {
    %c0_i32 = arith.constant 0 : i32
    %c0_i32_0 = arith.constant 0 : i32
    %c0_i32_1 = arith.constant 0 : i32
    return %c0_i32, %c0_i32_0 : i32, i32
  }
  func.func @transform_8(%arg0: i32) -> (i32, i32) {
    %c0_i32 = arith.constant 0 : i32
    %c0_i32_0 = arith.constant 0 : i32
    %c0_i32_1 = arith.constant 0 : i32
    return %c0_i32, %c0_i32_0 : i32, i32
  }
  func.func @transform_9(%arg0: i32) -> (i32, i32) {
    %c0_i32 = arith.constant 0 : i32
    %c0_i32_0 = arith.constant 0 : i32
    %c0_i32_1 = arith.constant 0 : i32
    return %c0_i32, %c0_i32_0 : i32, i32
  }
  func.func @transform_10(%arg0: i32) -> (i32, i32) {
    %c0_i32 = arith.constant 0 : i32
    %c0_i32_0 = arith.constant 0 : i32
    %c0_i32_1 = arith.constant 0 : i32
    return %c0_i32, %c0_i32_0 : i32, i32
  }
  func.func @transform_11(%arg0: i32) -> (i32, i32) {
    %c0_i32 = arith.constant 0 : i32
    %c0_i32_0 = arith.constant 0 : i32
    %c0_i32_1 = arith.constant 0 : i32
    return %c0_i32, %c0_i32_0 : i32, i32
  }
  func.func @transform_12(%arg0: i32) -> (i32, i32) {
    %c0_i32 = arith.constant 0 : i32
    %c0_i32_0 = arith.constant 0 : i32
    %c0_i32_1 = arith.constant 0 : i32
    return %c0_i32, %c0_i32_0 : i32, i32
  }
  func.func @transform_13(%arg0: i32) -> (i32, i32) {
    %c0_i32 = arith.constant 0 : i32
    %c0_i32_0 = arith.constant 0 : i32
    %c0_i32_1 = arith.constant 0 : i32
    return %c0_i32, %c0_i32_0 : i32, i32
  }
  func.func @transform_14(%arg0: i32) -> (i32, i32) {
    %c0_i32 = arith.constant 0 : i32
    %c0_i32_0 = arith.constant 0 : i32
    %c0_i32_1 = arith.constant 0 : i32
    return %c0_i32, %c0_i32_0 : i32, i32
  }
  func.func @transform_15(%arg0: i32) -> (i32, i32) {
    %c0_i32 = arith.constant 0 : i32
    %c0_i32_0 = arith.constant 0 : i32
    %c0_i32_1 = arith.constant 0 : i32
    return %c0_i32, %c0_i32_0 : i32, i32
  }
  func.func @transform_16(%arg0: i32) -> (i32, i32) {
    %c0_i32 = arith.constant 0 : i32
    %c0_i32_0 = arith.constant 0 : i32
    %c0_i32_1 = arith.constant 0 : i32
    return %c0_i32, %c0_i32_0 : i32, i32
  }
  func.func @transform_17(%arg0: i32) -> (i32, i32) {
    %c0_i32 = arith.constant 0 : i32
    %c0_i32_0 = arith.constant 0 : i32
    return %arg0, %c0_i32 : i32, i32
  }
}

</mosaic_0001>

<bundles_post_ra>
// kernel: autoencoder_fc_forward.1
= control target key start
LH: loop header
LB: loop body
LE: loop exit
PB: predicated region body
PF: predicated region fallthrough
CT: control target
= control target key end

     0   :  { %vm11015_vm0 = vmmov 0   ;;  %vm4258_vm1 = vcmask 523264   ;;  %vm4318_vm2 = vcmask 130048   ;;  %s14762_s1 = inlined_call_operand.vmem [shape: bf16[4096,256], index: 1, kind: input, shape index: {}]   ;;  %s14763_s0 = inlined_call_operand.vmem [shape: bf16[8,4096], index: 0, kind: input, shape index: {}]   ;;  %s14764_s3 = inlined_call_operand.vmem [shape: bf16[256,128], index: 3, kind: input, shape index: {}]   ;;  %s14765_s5 = inlined_call_operand.vmem [shape: bf16[128,64], index: 5, kind: input, shape index: {}]   ;;  %s14766_s2 = inlined_call_operand.vmem [shape: f32[1,256], index: 2, kind: input, shape index: {}]   ;;  %s14767_s7 = inlined_call_operand.vmem [shape: bf16[64,16], index: 7, kind: input, shape index: {}]   ;;  %s14768_s4 = inlined_call_operand.vmem [shape: f32[1,128], index: 4, kind: input, shape index: {}]   ;;  %s14769_s9 = inlined_call_operand.vmem [shape: bf16[16,64], index: 9, kind: input, shape index: {}]   ;;  %s14770_s6 = inlined_call_operand.vmem [shape: f32[1,64], index: 6, kind: input, shape index: {}]   ;;  %s14771_s11 = inlined_call_operand.vmem [shape: bf16[64,128], index: 11, kind: input, shape index: {}]   ;;  %s14772_s8 = inlined_call_operand.vmem [shape: f32[1,16], index: 8, kind: input, shape index: {}]   ;;  %s14773_s13 = inlined_call_operand.vmem [shape: bf16[128,256], index: 13, kind: input, shape index: {}]   ;;  %s14774_s10 = inlined_call_operand.vmem [shape: f32[1,64], index: 10, kind: input, shape index: {}]   ;;  %s14775_s15 = inlined_call_operand.vmem [shape: bf16[256,4096], index: 15, kind: input, shape index: {}]   ;;  %s14776_s12 = inlined_call_operand.vmem [shape: f32[1,128], index: 12, kind: input, shape index: {}]   ;;  %s14777_s14 = inlined_call_operand.vmem [shape: f32[1,256], index: 14, kind: input, shape index: {}]   ;;  %s14778_s16 = inlined_call_operand.vmem [shape: f32[1,4096], index: 16, kind: input, shape index: {}]   ;;  %s14779_s17 = inlined_call_operand.vmem [shape: f32[8,4096], index: 17, kind: output, shape index: {}]  }
   0x1   :  { %14782 = sst [smem:[#allocation2_spill]] %s14762_s1 }
   0x2   :  { %14783 = sst [smem:[#allocation3_spill]] %s14763_s0  ;;  %s14784_s26 = sld [smem:[#allocation2_spill]] }
   0x3   :  { %s14785_s24 = sld [smem:[#allocation3_spill]] }
   0x8   :  { %v10028_v0 = vld [vmem:[%s14784_s26 + $0x4] ss:$8 sps:$4 sm:$0xff]   ;;  %v10030_v1 = vld [vmem:[%s14784_s26] ss:$8 sps:$4 sm:$0xff]   ;;  %v10031_v2 = vld [vmem:[%s14784_s26 + $0x14] ss:$8 sps:$4 sm:$0xff]  }
   0x9   :  { %3269 = vmatprep.subr.bf16.mxu0 %v10028_v0  ;;  %v10033_v3 = vld [vmem:[%s14784_s26 + $0x10] ss:$8 sps:$4 sm:$0xff]   ;;  %v10034_v4 = vld [vmem:[%s14784_s26 + $0x24] ss:$8 sps:$4 sm:$0xff]   ;;  %v10036_v5 = vld [vmem:[%s14784_s26 + $0x20] ss:$8 sps:$4 sm:$0xff]  }
   0xa   :  { %3270 = vmatpush1.bf16.msra.mxu0 %v10030_v1  ;;  %v10037_v6 = vld [vmem:[%s14784_s26 + $0x34] ss:$8 sps:$4 sm:$0xff]   ;;  %v10039_v7 = vld [vmem:[%s14784_s26 + $0x30] ss:$8 sps:$4 sm:$0xff]   ;;  %v10040_v8 = vld [vmem:[%s14784_s26 + $0x44] ss:$8 sps:$4 sm:$0xff]  }
   0xb   :  { %3271 = vmatprep.subr.bf16.mxu0 %v10031_v2  ;;  %v10042_v9 = vld [vmem:[%s14784_s26 + $0x40] ss:$8 sps:$4 sm:$0xff]   ;;  %v10043_v10 = vld [vmem:[%s14784_s26 + $0x54] ss:$8 sps:$4 sm:$0xff]   ;;  %v10045_v11 = vld [vmem:[%s14784_s26 + $0x50] ss:$8 sps:$4 sm:$0xff]  }
   0xc   :  { %v10046_v12 = vld [vmem:[%s14784_s26 + $0x64] ss:$8 sps:$4 sm:$0xff]   ;;  %v10048_v15 = vld [vmem:[%s14784_s26 + $0x60] ss:$8 sps:$4 sm:$0xff]   ;;  %v10049_v16 = vld [vmem:[%s14784_s26 + $0x74] ss:$8 sps:$4 sm:$0xff]  }
   0xd   :  { %v57_v13 = vld [vmem:[%s14785_s24] sm:$0xff]  ;;  %v10051_v17 = vld [vmem:[%s14784_s26 + $0x70] ss:$8 sps:$4 sm:$0xff]   ;;  %v10055_v20 = vld [vmem:[%s14784_s26 + $0x94] ss:$8 sps:$4 sm:$0xff]  }
   0xe   :  { %3272 = vmatpush1.bf16.msra.mxu0 %v10033_v3  ;;  %v8726_v14 = vcombine.high %v57_v13, %v57_v13  ;;  %v10052_v18 = vld [vmem:[%s14784_s26 + $0x84] ss:$8 sps:$4 sm:$0xff]   ;;  %v10054_v19 = vld [vmem:[%s14784_s26 + $0x80] ss:$8 sps:$4 sm:$0xff]   ;;  %v10057_v21 = vld [vmem:[%s14784_s26 + $0x90] ss:$8 sps:$4 sm:$0xff]   ;;  %v8725_v36 = vcombine.low %v57_v13, %v57_v13 }
   0xf   :  { %3273 = vmatprep.subr.bf16.mxu0 %v10034_v4  ;;  %v10058_v22 = vld [vmem:[%s14784_s26 + $0xa4] ss:$8 sps:$4 sm:$0xff]   ;;  %v10060_v23 = vld [vmem:[%s14784_s26 + $0xa0] ss:$8 sps:$4 sm:$0xff]   ;;  %v10061_v24 = vld [vmem:[%s14784_s26 + $0xb4] ss:$8 sps:$4 sm:$0xff]  }
  0x10   :  { %3301 = vmatprep.mubr.bf16.mxu0 %v8726_v14  ;;  %v10063_v25 = vld [vmem:[%s14784_s26 + $0xb0] ss:$8 sps:$4 sm:$0xff]   ;;  %v10064_v26 = vld [vmem:[%s14784_s26 + $0xc4] ss:$8 sps:$4 sm:$0xff]   ;;  %v10066_v27 = vld [vmem:[%s14784_s26 + $0xc0] ss:$8 sps:$4 sm:$0xff]  }
  0x11   :  { %v10067_v28 = vld [vmem:[%s14784_s26 + $0xd4] ss:$8 sps:$4 sm:$0xff]   ;;  %v10069_v29 = vld [vmem:[%s14784_s26 + $0xd0] ss:$8 sps:$4 sm:$0xff]   ;;  %v10070_v30 = vld [vmem:[%s14784_s26 + $0xe4] ss:$8 sps:$4 sm:$0xff]  }
  0x12   :  { %3274 = vmatpush1.bf16.msra.mxu0 %v10036_v5  ;;  %v10072_v31 = vld [vmem:[%s14784_s26 + $0xe0] ss:$8 sps:$4 sm:$0xff]   ;;  %v10073_v32 = vld [vmem:[%s14784_s26 + $0xf4] ss:$8 sps:$4 sm:$0xff]   ;;  %v10075_v33 = vld [vmem:[%s14784_s26 + $0xf0] ss:$8 sps:$4 sm:$0xff]  }
  0x13   :  { %3275 = vmatprep.subr.bf16.mxu0 %v10037_v6  ;;  %v10080_v34 = vld [vmem:[%s14784_s26 + $0x104] ss:$8 sps:$4 sm:$0xff]   ;;  %v10078_v37 = vld [vmem:[%s14784_s26 + $0x100] ss:$8 sps:$4 sm:$0xff]   ;;  %v10083_v39 = vld [vmem:[%s14784_s26 + $0x114] ss:$8 sps:$4 sm:$0xff]  }
  0x14   :  { %v11212_v35 = vld [vmem:[%s14785_s24 + $0x8] sm:$0xff]  ;;  %v10081_v40 = vld [vmem:[%s14784_s26 + $0x110] ss:$8 sps:$4 sm:$0xff]   ;;  %v10089_v43 = vld [vmem:[%s14784_s26 + $0x134] ss:$8 sps:$4 sm:$0xff]  }
  0x15   :  { %v8728_v38 = vcombine.high %v11212_v35, %v11212_v35  ;;  %v10086_v41 = vld [vmem:[%s14784_s26 + $0x124] ss:$8 sps:$4 sm:$0xff]   ;;  %v10084_v42 = vld [vmem:[%s14784_s26 + $0x120] ss:$8 sps:$4 sm:$0xff]   ;;  %v10087_v44 = vld [vmem:[%s14784_s26 + $0x130] ss:$8 sps:$4 sm:$0xff]  }
  0x16   :  { %3276 = vmatpush1.bf16.msra.mxu0 %v10039_v7  ;;  %v10092_v45 = vld [vmem:[%s14784_s26 + $0x144] ss:$8 sps:$4 sm:$0xff]   ;;  %v10090_v46 = vld [vmem:[%s14784_s26 + $0x140] ss:$8 sps:$4 sm:$0xff]   ;;  %v10095_v47 = vld [vmem:[%s14784_s26 + $0x154] ss:$8 sps:$4 sm:$0xff]   ;;  %v8727_v7 = vcombine.low %v11212_v35, %v11212_v35 }
  0x17   :  { %3277 = vmatprep.subr.bf16.mxu0 %v10040_v8  ;;  %v10093_v48 = vld [vmem:[%s14784_s26 + $0x150] ss:$8 sps:$4 sm:$0xff]   ;;  %v10098_v49 = vld [vmem:[%s14784_s26 + $0x164] ss:$8 sps:$4 sm:$0xff]   ;;  %v10096_v50 = vld [vmem:[%s14784_s26 + $0x160] ss:$8 sps:$4 sm:$0xff]  }
  0x18   :  { %v10101_v51 = vld [vmem:[%s14784_s26 + $0x174] ss:$8 sps:$4 sm:$0xff]   ;;  %v10099_v52 = vld [vmem:[%s14784_s26 + $0x170] ss:$8 sps:$4 sm:$0xff]   ;;  %v10104_v53 = vld [vmem:[%s14784_s26 + $0x184] ss:$8 sps:$4 sm:$0xff]  }
  0x19   :  { %v10102_v54 = vld [vmem:[%s14784_s26 + $0x180] ss:$8 sps:$4 sm:$0xff]   ;;  %v10107_v55 = vld [vmem:[%s14784_s26 + $0x194] ss:$8 sps:$4 sm:$0xff]   ;;  %v10105_v56 = vld [vmem:[%s14784_s26 + $0x190] ss:$8 sps:$4 sm:$0xff]  }
  0x1a   :  { %3278 = vmatpush1.bf16.msra.mxu0 %v10042_v9  ;;  %v10110_v57 = vld [vmem:[%s14784_s26 + $0x1a4] ss:$8 sps:$4 sm:$0xff]   ;;  %v10108_v58 = vld [vmem:[%s14784_s26 + $0x1a0] ss:$8 sps:$4 sm:$0xff]   ;;  %v10113_v59 = vld [vmem:[%s14784_s26 + $0x1b4] ss:$8 sps:$4 sm:$0xff]  }
  0x1b   :  { %3279 = vmatprep.subr.bf16.mxu0 %v10043_v10  ;;  %v10111_v60 = vld [vmem:[%s14784_s26 + $0x1b0] ss:$8 sps:$4 sm:$0xff]   ;;  %v10116_v61 = vld [vmem:[%s14784_s26 + $0x1c4] ss:$8 sps:$4 sm:$0xff]   ;;  %v10114_v62 = vld [vmem:[%s14784_s26 + $0x1c0] ss:$8 sps:$4 sm:$0xff]  }
  0x1c   :  { %v10119_v63 = vld [vmem:[%s14784_s26 + $0x1d4] ss:$8 sps:$4 sm:$0xff]   ;;  %v10117_v0 = vld [vmem:[%s14784_s26 + $0x1d0] ss:$8 sps:$4 sm:$0xff]   ;;  %v10122_v1 = vld [vmem:[%s14784_s26 + $0x1e4] ss:$8 sps:$4 sm:$0xff]  }
  0x1d   :  { %v10120_v2 = vld [vmem:[%s14784_s26 + $0x1e0] ss:$8 sps:$4 sm:$0xff]   ;;  %v10125_v3 = vld [vmem:[%s14784_s26 + $0x1f4] ss:$8 sps:$4 sm:$0xff]   ;;  %v10123_v4 = vld [vmem:[%s14784_s26 + $0x1f0] ss:$8 sps:$4 sm:$0xff]  }
  0x1e   :  { %3280 = vmatpush1.bf16.msra.mxu0 %v10045_v11  ;;  %v10130_v5 = vld [vmem:[%s14784_s26 + $0x204] ss:$8 sps:$4 sm:$0xff]   ;;  %v11315_v6 = vld [vmem:[%s14785_s24 + $0x10] sm:$0xff]  ;;  %v10128_v8 = vld [vmem:[%s14784_s26 + $0x200] ss:$8 sps:$4 sm:$0xff]  }
  0x1f   :  { %3281 = vmatprep.subr.bf16.mxu0 %v10046_v12  ;;  %v10133_v9 = vld [vmem:[%s14784_s26 + $0x214] ss:$8 sps:$4 sm:$0xff]   ;;  %v8730_v10 = vcombine.high %v11315_v6, %v11315_v6  ;;  %v10131_v11 = vld [vmem:[%s14784_s26 + $0x210] ss:$8 sps:$4 sm:$0xff]   ;;  %v10136_v12 = vld [vmem:[%s14784_s26 + $0x224] ss:$8 sps:$4 sm:$0xff]  }
  0x20   :  { %v10134_v13 = vld [vmem:[%s14784_s26 + $0x220] ss:$8 sps:$4 sm:$0xff]   ;;  %v10139_v14 = vld [vmem:[%s14784_s26 + $0x234] ss:$8 sps:$4 sm:$0xff]   ;;  %v10167_v35 = vld [vmem:[%s14784_s26 + $0x2d0] ss:$8 sps:$4 sm:$0xff]  }
  0x22   :  { %3282 = vmatpush1.bf16.msra.mxu0 %v10048_v15  ;;  %v10137_v15 = vld [vmem:[%s14784_s26 + $0x230] ss:$8 sps:$4 sm:$0xff]  }
  0x23   :  { %3283 = vmatprep.subr.bf16.mxu0 %v10049_v16  ;;  %v10142_v16 = vld [vmem:[%s14784_s26 + $0x244] ss:$8 sps:$4 sm:$0xff]  }
  0x26   :  { %3284 = vmatpush1.bf16.msra.mxu0 %v10051_v17  ;;  %v10140_v17 = vld [vmem:[%s14784_s26 + $0x240] ss:$8 sps:$4 sm:$0xff]  }
  0x27   :  { %3285 = vmatprep.subr.bf16.mxu0 %v10052_v18  ;;  %v10145_v18 = vld [vmem:[%s14784_s26 + $0x254] ss:$8 sps:$4 sm:$0xff]  }
  0x2a   :  { %3286 = vmatpush1.bf16.msra.mxu0 %v10054_v19  ;;  %v10143_v19 = vld [vmem:[%s14784_s26 + $0x250] ss:$8 sps:$4 sm:$0xff]  }
  0x2b   :  { %3287 = vmatprep.subr.bf16.mxu0 %v10055_v20  ;;  %v10148_v20 = vld [vmem:[%s14784_s26 + $0x264] ss:$8 sps:$4 sm:$0xff]  }
  0x2e   :  { %3288 = vmatpush1.bf16.msra.mxu0 %v10057_v21  ;;  %v10146_v21 = vld [vmem:[%s14784_s26 + $0x260] ss:$8 sps:$4 sm:$0xff]  }
  0x2f   :  { %3289 = vmatprep.subr.bf16.mxu0 %v10058_v22  ;;  %v10151_v22 = vld [vmem:[%s14784_s26 + $0x274] ss:$8 sps:$4 sm:$0xff]  }
  0x32   :  { %3290 = vmatpush1.bf16.msra.mxu0 %v10060_v23  ;;  %v10149_v23 = vld [vmem:[%s14784_s26 + $0x270] ss:$8 sps:$4 sm:$0xff]  }
  0x33   :  { %3291 = vmatprep.subr.bf16.mxu0 %v10061_v24  ;;  %v10154_v24 = vld [vmem:[%s14784_s26 + $0x284] ss:$8 sps:$4 sm:$0xff]  }
  0x36   :  { %3292 = vmatpush1.bf16.msra.mxu0 %v10063_v25  ;;  %v10152_v25 = vld [vmem:[%s14784_s26 + $0x280] ss:$8 sps:$4 sm:$0xff]  }
  0x37   :  { %3293 = vmatprep.subr.bf16.mxu0 %v10064_v26  ;;  %v10157_v26 = vld [vmem:[%s14784_s26 + $0x294] ss:$8 sps:$4 sm:$0xff]  }
  0x3a   :  { %3294 = vmatpush1.bf16.msra.mxu0 %v10066_v27  ;;  %v10155_v27 = vld [vmem:[%s14784_s26 + $0x290] ss:$8 sps:$4 sm:$0xff]  }
  0x3b   :  { %3295 = vmatprep.subr.bf16.mxu0 %v10067_v28  ;;  %v10160_v28 = vld [vmem:[%s14784_s26 + $0x2a4] ss:$8 sps:$4 sm:$0xff]  }
  0x3e   :  { %3296 = vmatpush1.bf16.msra.mxu0 %v10069_v29  ;;  %v10158_v29 = vld [vmem:[%s14784_s26 + $0x2a0] ss:$8 sps:$4 sm:$0xff]  }
  0x3f   :  { %3297 = vmatprep.subr.bf16.mxu0 %v10070_v30  ;;  %v10163_v30 = vld [vmem:[%s14784_s26 + $0x2b4] ss:$8 sps:$4 sm:$0xff]  }
  0x42   :  { %3298 = vmatpush1.bf16.msra.mxu0 %v10072_v31  ;;  %v10161_v31 = vld [vmem:[%s14784_s26 + $0x2b0] ss:$8 sps:$4 sm:$0xff]  }
  0x43   :  { %3299 = vmatprep.subr.bf16.mxu0 %v10073_v32  ;;  %v10166_v32 = vld [vmem:[%s14784_s26 + $0x2c4] ss:$8 sps:$4 sm:$0xff]  }
  0x46   :  { %3300 = vmatpush1.bf16.msra.mxu0 %v10075_v33  ;;  %v10164_v33 = vld [vmem:[%s14784_s26 + $0x2c0] ss:$8 sps:$4 sm:$0xff]  }
  0x47   :  { %3310 = vmatprep.subr.bf16.mxu0 %v10080_v34  ;;  %v10169_v34 = vld [vmem:[%s14784_s26 + $0x2d4] ss:$8 sps:$4 sm:$0xff]  }
  0x49   :  { %3302 = vmatmul.mubr.bf16.vlgmr.msra.gmra.mrb[0].mxu0 %v8725_v36  ;;  %v10172_v36 = vld [vmem:[%s14784_s26 + $0x2e4] ss:$8 sps:$4 sm:$0xff]  }
  0x4a   :  { %3311 = vmatpush1.bf16.msra.mxu0 %v10078_v37  ;;  %3342 = vmatprep.mubr.bf16.mxu0 %v8728_v38  ;;  %v10170_v37 = vld [vmem:[%s14784_s26 + $0x2e0] ss:$8 sps:$4 sm:$0xff]   ;;  %v10175_v38 = vld [vmem:[%s14784_s26 + $0x2f4] ss:$8 sps:$4 sm:$0xff]  }
  0x4b   :  { %3312 = vmatprep.subr.bf16.mxu0 %v10083_v39  ;;  %v10173_v39 = vld [vmem:[%s14784_s26 + $0x2f0] ss:$8 sps:$4 sm:$0xff]  }
  0x4e   :  { %3313 = vmatpush1.bf16.msra.mxu0 %v10081_v40  ;;  %v10180_v40 = vld [vmem:[%s14784_s26 + $0x304] ss:$8 sps:$4 sm:$0xff]  }
  0x4f   :  { %3314 = vmatprep.subr.bf16.mxu0 %v10086_v41  ;;  %v11420_v41 = vld [vmem:[%s14785_s24 + $0x18] sm:$0xff] }
  0x52   :  { %3315 = vmatpush1.bf16.msra.mxu0 %v10084_v42  ;;  %v8729_v42 = vcombine.low %v11315_v6, %v11315_v6  ;;  %v10217_v6 = vld [vmem:[%s14784_s26 + $0x3d0] ss:$8 sps:$4 sm:$0xff]  }
  0x53   :  { %3316 = vmatprep.subr.bf16.mxu0 %v10089_v43  ;;  %v10178_v43 = vld [vmem:[%s14784_s26 + $0x300] ss:$8 sps:$4 sm:$0xff]  }
  0x56   :  { %3317 = vmatpush1.bf16.msra.mxu0 %v10087_v44  ;;  %v10183_v44 = vld [vmem:[%s14784_s26 + $0x314] ss:$8 sps:$4 sm:$0xff]  }
  0x57   :  { %3318 = vmatprep.subr.bf16.mxu0 %v10092_v45  ;;  %v8732_v45 = vcombine.high %v11420_v41, %v11420_v41 }
  0x5a   :  { %3319 = vmatpush1.bf16.msra.mxu0 %v10090_v46  ;;  %v10181_v46 = vld [vmem:[%s14784_s26 + $0x310] ss:$8 sps:$4 sm:$0xff]  }
  0x5b   :  { %3320 = vmatprep.subr.bf16.mxu0 %v10095_v47  ;;  %v10186_v47 = vld [vmem:[%s14784_s26 + $0x324] ss:$8 sps:$4 sm:$0xff]  }
  0x5e   :  { %3321 = vmatpush1.bf16.msra.mxu0 %v10093_v48  ;;  %v10184_v48 = vld [vmem:[%s14784_s26 + $0x320] ss:$8 sps:$4 sm:$0xff]  }
  0x5f   :  { %3322 = vmatprep.subr.bf16.mxu0 %v10098_v49  ;;  %v10189_v49 = vld [vmem:[%s14784_s26 + $0x334] ss:$8 sps:$4 sm:$0xff]  }
  0x62   :  { %3323 = vmatpush1.bf16.msra.mxu0 %v10096_v50  ;;  %v10187_v50 = vld [vmem:[%s14784_s26 + $0x330] ss:$8 sps:$4 sm:$0xff]  }
  0x63   :  { %3324 = vmatprep.subr.bf16.mxu0 %v10101_v51  ;;  %v10192_v51 = vld [vmem:[%s14784_s26 + $0x344] ss:$8 sps:$4 sm:$0xff]  }
  0x66   :  { %3325 = vmatpush1.bf16.msra.mxu0 %v10099_v52  ;;  %v10190_v52 = vld [vmem:[%s14784_s26 + $0x340] ss:$8 sps:$4 sm:$0xff]  }
  0x67   :  { %3326 = vmatprep.subr.bf16.mxu0 %v10104_v53  ;;  %v10195_v53 = vld [vmem:[%s14784_s26 + $0x354] ss:$8 sps:$4 sm:$0xff]  }
  0x6a   :  { %3327 = vmatpush1.bf16.msra.mxu0 %v10102_v54  ;;  %v10193_v54 = vld [vmem:[%s14784_s26 + $0x350] ss:$8 sps:$4 sm:$0xff]  }
  0x6b   :  { %3328 = vmatprep.subr.bf16.mxu0 %v10107_v55  ;;  %v10198_v55 = vld [vmem:[%s14784_s26 + $0x364] ss:$8 sps:$4 sm:$0xff]  }
  0x6e   :  { %3329 = vmatpush1.bf16.msra.mxu0 %v10105_v56  ;;  %v10196_v56 = vld [vmem:[%s14784_s26 + $0x360] ss:$8 sps:$4 sm:$0xff]  }
  0x6f   :  { %3330 = vmatprep.subr.bf16.mxu0 %v10110_v57  ;;  %v10201_v57 = vld [vmem:[%s14784_s26 + $0x374] ss:$8 sps:$4 sm:$0xff]  }
  0x72   :  { %3331 = vmatpush1.bf16.msra.mxu0 %v10108_v58  ;;  %v10199_v58 = vld [vmem:[%s14784_s26 + $0x370] ss:$8 sps:$4 sm:$0xff]  }
  0x73   :  { %3332 = vmatprep.subr.bf16.mxu0 %v10113_v59  ;;  %v10204_v59 = vld [vmem:[%s14784_s26 + $0x384] ss:$8 sps:$4 sm:$0xff]  }
  0x76   :  { %3333 = vmatpush1.bf16.msra.mxu0 %v10111_v60  ;;  %v10202_v60 = vld [vmem:[%s14784_s26 + $0x380] ss:$8 sps:$4 sm:$0xff]  }
  0x77   :  { %3334 = vmatprep.subr.bf16.mxu0 %v10116_v61  ;;  %v10207_v61 = vld [vmem:[%s14784_s26 + $0x394] ss:$8 sps:$4 sm:$0xff]  }
  0x7a   :  { %3335 = vmatpush1.bf16.msra.mxu0 %v10114_v62  ;;  %v10205_v62 = vld [vmem:[%s14784_s26 + $0x390] ss:$8 sps:$4 sm:$0xff]  }
  0x7b   :  { %3336 = vmatprep.subr.bf16.mxu0 %v10119_v63  ;;  %v10210_v63 = vld [vmem:[%s14784_s26 + $0x3a4] ss:$8 sps:$4 sm:$0xff]  }
  0x7e   :  { %3337 = vmatpush1.bf16.msra.mxu0 %v10117_v0  ;;  %v10208_v0 = vld [vmem:[%s14784_s26 + $0x3a0] ss:$8 sps:$4 sm:$0xff]  }
  0x7f   :  { %3338 = vmatprep.subr.bf16.mxu0 %v10122_v1  ;;  %v10213_v1 = vld [vmem:[%s14784_s26 + $0x3b4] ss:$8 sps:$4 sm:$0xff]  }
  0x82   :  { %3339 = vmatpush1.bf16.msra.mxu0 %v10120_v2  ;;  %v10211_v2 = vld [vmem:[%s14784_s26 + $0x3b0] ss:$8 sps:$4 sm:$0xff]  }
  0x83   :  { %3340 = vmatprep.subr.bf16.mxu0 %v10125_v3  ;;  %v10216_v3 = vld [vmem:[%s14784_s26 + $0x3c4] ss:$8 sps:$4 sm:$0xff]  }
  0x86   :  { %3341 = vmatpush1.bf16.msra.mxu0 %v10123_v4  ;;  %v10214_v4 = vld [vmem:[%s14784_s26 + $0x3c0] ss:$8 sps:$4 sm:$0xff]  }
  0x87   :  { %3351 = vmatprep.subr.bf16.mxu0 %v10130_v5  ;;  %v10219_v5 = vld [vmem:[%s14784_s26 + $0x3d4] ss:$8 sps:$4 sm:$0xff]  }
  0x89   :  { %3343 = vmatmul.mubr.bf16.vlgmr.msra.gmra.mrb[0].mxu0 %v8727_v7  ;;  %v10222_v7 = vld [vmem:[%s14784_s26 + $0x3e4] ss:$8 sps:$4 sm:$0xff]  }
  0x8a   :  { %3352 = vmatpush1.bf16.msra.mxu0 %v10128_v8  ;;  %3383 = vmatprep.mubr.bf16.mxu0 %v8730_v10  ;;  %v10220_v8 = vld [vmem:[%s14784_s26 + $0x3e0] ss:$8 sps:$4 sm:$0xff]   ;;  %v10223_v10 = vld [vmem:[%s14784_s26 + $0x3f0] ss:$8 sps:$4 sm:$0xff]  }
  0x8b   :  { %3353 = vmatprep.subr.bf16.mxu0 %v10133_v9  ;;  %v10225_v9 = vld [vmem:[%s14784_s26 + $0x3f4] ss:$8 sps:$4 sm:$0xff]  }
  0x8e   :  { %3354 = vmatpush1.bf16.msra.mxu0 %v10131_v11  ;;  %v10230_v11 = vld [vmem:[%s14784_s26 + $0x404] ss:$8 sps:$4 sm:$0xff]  }
  0x8f   :  { %3355 = vmatprep.subr.bf16.mxu0 %v10136_v12  ;;  %v11525_v12 = vld [vmem:[%s14785_s24 + $0x20] sm:$0xff] }
  0x92   :  { %3356 = vmatpush1.bf16.msra.mxu0 %v10134_v13  ;;  %v8731_v13 = vcombine.low %v11420_v41, %v11420_v41  ;;  %v10267_v41 = vld [vmem:[%s14784_s26 + $0x4d0] ss:$8 sps:$4 sm:$0xff]  }
  0x93   :  { %3357 = vmatprep.subr.bf16.mxu0 %v10139_v14  ;;  %v10228_v14 = vld [vmem:[%s14784_s26 + $0x400] ss:$8 sps:$4 sm:$0xff]  }
  0x96   :  { %3358 = vmatpush1.bf16.msra.mxu0 %v10137_v15  ;;  %v8734_v15 = vcombine.high %v11525_v12, %v11525_v12 }
  0x97   :  { %3359 = vmatprep.subr.bf16.mxu0 %v10142_v16  ;;  %v10233_v16 = vld [vmem:[%s14784_s26 + $0x414] ss:$8 sps:$4 sm:$0xff]  }
  0x9a   :  { %3360 = vmatpush1.bf16.msra.mxu0 %v10140_v17  ;;  %v10231_v17 = vld [vmem:[%s14784_s26 + $0x410] ss:$8 sps:$4 sm:$0xff]  }
  0x9b   :  { %3361 = vmatprep.subr.bf16.mxu0 %v10145_v18  ;;  %v10236_v18 = vld [vmem:[%s14784_s26 + $0x424] ss:$8 sps:$4 sm:$0xff]  }
  0x9e   :  { %3362 = vmatpush1.bf16.msra.mxu0 %v10143_v19  ;;  %v10234_v19 = vld [vmem:[%s14784_s26 + $0x420] ss:$8 sps:$4 sm:$0xff]  }
  0x9f   :  { %3363 = vmatprep.subr.bf16.mxu0 %v10148_v20  ;;  %v10239_v20 = vld [vmem:[%s14784_s26 + $0x434] ss:$8 sps:$4 sm:$0xff]  }
  0xa2   :  { %3364 = vmatpush1.bf16.msra.mxu0 %v10146_v21  ;;  %v10237_v21 = vld [vmem:[%s14784_s26 + $0x430] ss:$8 sps:$4 sm:$0xff]  }
  0xa3   :  { %3365 = vmatprep.subr.bf16.mxu0 %v10151_v22  ;;  %v10242_v22 = vld [vmem:[%s14784_s26 + $0x444] ss:$8 sps:$4 sm:$0xff]  }
  0xa6   :  { %3366 = vmatpush1.bf16.msra.mxu0 %v10149_v23  ;;  %v10240_v23 = vld [vmem:[%s14784_s26 + $0x440] ss:$8 sps:$4 sm:$0xff]  }
  0xa7   :  { %3367 = vmatprep.subr.bf16.mxu0 %v10154_v24  ;;  %v10245_v24 = vld [vmem:[%s14784_s26 + $0x454] ss:$8 sps:$4 sm:$0xff]  }
  0xaa   :  { %3368 = vmatpush1.bf16.msra.mxu0 %v10152_v25  ;;  %v10243_v25 = vld [vmem:[%s14784_s26 + $0x450] ss:$8 sps:$4 sm:$0xff]  }
  0xab   :  { %3369 = vmatprep.subr.bf16.mxu0 %v10157_v26  ;;  %v10248_v26 = vld [vmem:[%s14784_s26 + $0x464] ss:$8 sps:$4 sm:$0xff]  }
  0xae   :  { %3370 = vmatpush1.bf16.msra.mxu0 %v10155_v27  ;;  %v10246_v27 = vld [vmem:[%s14784_s26 + $0x460] ss:$8 sps:$4 sm:$0xff]  }
  0xaf   :  { %3371 = vmatprep.subr.bf16.mxu0 %v10160_v28  ;;  %v10251_v28 = vld [vmem:[%s14784_s26 + $0x474] ss:$8 sps:$4 sm:$0xff]  }
  0xb2   :  { %3372 = vmatpush1.bf16.msra.mxu0 %v10158_v29  ;;  %v10249_v29 = vld [vmem:[%s14784_s26 + $0x470] ss:$8 sps:$4 sm:$0xff]  }
  0xb3   :  { %3373 = vmatprep.subr.bf16.mxu0 %v10163_v30  ;;  %v10254_v30 = vld [vmem:[%s14784_s26 + $0x484] ss:$8 sps:$4 sm:$0xff]  }
  0xb6   :  { %3374 = vmatpush1.bf16.msra.mxu0 %v10161_v31  ;;  %v10252_v31 = vld [vmem:[%s14784_s26 + $0x480] ss:$8 sps:$4 sm:$0xff]  }
  0xb7   :  { %3375 = vmatprep.subr.bf16.mxu0 %v10166_v32  ;;  %v10257_v32 = vld [vmem:[%s14784_s26 + $0x494] ss:$8 sps:$4 sm:$0xff]  }
  0xba   :  { %3376 = vmatpush1.bf16.msra.mxu0 %v10164_v33  ;;  %v10255_v33 = vld [vmem:[%s14784_s26 + $0x490] ss:$8 sps:$4 sm:$0xff]  }
  0xbb   :  { %3377 = vmatprep.subr.bf16.mxu0 %v10169_v34  ;;  %v10260_v34 = vld [vmem:[%s14784_s26 + $0x4a4] ss:$8 sps:$4 sm:$0xff]  }
  0xbe   :  { %3378 = vmatpush1.bf16.msra.mxu0 %v10167_v35  ;;  %v10258_v35 = vld [vmem:[%s14784_s26 + $0x4a0] ss:$8 sps:$4 sm:$0xff]  }
  0xbf   :  { %3379 = vmatprep.subr.bf16.mxu0 %v10172_v36  ;;  %v10263_v36 = vld [vmem:[%s14784_s26 + $0x4b4] ss:$8 sps:$4 sm:$0xff]  }
  0xc2   :  { %3380 = vmatpush1.bf16.msra.mxu0 %v10170_v37  ;;  %v10261_v37 = vld [vmem:[%s14784_s26 + $0x4b0] ss:$8 sps:$4 sm:$0xff]  }
  0xc3   :  { %3381 = vmatprep.subr.bf16.mxu0 %v10175_v38  ;;  %v10266_v38 = vld [vmem:[%s14784_s26 + $0x4c4] ss:$8 sps:$4 sm:$0xff]  }
  0xc6   :  { %3382 = vmatpush1.bf16.msra.mxu0 %v10173_v39  ;;  %v10264_v39 = vld [vmem:[%s14784_s26 + $0x4c0] ss:$8 sps:$4 sm:$0xff]  }
  0xc7   :  { %3392 = vmatprep.subr.bf16.mxu0 %v10180_v40  ;;  %v10269_v40 = vld [vmem:[%s14784_s26 + $0x4d4] ss:$8 sps:$4 sm:$0xff]  }
  0xc9   :  { %3384 = vmatmul.mubr.bf16.vlgmr.msra.gmra.mrb[0].mxu0 %v8729_v42  ;;  %v10272_v42 = vld [vmem:[%s14784_s26 + $0x4e4] ss:$8 sps:$4 sm:$0xff]  }
  0xca   :  { %3393 = vmatpush1.bf16.msra.mxu0 %v10178_v43  ;;  %3424 = vmatprep.mubr.bf16.mxu0 %v8732_v45  ;;  %v10270_v43 = vld [vmem:[%s14784_s26 + $0x4e0] ss:$8 sps:$4 sm:$0xff]   ;;  %v10273_v45 = vld [vmem:[%s14784_s26 + $0x4f0] ss:$8 sps:$4 sm:$0xff]  }
  0xcb   :  { %3394 = vmatprep.subr.bf16.mxu0 %v10183_v44  ;;  %v10275_v44 = vld [vmem:[%s14784_s26 + $0x4f4] ss:$8 sps:$4 sm:$0xff]  }
  0xce   :  { %3395 = vmatpush1.bf16.msra.mxu0 %v10181_v46  ;;  %v10280_v46 = vld [vmem:[%s14784_s26 + $0x504] ss:$8 sps:$4 sm:$0xff]  }
  0xcf   :  { %3396 = vmatprep.subr.bf16.mxu0 %v10186_v47  ;;  %v11630_v47 = vld [vmem:[%s14785_s24 + $0x28] sm:$0xff] }
  0xd2   :  { %3397 = vmatpush1.bf16.msra.mxu0 %v10184_v48  ;;  %v8733_v48 = vcombine.low %v11525_v12, %v11525_v12  ;;  %v10317_v12 = vld [vmem:[%s14784_s26 + $0x5d0] ss:$8 sps:$4 sm:$0xff]  }
  0xd3   :  { %3398 = vmatprep.subr.bf16.mxu0 %v10189_v49  ;;  %v10278_v49 = vld [vmem:[%s14784_s26 + $0x500] ss:$8 sps:$4 sm:$0xff]  }
  0xd6   :  { %3399 = vmatpush1.bf16.msra.mxu0 %v10187_v50  ;;  %v8736_v50 = vcombine.high %v11630_v47, %v11630_v47 }
  0xd7   :  { %3400 = vmatprep.subr.bf16.mxu0 %v10192_v51  ;;  %v10283_v51 = vld [vmem:[%s14784_s26 + $0x514] ss:$8 sps:$4 sm:$0xff]  }
  0xda   :  { %3401 = vmatpush1.bf16.msra.mxu0 %v10190_v52  ;;  %v10281_v52 = vld [vmem:[%s14784_s26 + $0x510] ss:$8 sps:$4 sm:$0xff]  }
  0xdb   :  { %3402 = vmatprep.subr.bf16.mxu0 %v10195_v53  ;;  %v10286_v53 = vld [vmem:[%s14784_s26 + $0x524] ss:$8 sps:$4 sm:$0xff]  }
  0xde   :  { %3403 = vmatpush1.bf16.msra.mxu0 %v10193_v54  ;;  %v10284_v54 = vld [vmem:[%s14784_s26 + $0x520] ss:$8 sps:$4 sm:$0xff]  }
  0xdf   :  { %3404 = vmatprep.subr.bf16.mxu0 %v10198_v55  ;;  %v10289_v55 = vld [vmem:[%s14784_s26 + $0x534] ss:$8 sps:$4 sm:$0xff]  }
  0xe2   :  { %3405 = vmatpush1.bf16.msra.mxu0 %v10196_v56  ;;  %v10287_v56 = vld [vmem:[%s14784_s26 + $0x530] ss:$8 sps:$4 sm:$0xff]  }
  0xe3   :  { %3406 = vmatprep.subr.bf16.mxu0 %v10201_v57  ;;  %v10292_v57 = vld [vmem:[%s14784_s26 + $0x544] ss:$8 sps:$4 sm:$0xff]  }
  0xe6   :  { %3407 = vmatpush1.bf16.msra.mxu0 %v10199_v58  ;;  %v10290_v58 = vld [vmem:[%s14784_s26 + $0x540] ss:$8 sps:$4 sm:$0xff]  }
  0xe7   :  { %3408 = vmatprep.subr.bf16.mxu0 %v10204_v59  ;;  %v10295_v59 = vld [vmem:[%s14784_s26 + $0x554] ss:$8 sps:$4 sm:$0xff]  }
  0xea   :  { %3409 = vmatpush1.bf16.msra.mxu0 %v10202_v60  ;;  %v10293_v60 = vld [vmem:[%s14784_s26 + $0x550] ss:$8 sps:$4 sm:$0xff]  }
  0xeb   :  { %3410 = vmatprep.subr.bf16.mxu0 %v10207_v61  ;;  %v10298_v61 = vld [vmem:[%s14784_s26 + $0x564] ss:$8 sps:$4 sm:$0xff]  }
  0xee   :  { %3411 = vmatpush1.bf16.msra.mxu0 %v10205_v62  ;;  %v10296_v62 = vld [vmem:[%s14784_s26 + $0x560] ss:$8 sps:$4 sm:$0xff]  }
  0xef   :  { %3412 = vmatprep.subr.bf16.mxu0 %v10210_v63  ;;  %v10301_v63 = vld [vmem:[%s14784_s26 + $0x574] ss:$8 sps:$4 sm:$0xff]  }
  0xf2   :  { %3413 = vmatpush1.bf16.msra.mxu0 %v10208_v0  ;;  %v10299_v0 = vld [vmem:[%s14784_s26 + $0x570] ss:$8 sps:$4 sm:$0xff]  }
  0xf3   :  { %3414 = vmatprep.subr.bf16.mxu0 %v10213_v1  ;;  %v10304_v1 = vld [vmem:[%s14784_s26 + $0x584] ss:$8 sps:$4 sm:$0xff]  }
  0xf6   :  { %3415 = vmatpush1.bf16.msra.mxu0 %v10211_v2  ;;  %v10302_v2 = vld [vmem:[%s14784_s26 + $0x580] ss:$8 sps:$4 sm:$0xff]  }
  0xf7   :  { %3416 = vmatprep.subr.bf16.mxu0 %v10216_v3  ;;  %v10307_v3 = vld [vmem:[%s14784_s26 + $0x594] ss:$8 sps:$4 sm:$0xff]  }
  0xfa   :  { %3417 = vmatpush1.bf16.msra.mxu0 %v10214_v4  ;;  %v10305_v4 = vld [vmem:[%s14784_s26 + $0x590] ss:$8 sps:$4 sm:$0xff]  }
  0xfb   :  { %3418 = vmatprep.subr.bf16.mxu0 %v10219_v5  ;;  %v10310_v5 = vld [vmem:[%s14784_s26 + $0x5a4] ss:$8 sps:$4 sm:$0xff]  }
  0xfe   :  { %3419 = vmatpush1.bf16.msra.mxu0 %v10217_v6  ;;  %v10308_v6 = vld [vmem:[%s14784_s26 + $0x5a0] ss:$8 sps:$4 sm:$0xff]  }
  0xff   :  { %3420 = vmatprep.subr.bf16.mxu0 %v10222_v7  ;;  %v10313_v7 = vld [vmem:[%s14784_s26 + $0x5b4] ss:$8 sps:$4 sm:$0xff]  }
 0x102   :  { %3421 = vmatpush1.bf16.msra.mxu0 %v10220_v8  ;;  %v10311_v8 = vld [vmem:[%s14784_s26 + $0x5b0] ss:$8 sps:$4 sm:$0xff]  }
 0x103   :  { %3422 = vmatprep.subr.bf16.mxu0 %v10225_v9  ;;  %v10316_v9 = vld [vmem:[%s14784_s26 + $0x5c4] ss:$8 sps:$4 sm:$0xff]  }
 0x106   :  { %3423 = vmatpush1.bf16.msra.mxu0 %v10223_v10  ;;  %v10314_v10 = vld [vmem:[%s14784_s26 + $0x5c0] ss:$8 sps:$4 sm:$0xff]  }
 0x107   :  { %3433 = vmatprep.subr.bf16.mxu0 %v10230_v11  ;;  %v10319_v11 = vld [vmem:[%s14784_s26 + $0x5d4] ss:$8 sps:$4 sm:$0xff]  }
 0x109   :  { %3425 = vmatmul.mubr.bf16.vlgmr.msra.gmra.mrb[0].mxu0 %v8731_v13  ;;  %v10322_v13 = vld [vmem:[%s14784_s26 + $0x5e4] ss:$8 sps:$4 sm:$0xff]  }
 0x10a   :  { %3434 = vmatpush1.bf16.msra.mxu0 %v10228_v14  ;;  %3465 = vmatprep.mubr.bf16.mxu0 %v8734_v15  ;;  %v10320_v14 = vld [vmem:[%s14784_s26 + $0x5e0] ss:$8 sps:$4 sm:$0xff]   ;;  %v10325_v15 = vld [vmem:[%s14784_s26 + $0x5f4] ss:$8 sps:$4 sm:$0xff]  }
 0x10b   :  { %3435 = vmatprep.subr.bf16.mxu0 %v10233_v16  ;;  %v10323_v16 = vld [vmem:[%s14784_s26 + $0x5f0] ss:$8 sps:$4 sm:$0xff]  }
 0x10e   :  { %3436 = vmatpush1.bf16.msra.mxu0 %v10231_v17  ;;  %v10330_v17 = vld [vmem:[%s14784_s26 + $0x604] ss:$8 sps:$4 sm:$0xff]  }
 0x10f   :  { %3437 = vmatprep.subr.bf16.mxu0 %v10236_v18  ;;  %v11735_v18 = vld [vmem:[%s14785_s24 + $0x30] sm:$0xff] }
 0x112   :  { %3438 = vmatpush1.bf16.msra.mxu0 %v10234_v19  ;;  %v8735_v19 = vcombine.low %v11630_v47, %v11630_v47  ;;  %v10367_v47 = vld [vmem:[%s14784_s26 + $0x6d0] ss:$8 sps:$4 sm:$0xff]  }
 0x113   :  { %3439 = vmatprep.subr.bf16.mxu0 %v10239_v20  ;;  %v10328_v20 = vld [vmem:[%s14784_s26 + $0x600] ss:$8 sps:$4 sm:$0xff]  }
 0x116   :  { %3440 = vmatpush1.bf16.msra.mxu0 %v10237_v21  ;;  %v8738_v21 = vcombine.high %v11735_v18, %v11735_v18 }
 0x117   :  { %3441 = vmatprep.subr.bf16.mxu0 %v10242_v22  ;;  %v10333_v22 = vld [vmem:[%s14784_s26 + $0x614] ss:$8 sps:$4 sm:$0xff]  }
 0x11a   :  { %3442 = vmatpush1.bf16.msra.mxu0 %v10240_v23  ;;  %v10331_v23 = vld [vmem:[%s14784_s26 + $0x610] ss:$8 sps:$4 sm:$0xff]  }
 0x11b   :  { %3443 = vmatprep.subr.bf16.mxu0 %v10245_v24  ;;  %v10336_v24 = vld [vmem:[%s14784_s26 + $0x624] ss:$8 sps:$4 sm:$0xff]  }
 0x11e   :  { %3444 = vmatpush1.bf16.msra.mxu0 %v10243_v25  ;;  %v10334_v25 = vld [vmem:[%s14784_s26 + $0x620] ss:$8 sps:$4 sm:$0xff]  }
 0x11f   :  { %3445 = vmatprep.subr.bf16.mxu0 %v10248_v26  ;;  %v10339_v26 = vld [vmem:[%s14784_s26 + $0x634] ss:$8 sps:$4 sm:$0xff]  }
 0x122   :  { %3446 = vmatpush1.bf16.msra.mxu0 %v10246_v27  ;;  %v10337_v27 = vld [vmem:[%s14784_s26 + $0x630] ss:$8 sps:$4 sm:$0xff]  }
 0x123   :  { %3447 = vmatprep.subr.bf16.mxu0 %v10251_v28  ;;  %v10342_v28 = vld [vmem:[%s14784_s26 + $0x644] ss:$8 sps:$4 sm:$0xff]  }
 0x126   :  { %3448 = vmatpush1.bf16.msra.mxu0 %v10249_v29  ;;  %v10340_v29 = vld [vmem:[%s14784_s26 + $0x640] ss:$8 sps:$4 sm:$0xff]  }
 0x127   :  { %3449 = vmatprep.subr.bf16.mxu0 %v10254_v30  ;;  %v10345_v30 = vld [vmem:[%s14784_s26 + $0x654] ss:$8 sps:$4 sm:$0xff]  }
 0x12a   :  { %3450 = vmatpush1.bf16.msra.mxu0 %v10252_v31  ;;  %v10343_v31 = vld [vmem:[%s14784_s26 + $0x650] ss:$8 sps:$4 sm:$0xff]  }
 0x12b   :  { %3451 = vmatprep.subr.bf16.mxu0 %v10257_v32  ;;  %v10348_v32 = vld [vmem:[%s14784_s26 + $0x664] ss:$8 sps:$4 sm:$0xff]  }
 0x12e   :  { %3452 = vmatpush1.bf16.msra.mxu0 %v10255_v33  ;;  %v10346_v33 = vld [vmem:[%s14784_s26 + $0x660] ss:$8 sps:$4 sm:$0xff]  }
 0x12f   :  { %3453 = vmatprep.subr.bf16.mxu0 %v10260_v34  ;;  %v10351_v34 = vld [vmem:[%s14784_s26 + $0x674] ss:$8 sps:$4 sm:$0xff]  }
 0x132   :  { %3454 = vmatpush1.bf16.msra.mxu0 %v10258_v35  ;;  %v10349_v35 = vld [vmem:[%s14784_s26 + $0x670] ss:$8 sps:$4 sm:$0xff]  }
 0x133   :  { %3455 = vmatprep.subr.bf16.mxu0 %v10263_v36  ;;  %v10354_v36 = vld [vmem:[%s14784_s26 + $0x684] ss:$8 sps:$4 sm:$0xff]  }
 0x136   :  { %3456 = vmatpush1.bf16.msra.mxu0 %v10261_v37  ;;  %v10352_v37 = vld [vmem:[%s14784_s26 + $0x680] ss:$8 sps:$4 sm:$0xff]  }
 0x137   :  { %3457 = vmatprep.subr.bf16.mxu0 %v10266_v38  ;;  %v10357_v38 = vld [vmem:[%s14784_s26 + $0x694] ss:$8 sps:$4 sm:$0xff]  }
 0x13a   :  { %3458 = vmatpush1.bf16.msra.mxu0 %v10264_v39  ;;  %v10355_v39 = vld [vmem:[%s14784_s26 + $0x690] ss:$8 sps:$4 sm:$0xff]  }
 0x13b   :  { %3459 = vmatprep.subr.bf16.mxu0 %v10269_v40  ;;  %v10360_v40 = vld [vmem:[%s14784_s26 + $0x6a4] ss:$8 sps:$4 sm:$0xff]  }
 0x13e   :  { %3460 = vmatpush1.bf16.msra.mxu0 %v10267_v41  ;;  %v10358_v41 = vld [vmem:[%s14784_s26 + $0x6a0] ss:$8 sps:$4 sm:$0xff]  }
 0x13f   :  { %3461 = vmatprep.subr.bf16.mxu0 %v10272_v42  ;;  %v10363_v42 = vld [vmem:[%s14784_s26 + $0x6b4] ss:$8 sps:$4 sm:$0xff]  }
 0x142   :  { %3462 = vmatpush1.bf16.msra.mxu0 %v10270_v43  ;;  %v10361_v43 = vld [vmem:[%s14784_s26 + $0x6b0] ss:$8 sps:$4 sm:$0xff]  }
 0x143   :  { %3463 = vmatprep.subr.bf16.mxu0 %v10275_v44  ;;  %v10366_v44 = vld [vmem:[%s14784_s26 + $0x6c4] ss:$8 sps:$4 sm:$0xff]  }
 0x146   :  { %3464 = vmatpush1.bf16.msra.mxu0 %v10273_v45  ;;  %v10364_v45 = vld [vmem:[%s14784_s26 + $0x6c0] ss:$8 sps:$4 sm:$0xff]  }
 0x147   :  { %3474 = vmatprep.subr.bf16.mxu0 %v10280_v46  ;;  %v10369_v46 = vld [vmem:[%s14784_s26 + $0x6d4] ss:$8 sps:$4 sm:$0xff]  }
 0x149   :  { %3466 = vmatmul.mubr.bf16.vlgmr.msra.gmra.mrb[0].mxu0 %v8733_v48  ;;  %v10372_v48 = vld [vmem:[%s14784_s26 + $0x6e4] ss:$8 sps:$4 sm:$0xff]  }
 0x14a   :  { %3475 = vmatpush1.bf16.msra.mxu0 %v10278_v49  ;;  %3506 = vmatprep.mubr.bf16.mxu0 %v8736_v50  ;;  %v10370_v49 = vld [vmem:[%s14784_s26 + $0x6e0] ss:$8 sps:$4 sm:$0xff]   ;;  %v10375_v50 = vld [vmem:[%s14784_s26 + $0x6f4] ss:$8 sps:$4 sm:$0xff]  }
 0x14b   :  { %3476 = vmatprep.subr.bf16.mxu0 %v10283_v51  ;;  %v10373_v51 = vld [vmem:[%s14784_s26 + $0x6f0] ss:$8 sps:$4 sm:$0xff]  }
 0x14e   :  { %3477 = vmatpush1.bf16.msra.mxu0 %v10281_v52  ;;  %v10380_v52 = vld [vmem:[%s14784_s26 + $0x704] ss:$8 sps:$4 sm:$0xff]  }
 0x14f   :  { %3478 = vmatprep.subr.bf16.mxu0 %v10286_v53  ;;  %v11840_v53 = vld [vmem:[%s14785_s24 + $0x38] sm:$0xff] }
 0x152   :  { %3479 = vmatpush1.bf16.msra.mxu0 %v10284_v54  ;;  %v8737_v54 = vcombine.low %v11735_v18, %v11735_v18  ;;  %v10417_v18 = vld [vmem:[%s14784_s26 + $0x7d0] ss:$8 sps:$4 sm:$0xff]  }
 0x153   :  { %3480 = vmatprep.subr.bf16.mxu0 %v10289_v55  ;;  %v10378_v55 = vld [vmem:[%s14784_s26 + $0x700] ss:$8 sps:$4 sm:$0xff]  }
 0x156   :  { %3481 = vmatpush1.bf16.msra.mxu0 %v10287_v56  ;;  %v8740_v56 = vcombine.high %v11840_v53, %v11840_v53 }
 0x157   :  { %3482 = vmatprep.subr.bf16.mxu0 %v10292_v57  ;;  %v10383_v57 = vld [vmem:[%s14784_s26 + $0x714] ss:$8 sps:$4 sm:$0xff]  }
 0x15a   :  { %3483 = vmatpush1.bf16.msra.mxu0 %v10290_v58  ;;  %v10381_v58 = vld [vmem:[%s14784_s26 + $0x710] ss:$8 sps:$4 sm:$0xff]  }
 0x15b   :  { %3484 = vmatprep.subr.bf16.mxu0 %v10295_v59  ;;  %v10386_v59 = vld [vmem:[%s14784_s26 + $0x724] ss:$8 sps:$4 sm:$0xff]  }
 0x15e   :  { %3485 = vmatpush1.bf16.msra.mxu0 %v10293_v60  ;;  %v10384_v60 = vld [vmem:[%s14784_s26 + $0x720] ss:$8 sps:$4 sm:$0xff]  }
 0x15f   :  { %3486 = vmatprep.subr.bf16.mxu0 %v10298_v61  ;;  %v10389_v61 = vld [vmem:[%s14784_s26 + $0x734] ss:$8 sps:$4 sm:$0xff]  }
 0x162   :  { %3487 = vmatpush1.bf16.msra.mxu0 %v10296_v62  ;;  %v10387_v62 = vld [vmem:[%s14784_s26 + $0x730] ss:$8 sps:$4 sm:$0xff]  }
 0x163   :  { %3488 = vmatprep.subr.bf16.mxu0 %v10301_v63  ;;  %v10392_v63 = vld [vmem:[%s14784_s26 + $0x744] ss:$8 sps:$4 sm:$0xff]  }
 0x166   :  { %3489 = vmatpush1.bf16.msra.mxu0 %v10299_v0  ;;  %v10390_v0 = vld [vmem:[%s14784_s26 + $0x740] ss:$8 sps:$4 sm:$0xff]  }
 0x167   :  { %3490 = vmatprep.subr.bf16.mxu0 %v10304_v1  ;;  %v10395_v1 = vld [vmem:[%s14784_s26 + $0x754] ss:$8 sps:$4 sm:$0xff]  }
 0x16a   :  { %3491 = vmatpush1.bf16.msra.mxu0 %v10302_v2  ;;  %v10393_v2 = vld [vmem:[%s14784_s26 + $0x750] ss:$8 sps:$4 sm:$0xff]  }
 0x16b   :  { %3492 = vmatprep.subr.bf16.mxu0 %v10307_v3  ;;  %v10398_v3 = vld [vmem:[%s14784_s26 + $0x764] ss:$8 sps:$4 sm:$0xff]  }
 0x16e   :  { %3493 = vmatpush1.bf16.msra.mxu0 %v10305_v4  ;;  %v10396_v4 = vld [vmem:[%s14784_s26 + $0x760] ss:$8 sps:$4 sm:$0xff]  }
 0x16f   :  { %3494 = vmatprep.subr.bf16.mxu0 %v10310_v5  ;;  %v10401_v5 = vld [vmem:[%s14784_s26 + $0x774] ss:$8 sps:$4 sm:$0xff]  }
 0x172   :  { %3495 = vmatpush1.bf16.msra.mxu0 %v10308_v6  ;;  %v10399_v6 = vld [vmem:[%s14784_s26 + $0x770] ss:$8 sps:$4 sm:$0xff]  }
 0x173   :  { %3496 = vmatprep.subr.bf16.mxu0 %v10313_v7  ;;  %v10404_v7 = vld [vmem:[%s14784_s26 + $0x784] ss:$8 sps:$4 sm:$0xff]  }
 0x176   :  { %3497 = vmatpush1.bf16.msra.mxu0 %v10311_v8  ;;  %v10402_v8 = vld [vmem:[%s14784_s26 + $0x780] ss:$8 sps:$4 sm:$0xff]  }
 0x177   :  { %3498 = vmatprep.subr.bf16.mxu0 %v10316_v9  ;;  %v10407_v9 = vld [vmem:[%s14784_s26 + $0x794] ss:$8 sps:$4 sm:$0xff]  }
 0x17a   :  { %3499 = vmatpush1.bf16.msra.mxu0 %v10314_v10  ;;  %v10405_v10 = vld [vmem:[%s14784_s26 + $0x790] ss:$8 sps:$4 sm:$0xff]  }
 0x17b   :  { %3500 = vmatprep.subr.bf16.mxu0 %v10319_v11  ;;  %v10410_v11 = vld [vmem:[%s14784_s26 + $0x7a4] ss:$8 sps:$4 sm:$0xff]  }
 0x17e   :  { %3501 = vmatpush1.bf16.msra.mxu0 %v10317_v12  ;;  %v10408_v12 = vld [vmem:[%s14784_s26 + $0x7a0] ss:$8 sps:$4 sm:$0xff]  }
 0x17f   :  { %3502 = vmatprep.subr.bf16.mxu0 %v10322_v13  ;;  %v10413_v13 = vld [vmem:[%s14784_s26 + $0x7b4] ss:$8 sps:$4 sm:$0xff]  }
 0x182   :  { %3503 = vmatpush1.bf16.msra.mxu0 %v10320_v14  ;;  %v10411_v14 = vld [vmem:[%s14784_s26 + $0x7b0] ss:$8 sps:$4 sm:$0xff]  }
 0x183   :  { %3504 = vmatprep.subr.bf16.mxu0 %v10325_v15  ;;  %v10416_v15 = vld [vmem:[%s14784_s26 + $0x7c4] ss:$8 sps:$4 sm:$0xff]  }
 0x186   :  { %3505 = vmatpush1.bf16.msra.mxu0 %v10323_v16  ;;  %v10414_v16 = vld [vmem:[%s14784_s26 + $0x7c0] ss:$8 sps:$4 sm:$0xff]  }
 0x187   :  { %3515 = vmatprep.subr.bf16.mxu0 %v10330_v17  ;;  %v10419_v17 = vld [vmem:[%s14784_s26 + $0x7d4] ss:$8 sps:$4 sm:$0xff]  }
 0x189   :  { %3507 = vmatmul.mubr.bf16.vlgmr.msra.gmra.mrb[0].mxu0 %v8735_v19  ;;  %v10422_v19 = vld [vmem:[%s14784_s26 + $0x7e4] ss:$8 sps:$4 sm:$0xff]  }
 0x18a   :  { %3516 = vmatpush1.bf16.msra.mxu0 %v10328_v20  ;;  %3547 = vmatprep.mubr.bf16.mxu0 %v8738_v21  ;;  %v10420_v20 = vld [vmem:[%s14784_s26 + $0x7e0] ss:$8 sps:$4 sm:$0xff]   ;;  %v10425_v21 = vld [vmem:[%s14784_s26 + $0x7f4] ss:$8 sps:$4 sm:$0xff]  }
 0x18b   :  { %3517 = vmatprep.subr.bf16.mxu0 %v10333_v22  ;;  %v10423_v22 = vld [vmem:[%s14784_s26 + $0x7f0] ss:$8 sps:$4 sm:$0xff]  }
 0x18e   :  { %3518 = vmatpush1.bf16.msra.mxu0 %v10331_v23  ;;  %v10430_v23 = vld [vmem:[%s14784_s26 + $0x804] ss:$8 sps:$4 sm:$0xff]  }
 0x18f   :  { %3519 = vmatprep.subr.bf16.mxu0 %v10336_v24  ;;  %v11945_v24 = vld [vmem:[%s14785_s24 + $0x40] sm:$0xff] }
 0x192   :  { %3520 = vmatpush1.bf16.msra.mxu0 %v10334_v25  ;;  %v8739_v25 = vcombine.low %v11840_v53, %v11840_v53  ;;  %v10467_v53 = vld [vmem:[%s14784_s26 + $0x8d0] ss:$8 sps:$4 sm:$0xff]  }
 0x193   :  { %3521 = vmatprep.subr.bf16.mxu0 %v10339_v26  ;;  %v10428_v26 = vld [vmem:[%s14784_s26 + $0x800] ss:$8 sps:$4 sm:$0xff]  }
 0x196   :  { %3522 = vmatpush1.bf16.msra.mxu0 %v10337_v27  ;;  %v8742_v27 = vcombine.high %v11945_v24, %v11945_v24 }
 0x197   :  { %3523 = vmatprep.subr.bf16.mxu0 %v10342_v28  ;;  %v10433_v28 = vld [vmem:[%s14784_s26 + $0x814] ss:$8 sps:$4 sm:$0xff]  }
 0x19a   :  { %3524 = vmatpush1.bf16.msra.mxu0 %v10340_v29  ;;  %v10431_v29 = vld [vmem:[%s14784_s26 + $0x810] ss:$8 sps:$4 sm:$0xff]  }
 0x19b   :  { %3525 = vmatprep.subr.bf16.mxu0 %v10345_v30  ;;  %v10436_v30 = vld [vmem:[%s14784_s26 + $0x824] ss:$8 sps:$4 sm:$0xff]  }
 0x19e   :  { %3526 = vmatpush1.bf16.msra.mxu0 %v10343_v31  ;;  %v10434_v31 = vld [vmem:[%s14784_s26 + $0x820] ss:$8 sps:$4 sm:$0xff]  }
 0x19f   :  { %3527 = vmatprep.subr.bf16.mxu0 %v10348_v32  ;;  %v10439_v32 = vld [vmem:[%s14784_s26 + $0x834] ss:$8 sps:$4 sm:$0xff]  }
 0x1a2   :  { %3528 = vmatpush1.bf16.msra.mxu0 %v10346_v33  ;;  %v10437_v33 = vld [vmem:[%s14784_s26 + $0x830] ss:$8 sps:$4 sm:$0xff]  }
 0x1a3   :  { %3529 = vmatprep.subr.bf16.mxu0 %v10351_v34  ;;  %v10442_v34 = vld [vmem:[%s14784_s26 + $0x844] ss:$8 sps:$4 sm:$0xff]  }
 0x1a6   :  { %3530 = vmatpush1.bf16.msra.mxu0 %v10349_v35  ;;  %v10440_v35 = vld [vmem:[%s14784_s26 + $0x840] ss:$8 sps:$4 sm:$0xff]  }
 0x1a7   :  { %3531 = vmatprep.subr.bf16.mxu0 %v10354_v36  ;;  %v10445_v36 = vld [vmem:[%s14784_s26 + $0x854] ss:$8 sps:$4 sm:$0xff]  }
 0x1aa   :  { %3532 = vmatpush1.bf16.msra.mxu0 %v10352_v37  ;;  %v10443_v37 = vld [vmem:[%s14784_s26 + $0x850] ss:$8 sps:$4 sm:$0xff]  }
 0x1ab   :  { %3533 = vmatprep.subr.bf16.mxu0 %v10357_v38  ;;  %v10448_v38 = vld [vmem:[%s14784_s26 + $0x864] ss:$8 sps:$4 sm:$0xff]  }
 0x1ae   :  { %3534 = vmatpush1.bf16.msra.mxu0 %v10355_v39  ;;  %v10446_v39 = vld [vmem:[%s14784_s26 + $0x860] ss:$8 sps:$4 sm:$0xff]  }
 0x1af   :  { %3535 = vmatprep.subr.bf16.mxu0 %v10360_v40  ;;  %v10451_v40 = vld [vmem:[%s14784_s26 + $0x874] ss:$8 sps:$4 sm:$0xff]  }
 0x1b2   :  { %3536 = vmatpush1.bf16.msra.mxu0 %v10358_v41  ;;  %v10449_v41 = vld [vmem:[%s14784_s26 + $0x870] ss:$8 sps:$4 sm:$0xff]  }
 0x1b3   :  { %3537 = vmatprep.subr.bf16.mxu0 %v10363_v42  ;;  %v10454_v42 = vld [vmem:[%s14784_s26 + $0x884] ss:$8 sps:$4 sm:$0xff]  }
 0x1b6   :  { %3538 = vmatpush1.bf16.msra.mxu0 %v10361_v43  ;;  %v10452_v43 = vld [vmem:[%s14784_s26 + $0x880] ss:$8 sps:$4 sm:$0xff]  }
 0x1b7   :  { %3539 = vmatprep.subr.bf16.mxu0 %v10366_v44  ;;  %v10457_v44 = vld [vmem:[%s14784_s26 + $0x894] ss:$8 sps:$4 sm:$0xff]  }
 0x1ba   :  { %3540 = vmatpush1.bf16.msra.mxu0 %v10364_v45  ;;  %v10455_v45 = vld [vmem:[%s14784_s26 + $0x890] ss:$8 sps:$4 sm:$0xff]  }
 0x1bb   :  { %3541 = vmatprep.subr.bf16.mxu0 %v10369_v46  ;;  %v10460_v46 = vld [vmem:[%s14784_s26 + $0x8a4] ss:$8 sps:$4 sm:$0xff]  }
 0x1be   :  { %3542 = vmatpush1.bf16.msra.mxu0 %v10367_v47  ;;  %v10458_v47 = vld [vmem:[%s14784_s26 + $0x8a0] ss:$8 sps:$4 sm:$0xff]  }
 0x1bf   :  { %3543 = vmatprep.subr.bf16.mxu0 %v10372_v48  ;;  %v10463_v48 = vld [vmem:[%s14784_s26 + $0x8b4] ss:$8 sps:$4 sm:$0xff]  }
 0x1c2   :  { %3544 = vmatpush1.bf16.msra.mxu0 %v10370_v49  ;;  %v10461_v49 = vld [vmem:[%s14784_s26 + $0x8b0] ss:$8 sps:$4 sm:$0xff]  }
 0x1c3   :  { %3545 = vmatprep.subr.bf16.mxu0 %v10375_v50  ;;  %v10466_v50 = vld [vmem:[%s14784_s26 + $0x8c4] ss:$8 sps:$4 sm:$0xff]  }
 0x1c6   :  { %3546 = vmatpush1.bf16.msra.mxu0 %v10373_v51  ;;  %v10464_v51 = vld [vmem:[%s14784_s26 + $0x8c0] ss:$8 sps:$4 sm:$0xff]  }
 0x1c7   :  { %3556 = vmatprep.subr.bf16.mxu0 %v10380_v52  ;;  %v10469_v52 = vld [vmem:[%s14784_s26 + $0x8d4] ss:$8 sps:$4 sm:$0xff]  }
 0x1c9   :  { %3548 = vmatmul.mubr.bf16.vlgmr.msra.gmra.mrb[0].mxu0 %v8737_v54  ;;  %v10472_v54 = vld [vmem:[%s14784_s26 + $0x8e4] ss:$8 sps:$4 sm:$0xff]  }
 0x1ca   :  { %3557 = vmatpush1.bf16.msra.mxu0 %v10378_v55  ;;  %3588 = vmatprep.mubr.bf16.mxu0 %v8740_v56  ;;  %v10470_v55 = vld [vmem:[%s14784_s26 + $0x8e0] ss:$8 sps:$4 sm:$0xff]   ;;  %v10475_v56 = vld [vmem:[%s14784_s26 + $0x8f4] ss:$8 sps:$4 sm:$0xff]  }
 0x1cb   :  { %3558 = vmatprep.subr.bf16.mxu0 %v10383_v57  ;;  %v10473_v57 = vld [vmem:[%s14784_s26 + $0x8f0] ss:$8 sps:$4 sm:$0xff]  }
 0x1ce   :  { %3559 = vmatpush1.bf16.msra.mxu0 %v10381_v58  ;;  %v10480_v58 = vld [vmem:[%s14784_s26 + $0x904] ss:$8 sps:$4 sm:$0xff]  }
 0x1cf   :  { %3560 = vmatprep.subr.bf16.mxu0 %v10386_v59  ;;  %v12050_v59 = vld [vmem:[%s14785_s24 + $0x48] sm:$0xff] }
 0x1d2   :  { %3561 = vmatpush1.bf16.msra.mxu0 %v10384_v60  ;;  %v8741_v60 = vcombine.low %v11945_v24, %v11945_v24  ;;  %v10517_v24 = vld [vmem:[%s14784_s26 + $0x9d0] ss:$8 sps:$4 sm:$0xff]  }
 0x1d3   :  { %3562 = vmatprep.subr.bf16.mxu0 %v10389_v61  ;;  %v10478_v61 = vld [vmem:[%s14784_s26 + $0x900] ss:$8 sps:$4 sm:$0xff]  }
 0x1d6   :  { %3563 = vmatpush1.bf16.msra.mxu0 %v10387_v62  ;;  %v8744_v62 = vcombine.high %v12050_v59, %v12050_v59 }
 0x1d7   :  { %3564 = vmatprep.subr.bf16.mxu0 %v10392_v63  ;;  %v10483_v63 = vld [vmem:[%s14784_s26 + $0x914] ss:$8 sps:$4 sm:$0xff]  }
 0x1da   :  { %3565 = vmatpush1.bf16.msra.mxu0 %v10390_v0  ;;  %v10481_v0 = vld [vmem:[%s14784_s26 + $0x910] ss:$8 sps:$4 sm:$0xff]  }
 0x1db   :  { %3566 = vmatprep.subr.bf16.mxu0 %v10395_v1  ;;  %v10486_v1 = vld [vmem:[%s14784_s26 + $0x924] ss:$8 sps:$4 sm:$0xff]  }
 0x1de   :  { %3567 = vmatpush1.bf16.msra.mxu0 %v10393_v2  ;;  %v10484_v2 = vld [vmem:[%s14784_s26 + $0x920] ss:$8 sps:$4 sm:$0xff]  }
 0x1df   :  { %3568 = vmatprep.subr.bf16.mxu0 %v10398_v3  ;;  %v10489_v3 = vld [vmem:[%s14784_s26 + $0x934] ss:$8 sps:$4 sm:$0xff]  }
 0x1e2   :  { %3569 = vmatpush1.bf16.msra.mxu0 %v10396_v4  ;;  %v10487_v4 = vld [vmem:[%s14784_s26 + $0x930] ss:$8 sps:$4 sm:$0xff]  }
 0x1e3   :  { %3570 = vmatprep.subr.bf16.mxu0 %v10401_v5  ;;  %v10492_v5 = vld [vmem:[%s14784_s26 + $0x944] ss:$8 sps:$4 sm:$0xff]  }
 0x1e6   :  { %3571 = vmatpush1.bf16.msra.mxu0 %v10399_v6  ;;  %v10490_v6 = vld [vmem:[%s14784_s26 + $0x940] ss:$8 sps:$4 sm:$0xff]  }
 0x1e7   :  { %3572 = vmatprep.subr.bf16.mxu0 %v10404_v7  ;;  %v10495_v7 = vld [vmem:[%s14784_s26 + $0x954] ss:$8 sps:$4 sm:$0xff]  }
 0x1ea   :  { %3573 = vmatpush1.bf16.msra.mxu0 %v10402_v8  ;;  %v10493_v8 = vld [vmem:[%s14784_s26 + $0x950] ss:$8 sps:$4 sm:$0xff]  }
 0x1eb   :  { %3574 = vmatprep.subr.bf16.mxu0 %v10407_v9  ;;  %v10498_v9 = vld [vmem:[%s14784_s26 + $0x964] ss:$8 sps:$4 sm:$0xff]  }
 0x1ee   :  { %3575 = vmatpush1.bf16.msra.mxu0 %v10405_v10  ;;  %v10496_v10 = vld [vmem:[%s14784_s26 + $0x960] ss:$8 sps:$4 sm:$0xff]  }
 0x1ef   :  { %3576 = vmatprep.subr.bf16.mxu0 %v10410_v11  ;;  %v10501_v11 = vld [vmem:[%s14784_s26 + $0x974] ss:$8 sps:$4 sm:$0xff]  }
 0x1f2   :  { %3577 = vmatpush1.bf16.msra.mxu0 %v10408_v12  ;;  %v10499_v12 = vld [vmem:[%s14784_s26 + $0x970] ss:$8 sps:$4 sm:$0xff]  }
 0x1f3   :  { %3578 = vmatprep.subr.bf16.mxu0 %v10413_v13  ;;  %v10504_v13 = vld [vmem:[%s14784_s26 + $0x984] ss:$8 sps:$4 sm:$0xff]  }
 0x1f6   :  { %3579 = vmatpush1.bf16.msra.mxu0 %v10411_v14  ;;  %v10502_v14 = vld [vmem:[%s14784_s26 + $0x980] ss:$8 sps:$4 sm:$0xff]  }
 0x1f7   :  { %3580 = vmatprep.subr.bf16.mxu0 %v10416_v15  ;;  %v10507_v15 = vld [vmem:[%s14784_s26 + $0x994] ss:$8 sps:$4 sm:$0xff]  }
 0x1fa   :  { %3581 = vmatpush1.bf16.msra.mxu0 %v10414_v16  ;;  %v10505_v16 = vld [vmem:[%s14784_s26 + $0x990] ss:$8 sps:$4 sm:$0xff]  }
 0x1fb   :  { %3582 = vmatprep.subr.bf16.mxu0 %v10419_v17  ;;  %v10510_v17 = vld [vmem:[%s14784_s26 + $0x9a4] ss:$8 sps:$4 sm:$0xff]  }
 0x1fe   :  { %3583 = vmatpush1.bf16.msra.mxu0 %v10417_v18  ;;  %v10508_v18 = vld [vmem:[%s14784_s26 + $0x9a0] ss:$8 sps:$4 sm:$0xff]  }
 0x1ff   :  { %3584 = vmatprep.subr.bf16.mxu0 %v10422_v19  ;;  %v10513_v19 = vld [vmem:[%s14784_s26 + $0x9b4] ss:$8 sps:$4 sm:$0xff]  }
 0x202   :  { %3585 = vmatpush1.bf16.msra.mxu0 %v10420_v20  ;;  %v10511_v20 = vld [vmem:[%s14784_s26 + $0x9b0] ss:$8 sps:$4 sm:$0xff]  }
 0x203   :  { %3586 = vmatprep.subr.bf16.mxu0 %v10425_v21  ;;  %v10516_v21 = vld [vmem:[%s14784_s26 + $0x9c4] ss:$8 sps:$4 sm:$0xff]  }
 0x206   :  { %3587 = vmatpush1.bf16.msra.mxu0 %v10423_v22  ;;  %v10514_v22 = vld [vmem:[%s14784_s26 + $0x9c0] ss:$8 sps:$4 sm:$0xff]  }
 0x207   :  { %3597 = vmatprep.subr.bf16.mxu0 %v10430_v23  ;;  %v10519_v23 = vld [vmem:[%s14784_s26 + $0x9d4] ss:$8 sps:$4 sm:$0xff]  }
 0x209   :  { %3589 = vmatmul.mubr.bf16.vlgmr.msra.gmra.mrb[0].mxu0 %v8739_v25  ;;  %v10522_v25 = vld [vmem:[%s14784_s26 + $0x9e4] ss:$8 sps:$4 sm:$0xff]  }
 0x20a   :  { %3598 = vmatpush1.bf16.msra.mxu0 %v10428_v26  ;;  %3629 = vmatprep.mubr.bf16.mxu0 %v8742_v27  ;;  %v10520_v26 = vld [vmem:[%s14784_s26 + $0x9e0] ss:$8 sps:$4 sm:$0xff]   ;;  %v10525_v27 = vld [vmem:[%s14784_s26 + $0x9f4] ss:$8 sps:$4 sm:$0xff]  }
 0x20b   :  { %3599 = vmatprep.subr.bf16.mxu0 %v10433_v28  ;;  %v10523_v28 = vld [vmem:[%s14784_s26 + $0x9f0] ss:$8 sps:$4 sm:$0xff]  }
 0x20e   :  { %3600 = vmatpush1.bf16.msra.mxu0 %v10431_v29  ;;  %v10530_v29 = vld [vmem:[%s14784_s26 + $0xa04] ss:$8 sps:$4 sm:$0xff]  }
 0x20f   :  { %3601 = vmatprep.subr.bf16.mxu0 %v10436_v30  ;;  %v12155_v30 = vld [vmem:[%s14785_s24 + $0x50] sm:$0xff] }
 0x212   :  { %3602 = vmatpush1.bf16.msra.mxu0 %v10434_v31  ;;  %v8743_v31 = vcombine.low %v12050_v59, %v12050_v59  ;;  %v10567_v59 = vld [vmem:[%s14784_s26 + $0xad0] ss:$8 sps:$4 sm:$0xff]  }
 0x213   :  { %3603 = vmatprep.subr.bf16.mxu0 %v10439_v32  ;;  %v10528_v32 = vld [vmem:[%s14784_s26 + $0xa00] ss:$8 sps:$4 sm:$0xff]  }
 0x216   :  { %3604 = vmatpush1.bf16.msra.mxu0 %v10437_v33  ;;  %v8746_v33 = vcombine.high %v12155_v30, %v12155_v30 }
 0x217   :  { %3605 = vmatprep.subr.bf16.mxu0 %v10442_v34  ;;  %v10533_v34 = vld [vmem:[%s14784_s26 + $0xa14] ss:$8 sps:$4 sm:$0xff]  }
 0x21a   :  { %3606 = vmatpush1.bf16.msra.mxu0 %v10440_v35  ;;  %v10531_v35 = vld [vmem:[%s14784_s26 + $0xa10] ss:$8 sps:$4 sm:$0xff]  }
 0x21b   :  { %3607 = vmatprep.subr.bf16.mxu0 %v10445_v36  ;;  %v10536_v36 = vld [vmem:[%s14784_s26 + $0xa24] ss:$8 sps:$4 sm:$0xff]  }
 0x21e   :  { %3608 = vmatpush1.bf16.msra.mxu0 %v10443_v37  ;;  %v10534_v37 = vld [vmem:[%s14784_s26 + $0xa20] ss:$8 sps:$4 sm:$0xff]  }
 0x21f   :  { %3609 = vmatprep.subr.bf16.mxu0 %v10448_v38  ;;  %v10539_v38 = vld [vmem:[%s14784_s26 + $0xa34] ss:$8 sps:$4 sm:$0xff]  }
 0x222   :  { %3610 = vmatpush1.bf16.msra.mxu0 %v10446_v39  ;;  %v10537_v39 = vld [vmem:[%s14784_s26 + $0xa30] ss:$8 sps:$4 sm:$0xff]  }
 0x223   :  { %3611 = vmatprep.subr.bf16.mxu0 %v10451_v40  ;;  %v10542_v40 = vld [vmem:[%s14784_s26 + $0xa44] ss:$8 sps:$4 sm:$0xff]  }
 0x226   :  { %3612 = vmatpush1.bf16.msra.mxu0 %v10449_v41  ;;  %v10540_v41 = vld [vmem:[%s14784_s26 + $0xa40] ss:$8 sps:$4 sm:$0xff]  }
 0x227   :  { %3613 = vmatprep.subr.bf16.mxu0 %v10454_v42  ;;  %v10545_v42 = vld [vmem:[%s14784_s26 + $0xa54] ss:$8 sps:$4 sm:$0xff]  }
 0x22a   :  { %3614 = vmatpush1.bf16.msra.mxu0 %v10452_v43  ;;  %v10543_v43 = vld [vmem:[%s14784_s26 + $0xa50] ss:$8 sps:$4 sm:$0xff]  }
 0x22b   :  { %3615 = vmatprep.subr.bf16.mxu0 %v10457_v44  ;;  %v10548_v44 = vld [vmem:[%s14784_s26 + $0xa64] ss:$8 sps:$4 sm:$0xff]  }
 0x22e   :  { %3616 = vmatpush1.bf16.msra.mxu0 %v10455_v45  ;;  %v10546_v45 = vld [vmem:[%s14784_s26 + $0xa60] ss:$8 sps:$4 sm:$0xff]  }
 0x22f   :  { %3617 = vmatprep.subr.bf16.mxu0 %v10460_v46  ;;  %v10551_v46 = vld [vmem:[%s14784_s26 + $0xa74] ss:$8 sps:$4 sm:$0xff]  }
 0x232   :  { %3618 = vmatpush1.bf16.msra.mxu0 %v10458_v47  ;;  %v10549_v47 = vld [vmem:[%s14784_s26 + $0xa70] ss:$8 sps:$4 sm:$0xff]  }
 0x233   :  { %3619 = vmatprep.subr.bf16.mxu0 %v10463_v48  ;;  %v10554_v48 = vld [vmem:[%s14784_s26 + $0xa84] ss:$8 sps:$4 sm:$0xff]  }
 0x236   :  { %3620 = vmatpush1.bf16.msra.mxu0 %v10461_v49  ;;  %v10552_v49 = vld [vmem:[%s14784_s26 + $0xa80] ss:$8 sps:$4 sm:$0xff]  }
 0x237   :  { %3621 = vmatprep.subr.bf16.mxu0 %v10466_v50  ;;  %v10557_v50 = vld [vmem:[%s14784_s26 + $0xa94] ss:$8 sps:$4 sm:$0xff]  }
 0x23a   :  { %3622 = vmatpush1.bf16.msra.mxu0 %v10464_v51  ;;  %v10555_v51 = vld [vmem:[%s14784_s26 + $0xa90] ss:$8 sps:$4 sm:$0xff]  }
 0x23b   :  { %3623 = vmatprep.subr.bf16.mxu0 %v10469_v52  ;;  %v10560_v52 = vld [vmem:[%s14784_s26 + $0xaa4] ss:$8 sps:$4 sm:$0xff]  }
 0x23e   :  { %3624 = vmatpush1.bf16.msra.mxu0 %v10467_v53  ;;  %v10558_v53 = vld [vmem:[%s14784_s26 + $0xaa0] ss:$8 sps:$4 sm:$0xff]  }
 0x23f   :  { %3625 = vmatprep.subr.bf16.mxu0 %v10472_v54  ;;  %v10563_v54 = vld [vmem:[%s14784_s26 + $0xab4] ss:$8 sps:$4 sm:$0xff]  }
 0x242   :  { %3626 = vmatpush1.bf16.msra.mxu0 %v10470_v55  ;;  %v10561_v55 = vld [vmem:[%s14784_s26 + $0xab0] ss:$8 sps:$4 sm:$0xff]  }
 0x243   :  { %3627 = vmatprep.subr.bf16.mxu0 %v10475_v56  ;;  %v10566_v56 = vld [vmem:[%s14784_s26 + $0xac4] ss:$8 sps:$4 sm:$0xff]  }
 0x246   :  { %3628 = vmatpush1.bf16.msra.mxu0 %v10473_v57  ;;  %v10564_v57 = vld [vmem:[%s14784_s26 + $0xac0] ss:$8 sps:$4 sm:$0xff]  }
 0x247   :  { %3638 = vmatprep.subr.bf16.mxu0 %v10480_v58  ;;  %v10569_v58 = vld [vmem:[%s14784_s26 + $0xad4] ss:$8 sps:$4 sm:$0xff]  }
 0x249   :  { %3630 = vmatmul.mubr.bf16.vlgmr.msra.gmra.mrb[0].mxu0 %v8741_v60  ;;  %v10572_v60 = vld [vmem:[%s14784_s26 + $0xae4] ss:$8 sps:$4 sm:$0xff]  }
 0x24a   :  { %3639 = vmatpush1.bf16.msra.mxu0 %v10478_v61  ;;  %3670 = vmatprep.mubr.bf16.mxu0 %v8744_v62  ;;  %v10570_v61 = vld [vmem:[%s14784_s26 + $0xae0] ss:$8 sps:$4 sm:$0xff]   ;;  %v10575_v62 = vld [vmem:[%s14784_s26 + $0xaf4] ss:$8 sps:$4 sm:$0xff]  }
 0x24b   :  { %3640 = vmatprep.subr.bf16.mxu0 %v10483_v63  ;;  %v10573_v63 = vld [vmem:[%s14784_s26 + $0xaf0] ss:$8 sps:$4 sm:$0xff]  }
 0x24e   :  { %3641 = vmatpush1.bf16.msra.mxu0 %v10481_v0  ;;  %v10580_v0 = vld [vmem:[%s14784_s26 + $0xb04] ss:$8 sps:$4 sm:$0xff]  }
 0x24f   :  { %3642 = vmatprep.subr.bf16.mxu0 %v10486_v1  ;;  %v12260_v1 = vld [vmem:[%s14785_s24 + $0x58] sm:$0xff] }
 0x252   :  { %3643 = vmatpush1.bf16.msra.mxu0 %v10484_v2  ;;  %v8745_v2 = vcombine.low %v12155_v30, %v12155_v30  ;;  %v10617_v30 = vld [vmem:[%s14784_s26 + $0xbd0] ss:$8 sps:$4 sm:$0xff]  }
 0x253   :  { %3644 = vmatprep.subr.bf16.mxu0 %v10489_v3  ;;  %v10578_v3 = vld [vmem:[%s14784_s26 + $0xb00] ss:$8 sps:$4 sm:$0xff]  }
 0x256   :  { %3645 = vmatpush1.bf16.msra.mxu0 %v10487_v4  ;;  %v8748_v4 = vcombine.high %v12260_v1, %v12260_v1 }
 0x257   :  { %3646 = vmatprep.subr.bf16.mxu0 %v10492_v5  ;;  %v10583_v5 = vld [vmem:[%s14784_s26 + $0xb14] ss:$8 sps:$4 sm:$0xff]  }
 0x25a   :  { %3647 = vmatpush1.bf16.msra.mxu0 %v10490_v6  ;;  %v10581_v6 = vld [vmem:[%s14784_s26 + $0xb10] ss:$8 sps:$4 sm:$0xff]  }
 0x25b   :  { %3648 = vmatprep.subr.bf16.mxu0 %v10495_v7  ;;  %v10586_v7 = vld [vmem:[%s14784_s26 + $0xb24] ss:$8 sps:$4 sm:$0xff]  }
 0x25e   :  { %3649 = vmatpush1.bf16.msra.mxu0 %v10493_v8  ;;  %v10584_v8 = vld [vmem:[%s14784_s26 + $0xb20] ss:$8 sps:$4 sm:$0xff]  }
 0x25f   :  { %3650 = vmatprep.subr.bf16.mxu0 %v10498_v9  ;;  %v10589_v9 = vld [vmem:[%s14784_s26 + $0xb34] ss:$8 sps:$4 sm:$0xff]  }
 0x262   :  { %3651 = vmatpush1.bf16.msra.mxu0 %v10496_v10  ;;  %v10587_v10 = vld [vmem:[%s14784_s26 + $0xb30] ss:$8 sps:$4 sm:$0xff]  }
 0x263   :  { %3652 = vmatprep.subr.bf16.mxu0 %v10501_v11  ;;  %v10592_v11 = vld [vmem:[%s14784_s26 + $0xb44] ss:$8 sps:$4 sm:$0xff]  }
 0x266   :  { %3653 = vmatpush1.bf16.msra.mxu0 %v10499_v12  ;;  %v10590_v12 = vld [vmem:[%s14784_s26 + $0xb40] ss:$8 sps:$4 sm:$0xff]  }
 0x267   :  { %3654 = vmatprep.subr.bf16.mxu0 %v10504_v13  ;;  %v10595_v13 = vld [vmem:[%s14784_s26 + $0xb54] ss:$8 sps:$4 sm:$0xff]  }
 0x26a   :  { %3655 = vmatpush1.bf16.msra.mxu0 %v10502_v14  ;;  %v10593_v14 = vld [vmem:[%s14784_s26 + $0xb50] ss:$8 sps:$4 sm:$0xff]  }
 0x26b   :  { %3656 = vmatprep.subr.bf16.mxu0 %v10507_v15  ;;  %v10598_v15 = vld [vmem:[%s14784_s26 + $0xb64] ss:$8 sps:$4 sm:$0xff]  }
 0x26e   :  { %3657 = vmatpush1.bf16.msra.mxu0 %v10505_v16  ;;  %v10596_v16 = vld [vmem:[%s14784_s26 + $0xb60] ss:$8 sps:$4 sm:$0xff]  }
 0x26f   :  { %3658 = vmatprep.subr.bf16.mxu0 %v10510_v17  ;;  %v10601_v17 = vld [vmem:[%s14784_s26 + $0xb74] ss:$8 sps:$4 sm:$0xff]  }
 0x272   :  { %3659 = vmatpush1.bf16.msra.mxu0 %v10508_v18  ;;  %v10599_v18 = vld [vmem:[%s14784_s26 + $0xb70] ss:$8 sps:$4 sm:$0xff]  }
 0x273   :  { %3660 = vmatprep.subr.bf16.mxu0 %v10513_v19  ;;  %v10604_v19 = vld [vmem:[%s14784_s26 + $0xb84] ss:$8 sps:$4 sm:$0xff]  }
 0x276   :  { %3661 = vmatpush1.bf16.msra.mxu0 %v10511_v20  ;;  %v10602_v20 = vld [vmem:[%s14784_s26 + $0xb80] ss:$8 sps:$4 sm:$0xff]  }
 0x277   :  { %3662 = vmatprep.subr.bf16.mxu0 %v10516_v21  ;;  %v10607_v21 = vld [vmem:[%s14784_s26 + $0xb94] ss:$8 sps:$4 sm:$0xff]  }
 0x27a   :  { %3663 = vmatpush1.bf16.msra.mxu0 %v10514_v22  ;;  %v10605_v22 = vld [vmem:[%s14784_s26 + $0xb90] ss:$8 sps:$4 sm:$0xff]  }
 0x27b   :  { %3664 = vmatprep.subr.bf16.mxu0 %v10519_v23  ;;  %v10610_v23 = vld [vmem:[%s14784_s26 + $0xba4] ss:$8 sps:$4 sm:$0xff]  }
 0x27e   :  { %3665 = vmatpush1.bf16.msra.mxu0 %v10517_v24  ;;  %v10608_v24 = vld [vmem:[%s14784_s26 + $0xba0] ss:$8 sps:$4 sm:$0xff]  }
 0x27f   :  { %3666 = vmatprep.subr.bf16.mxu0 %v10522_v25  ;;  %v10613_v25 = vld [vmem:[%s14784_s26 + $0xbb4] ss:$8 sps:$4 sm:$0xff]  }
 0x282   :  { %3667 = vmatpush1.bf16.msra.mxu0 %v10520_v26  ;;  %v10611_v26 = vld [vmem:[%s14784_s26 + $0xbb0] ss:$8 sps:$4 sm:$0xff]  }
 0x283   :  { %3668 = vmatprep.subr.bf16.mxu0 %v10525_v27  ;;  %v10616_v27 = vld [vmem:[%s14784_s26 + $0xbc4] ss:$8 sps:$4 sm:$0xff]  }
 0x286   :  { %3669 = vmatpush1.bf16.msra.mxu0 %v10523_v28  ;;  %v10614_v28 = vld [vmem:[%s14784_s26 + $0xbc0] ss:$8 sps:$4 sm:$0xff]  }
 0x287   :  { %3679 = vmatprep.subr.bf16.mxu0 %v10530_v29  ;;  %v10619_v29 = vld [vmem:[%s14784_s26 + $0xbd4] ss:$8 sps:$4 sm:$0xff]  }
 0x289   :  { %3671 = vmatmul.mubr.bf16.vlgmr.msra.gmra.mrb[0].mxu0 %v8743_v31  ;;  %v10622_v31 = vld [vmem:[%s14784_s26 + $0xbe4] ss:$8 sps:$4 sm:$0xff]  }
 0x28a   :  { %3680 = vmatpush1.bf16.msra.mxu0 %v10528_v32  ;;  %3711 = vmatprep.mubr.bf16.mxu0 %v8746_v33  ;;  %v10620_v32 = vld [vmem:[%s14784_s26 + $0xbe0] ss:$8 sps:$4 sm:$0xff]   ;;  %v10625_v33 = vld [vmem:[%s14784_s26 + $0xbf4] ss:$8 sps:$4 sm:$0xff]  }
 0x28b   :  { %3681 = vmatprep.subr.bf16.mxu0 %v10533_v34  ;;  %v10623_v34 = vld [vmem:[%s14784_s26 + $0xbf0] ss:$8 sps:$4 sm:$0xff]  }
 0x28e   :  { %3682 = vmatpush1.bf16.msra.mxu0 %v10531_v35  ;;  %v10630_v35 = vld [vmem:[%s14784_s26 + $0xc04] ss:$8 sps:$4 sm:$0xff]  }
 0x28f   :  { %3683 = vmatprep.subr.bf16.mxu0 %v10536_v36  ;;  %v12365_v36 = vld [vmem:[%s14785_s24 + $0x60] sm:$0xff] }
 0x292   :  { %3684 = vmatpush1.bf16.msra.mxu0 %v10534_v37  ;;  %v8747_v37 = vcombine.low %v12260_v1, %v12260_v1  ;;  %v10667_v1 = vld [vmem:[%s14784_s26 + $0xcd0] ss:$8 sps:$4 sm:$0xff]  }
 0x293   :  { %3685 = vmatprep.subr.bf16.mxu0 %v10539_v38  ;;  %v10628_v38 = vld [vmem:[%s14784_s26 + $0xc00] ss:$8 sps:$4 sm:$0xff]  }
 0x296   :  { %3686 = vmatpush1.bf16.msra.mxu0 %v10537_v39  ;;  %v8750_v39 = vcombine.high %v12365_v36, %v12365_v36 }
 0x297   :  { %3687 = vmatprep.subr.bf16.mxu0 %v10542_v40  ;;  %v10633_v40 = vld [vmem:[%s14784_s26 + $0xc14] ss:$8 sps:$4 sm:$0xff]  }
 0x29a   :  { %3688 = vmatpush1.bf16.msra.mxu0 %v10540_v41  ;;  %v10631_v41 = vld [vmem:[%s14784_s26 + $0xc10] ss:$8 sps:$4 sm:$0xff]  }
 0x29b   :  { %3689 = vmatprep.subr.bf16.mxu0 %v10545_v42  ;;  %v10636_v42 = vld [vmem:[%s14784_s26 + $0xc24] ss:$8 sps:$4 sm:$0xff]  }
 0x29e   :  { %3690 = vmatpush1.bf16.msra.mxu0 %v10543_v43  ;;  %v10634_v43 = vld [vmem:[%s14784_s26 + $0xc20] ss:$8 sps:$4 sm:$0xff]  }
 0x29f   :  { %3691 = vmatprep.subr.bf16.mxu0 %v10548_v44  ;;  %v10639_v44 = vld [vmem:[%s14784_s26 + $0xc34] ss:$8 sps:$4 sm:$0xff]  }
 0x2a2   :  { %3692 = vmatpush1.bf16.msra.mxu0 %v10546_v45  ;;  %v10637_v45 = vld [vmem:[%s14784_s26 + $0xc30] ss:$8 sps:$4 sm:$0xff]  }
 0x2a3   :  { %3693 = vmatprep.subr.bf16.mxu0 %v10551_v46  ;;  %v10642_v46 = vld [vmem:[%s14784_s26 + $0xc44] ss:$8 sps:$4 sm:$0xff]  }
 0x2a6   :  { %3694 = vmatpush1.bf16.msra.mxu0 %v10549_v47  ;;  %v10640_v47 = vld [vmem:[%s14784_s26 + $0xc40] ss:$8 sps:$4 sm:$0xff]  }
 0x2a7   :  { %3695 = vmatprep.subr.bf16.mxu0 %v10554_v48  ;;  %v10645_v48 = vld [vmem:[%s14784_s26 + $0xc54] ss:$8 sps:$4 sm:$0xff]  }
 0x2aa   :  { %3696 = vmatpush1.bf16.msra.mxu0 %v10552_v49  ;;  %v10643_v49 = vld [vmem:[%s14784_s26 + $0xc50] ss:$8 sps:$4 sm:$0xff]  }
 0x2ab   :  { %3697 = vmatprep.subr.bf16.mxu0 %v10557_v50  ;;  %v10648_v50 = vld [vmem:[%s14784_s26 + $0xc64] ss:$8 sps:$4 sm:$0xff]  }
 0x2ae   :  { %3698 = vmatpush1.bf16.msra.mxu0 %v10555_v51  ;;  %v10646_v51 = vld [vmem:[%s14784_s26 + $0xc60] ss:$8 sps:$4 sm:$0xff]  }
 0x2af   :  { %3699 = vmatprep.subr.bf16.mxu0 %v10560_v52  ;;  %v10651_v52 = vld [vmem:[%s14784_s26 + $0xc74] ss:$8 sps:$4 sm:$0xff]  }
 0x2b2   :  { %3700 = vmatpush1.bf16.msra.mxu0 %v10558_v53  ;;  %v10649_v53 = vld [vmem:[%s14784_s26 + $0xc70] ss:$8 sps:$4 sm:$0xff]  }
 0x2b3   :  { %3701 = vmatprep.subr.bf16.mxu0 %v10563_v54  ;;  %v10654_v54 = vld [vmem:[%s14784_s26 + $0xc84] ss:$8 sps:$4 sm:$0xff]  }
 0x2b6   :  { %3702 = vmatpush1.bf16.msra.mxu0 %v10561_v55  ;;  %v10652_v55 = vld [vmem:[%s14784_s26 + $0xc80] ss:$8 sps:$4 sm:$0xff]  }
 0x2b7   :  { %3703 = vmatprep.subr.bf16.mxu0 %v10566_v56  ;;  %v10657_v56 = vld [vmem:[%s14784_s26 + $0xc94] ss:$8 sps:$4 sm:$0xff]  }
 0x2ba   :  { %3704 = vmatpush1.bf16.msra.mxu0 %v10564_v57  ;;  %v10655_v57 = vld [vmem:[%s14784_s26 + $0xc90] ss:$8 sps:$4 sm:$0xff]  }
 0x2bb   :  { %3705 = vmatprep.subr.bf16.mxu0 %v10569_v58  ;;  %v10660_v58 = vld [vmem:[%s14784_s26 + $0xca4] ss:$8 sps:$4 sm:$0xff]  }
 0x2be   :  { %3706 = vmatpush1.bf16.msra.mxu0 %v10567_v59  ;;  %v10658_v59 = vld [vmem:[%s14784_s26 + $0xca0] ss:$8 sps:$4 sm:$0xff]  }
 0x2bf   :  { %3707 = vmatprep.subr.bf16.mxu0 %v10572_v60  ;;  %v10663_v60 = vld [vmem:[%s14784_s26 + $0xcb4] ss:$8 sps:$4 sm:$0xff]  }
 0x2c2   :  { %3708 = vmatpush1.bf16.msra.mxu0 %v10570_v61  ;;  %v10661_v61 = vld [vmem:[%s14784_s26 + $0xcb0] ss:$8 sps:$4 sm:$0xff]  }
 0x2c3   :  { %3709 = vmatprep.subr.bf16.mxu0 %v10575_v62  ;;  %v10666_v62 = vld [vmem:[%s14784_s26 + $0xcc4] ss:$8 sps:$4 sm:$0xff]  }
 0x2c6   :  { %3710 = vmatpush1.bf16.msra.mxu0 %v10573_v63  ;;  %v10664_v63 = vld [vmem:[%s14784_s26 + $0xcc0] ss:$8 sps:$4 sm:$0xff]  }
 0x2c7   :  { %3720 = vmatprep.subr.bf16.mxu0 %v10580_v0  ;;  %v10669_v0 = vld [vmem:[%s14784_s26 + $0xcd4] ss:$8 sps:$4 sm:$0xff]  }
 0x2c9   :  { %3712 = vmatmul.mubr.bf16.vlgmr.msra.gmra.mrb[0].mxu0 %v8745_v2  ;;  %v10672_v2 = vld [vmem:[%s14784_s26 + $0xce4] ss:$8 sps:$4 sm:$0xff]  }
 0x2ca   :  { %3721 = vmatpush1.bf16.msra.mxu0 %v10578_v3  ;;  %3752 = vmatprep.mubr.bf16.mxu0 %v8748_v4  ;;  %v10670_v3 = vld [vmem:[%s14784_s26 + $0xce0] ss:$8 sps:$4 sm:$0xff]   ;;  %v10675_v4 = vld [vmem:[%s14784_s26 + $0xcf4] ss:$8 sps:$4 sm:$0xff]  }
 0x2cb   :  { %3722 = vmatprep.subr.bf16.mxu0 %v10583_v5  ;;  %v10673_v5 = vld [vmem:[%s14784_s26 + $0xcf0] ss:$8 sps:$4 sm:$0xff]  }
 0x2ce   :  { %3723 = vmatpush1.bf16.msra.mxu0 %v10581_v6  ;;  %v10680_v6 = vld [vmem:[%s14784_s26 + $0xd04] ss:$8 sps:$4 sm:$0xff]  }
 0x2cf   :  { %3724 = vmatprep.subr.bf16.mxu0 %v10586_v7  ;;  %v12470_v7 = vld [vmem:[%s14785_s24 + $0x68] sm:$0xff] }
 0x2d2   :  { %3725 = vmatpush1.bf16.msra.mxu0 %v10584_v8  ;;  %v8749_v8 = vcombine.low %v12365_v36, %v12365_v36  ;;  %v10717_v36 = vld [vmem:[%s14784_s26 + $0xdd0] ss:$8 sps:$4 sm:$0xff]  }
 0x2d3   :  { %3726 = vmatprep.subr.bf16.mxu0 %v10589_v9  ;;  %v10678_v9 = vld [vmem:[%s14784_s26 + $0xd00] ss:$8 sps:$4 sm:$0xff]  }
 0x2d6   :  { %3727 = vmatpush1.bf16.msra.mxu0 %v10587_v10  ;;  %v8752_v10 = vcombine.high %v12470_v7, %v12470_v7 }
 0x2d7   :  { %3728 = vmatprep.subr.bf16.mxu0 %v10592_v11  ;;  %v10683_v11 = vld [vmem:[%s14784_s26 + $0xd14] ss:$8 sps:$4 sm:$0xff]  }
 0x2da   :  { %3729 = vmatpush1.bf16.msra.mxu0 %v10590_v12  ;;  %v10681_v12 = vld [vmem:[%s14784_s26 + $0xd10] ss:$8 sps:$4 sm:$0xff]  }
 0x2db   :  { %3730 = vmatprep.subr.bf16.mxu0 %v10595_v13  ;;  %v10686_v13 = vld [vmem:[%s14784_s26 + $0xd24] ss:$8 sps:$4 sm:$0xff]  }
 0x2de   :  { %3731 = vmatpush1.bf16.msra.mxu0 %v10593_v14  ;;  %v10684_v14 = vld [vmem:[%s14784_s26 + $0xd20] ss:$8 sps:$4 sm:$0xff]  }
 0x2df   :  { %3732 = vmatprep.subr.bf16.mxu0 %v10598_v15  ;;  %v10689_v15 = vld [vmem:[%s14784_s26 + $0xd34] ss:$8 sps:$4 sm:$0xff]  }
 0x2e2   :  { %3733 = vmatpush1.bf16.msra.mxu0 %v10596_v16  ;;  %v10687_v16 = vld [vmem:[%s14784_s26 + $0xd30] ss:$8 sps:$4 sm:$0xff]  }
 0x2e3   :  { %3734 = vmatprep.subr.bf16.mxu0 %v10601_v17  ;;  %v10692_v17 = vld [vmem:[%s14784_s26 + $0xd44] ss:$8 sps:$4 sm:$0xff]  }
 0x2e6   :  { %3735 = vmatpush1.bf16.msra.mxu0 %v10599_v18  ;;  %v10690_v18 = vld [vmem:[%s14784_s26 + $0xd40] ss:$8 sps:$4 sm:$0xff]  }
 0x2e7   :  { %3736 = vmatprep.subr.bf16.mxu0 %v10604_v19  ;;  %v10695_v19 = vld [vmem:[%s14784_s26 + $0xd54] ss:$8 sps:$4 sm:$0xff]  }
 0x2ea   :  { %3737 = vmatpush1.bf16.msra.mxu0 %v10602_v20  ;;  %v10693_v20 = vld [vmem:[%s14784_s26 + $0xd50] ss:$8 sps:$4 sm:$0xff]  }
 0x2eb   :  { %3738 = vmatprep.subr.bf16.mxu0 %v10607_v21  ;;  %v10698_v21 = vld [vmem:[%s14784_s26 + $0xd64] ss:$8 sps:$4 sm:$0xff]  }
 0x2ee   :  { %3739 = vmatpush1.bf16.msra.mxu0 %v10605_v22  ;;  %v10696_v22 = vld [vmem:[%s14784_s26 + $0xd60] ss:$8 sps:$4 sm:$0xff]  }
 0x2ef   :  { %3740 = vmatprep.subr.bf16.mxu0 %v10610_v23  ;;  %v10701_v23 = vld [vmem:[%s14784_s26 + $0xd74] ss:$8 sps:$4 sm:$0xff]  }
 0x2f2   :  { %3741 = vmatpush1.bf16.msra.mxu0 %v10608_v24  ;;  %v10699_v24 = vld [vmem:[%s14784_s26 + $0xd70] ss:$8 sps:$4 sm:$0xff]  }
 0x2f3   :  { %3742 = vmatprep.subr.bf16.mxu0 %v10613_v25  ;;  %v10704_v25 = vld [vmem:[%s14784_s26 + $0xd84] ss:$8 sps:$4 sm:$0xff]  }
 0x2f6   :  { %3743 = vmatpush1.bf16.msra.mxu0 %v10611_v26  ;;  %v10702_v26 = vld [vmem:[%s14784_s26 + $0xd80] ss:$8 sps:$4 sm:$0xff]  }
 0x2f7   :  { %3744 = vmatprep.subr.bf16.mxu0 %v10616_v27  ;;  %v10707_v27 = vld [vmem:[%s14784_s26 + $0xd94] ss:$8 sps:$4 sm:$0xff]  }
 0x2fa   :  { %3745 = vmatpush1.bf16.msra.mxu0 %v10614_v28  ;;  %v10705_v28 = vld [vmem:[%s14784_s26 + $0xd90] ss:$8 sps:$4 sm:$0xff]  }
 0x2fb   :  { %3746 = vmatprep.subr.bf16.mxu0 %v10619_v29  ;;  %v10710_v29 = vld [vmem:[%s14784_s26 + $0xda4] ss:$8 sps:$4 sm:$0xff]  }
 0x2fe   :  { %3747 = vmatpush1.bf16.msra.mxu0 %v10617_v30  ;;  %v10708_v30 = vld [vmem:[%s14784_s26 + $0xda0] ss:$8 sps:$4 sm:$0xff]  }
 0x2ff   :  { %3748 = vmatprep.subr.bf16.mxu0 %v10622_v31  ;;  %v10713_v31 = vld [vmem:[%s14784_s26 + $0xdb4] ss:$8 sps:$4 sm:$0xff]  }
 0x302   :  { %3749 = vmatpush1.bf16.msra.mxu0 %v10620_v32  ;;  %v10711_v32 = vld [vmem:[%s14784_s26 + $0xdb0] ss:$8 sps:$4 sm:$0xff]  }
 0x303   :  { %3750 = vmatprep.subr.bf16.mxu0 %v10625_v33  ;;  %v10716_v33 = vld [vmem:[%s14784_s26 + $0xdc4] ss:$8 sps:$4 sm:$0xff]  }
 0x306   :  { %3751 = vmatpush1.bf16.msra.mxu0 %v10623_v34  ;;  %v10714_v34 = vld [vmem:[%s14784_s26 + $0xdc0] ss:$8 sps:$4 sm:$0xff]  }
 0x307   :  { %3761 = vmatprep.subr.bf16.mxu0 %v10630_v35  ;;  %v10719_v35 = vld [vmem:[%s14784_s26 + $0xdd4] ss:$8 sps:$4 sm:$0xff]  }
 0x309   :  { %3753 = vmatmul.mubr.bf16.vlgmr.msra.gmra.mrb[0].mxu0 %v8747_v37  ;;  %v10722_v37 = vld [vmem:[%s14784_s26 + $0xde4] ss:$8 sps:$4 sm:$0xff]  }
 0x30a   :  { %3762 = vmatpush1.bf16.msra.mxu0 %v10628_v38  ;;  %3793 = vmatprep.mubr.bf16.mxu0 %v8750_v39  ;;  %v10720_v38 = vld [vmem:[%s14784_s26 + $0xde0] ss:$8 sps:$4 sm:$0xff]   ;;  %v10725_v39 = vld [vmem:[%s14784_s26 + $0xdf4] ss:$8 sps:$4 sm:$0xff]  }
 0x30b   :  { %3763 = vmatprep.subr.bf16.mxu0 %v10633_v40  ;;  %v10723_v40 = vld [vmem:[%s14784_s26 + $0xdf0] ss:$8 sps:$4 sm:$0xff]  }
 0x30e   :  { %3764 = vmatpush1.bf16.msra.mxu0 %v10631_v41  ;;  %v10730_v41 = vld [vmem:[%s14784_s26 + $0xe04] ss:$8 sps:$4 sm:$0xff]  }
 0x30f   :  { %3765 = vmatprep.subr.bf16.mxu0 %v10636_v42  ;;  %v12575_v42 = vld [vmem:[%s14785_s24 + $0x70] sm:$0xff] }
 0x312   :  { %3766 = vmatpush1.bf16.msra.mxu0 %v10634_v43  ;;  %v8751_v43 = vcombine.low %v12470_v7, %v12470_v7  ;;  %v10749_v7 = vld [vmem:[%s14784_s26 + $0xe70] ss:$8 sps:$4 sm:$0xff]  }
 0x313   :  { %3767 = vmatprep.subr.bf16.mxu0 %v10639_v44  ;;  %v10728_v44 = vld [vmem:[%s14784_s26 + $0xe00] ss:$8 sps:$4 sm:$0xff]  }
 0x316   :  { %3768 = vmatpush1.bf16.msra.mxu0 %v10637_v45  ;;  %v8754_v45 = vcombine.high %v12575_v42, %v12575_v42 }
 0x317   :  { %3769 = vmatprep.subr.bf16.mxu0 %v10642_v46  ;;  %v10733_v46 = vld [vmem:[%s14784_s26 + $0xe14] ss:$8 sps:$4 sm:$0xff]  }
 0x31a   :  { %3770 = vmatpush1.bf16.msra.mxu0 %v10640_v47  ;;  %v10731_v47 = vld [vmem:[%s14784_s26 + $0xe10] ss:$8 sps:$4 sm:$0xff]  }
 0x31b   :  { %3771 = vmatprep.subr.bf16.mxu0 %v10645_v48  ;;  %v10736_v48 = vld [vmem:[%s14784_s26 + $0xe24] ss:$8 sps:$4 sm:$0xff]  }
 0x31e   :  { %3772 = vmatpush1.bf16.msra.mxu0 %v10643_v49  ;;  %v10828_v49 = vld [vmem:[%s14764_s3 + $0x40] sm:$0xff]  }
 0x31f   :  { %3773 = vmatprep.subr.bf16.mxu0 %v10648_v50  ;;  %v10829_v50 = vld [vmem:[%s14764_s3] sm:$0xff]   ;;  %9870 = vmatprep.subr.bf16.mxu1 %v10828_v49  ;;  %v10813_v49 = vld [vmem:[%s14784_s26 + $0xfb4] ss:$8 sps:$4 sm:$0xff]  }
 0x320   :  { %9871 = vmatpush3.bf16.msra.mxu1 %v10829_v50  ;;  %v10811_v50 = vld [vmem:[%s14784_s26 + $0xfb0] ss:$8 sps:$4 sm:$0xff]  }
 0x322   :  { %3774 = vmatpush1.bf16.msra.mxu0 %v10646_v51  ;;  %v10734_v51 = vld [vmem:[%s14784_s26 + $0xe20] ss:$8 sps:$4 sm:$0xff]  }
 0x323   :  { %3775 = vmatprep.subr.bf16.mxu0 %v10651_v52  ;;  %v10830_v52 = vld [vmem:[%s14764_s3 + $0x48] sm:$0xff]  }
 0x324   :  { %9872 = vmatprep.subr.bf16.mxu1 %v10830_v52  ;;  %v10814_v52 = vld [vmem:[%s14784_s26 + $0xfc0] ss:$8 sps:$4 sm:$0xff]  }
 0x326   :  { %3776 = vmatpush1.bf16.msra.mxu0 %v10649_v53  ;;  %v10831_v53 = vld [vmem:[%s14764_s3 + $0x8] sm:$0xff]  }
 0x327   :  { %3777 = vmatprep.subr.bf16.mxu0 %v10654_v54  ;;  %v10832_v54 = vld [vmem:[%s14764_s3 + $0x50] sm:$0xff]   ;;  %9873 = vmatpush3.bf16.msra.mxu1 %v10831_v53 }
 0x328   :  { %9874 = vmatprep.subr.bf16.mxu1 %v10832_v54  ;;  %v10819_v53 = vld [vmem:[%s14784_s26 + $0xfd4] ss:$8 sps:$4 sm:$0xff]   ;;  %v10817_v54 = vld [vmem:[%s14784_s26 + $0xfd0] ss:$8 sps:$4 sm:$0xff]  }
 0x32a   :  { %3778 = vmatpush1.bf16.msra.mxu0 %v10652_v55  ;;  %v10739_v55 = vld [vmem:[%s14784_s26 + $0xe34] ss:$8 sps:$4 sm:$0xff]  }
 0x32b   :  { %3779 = vmatprep.subr.bf16.mxu0 %v10657_v56  ;;  %v10737_v56 = vld [vmem:[%s14784_s26 + $0xe30] ss:$8 sps:$4 sm:$0xff]  }
 0x32e   :  { %3780 = vmatpush1.bf16.msra.mxu0 %v10655_v57  ;;  %v10833_v57 = vld [vmem:[%s14764_s3 + $0x10] sm:$0xff]  }
 0x32f   :  { %3781 = vmatprep.subr.bf16.mxu0 %v10660_v58  ;;  %v10834_v58 = vld [vmem:[%s14764_s3 + $0x58] sm:$0xff]   ;;  %9875 = vmatpush3.bf16.msra.mxu1 %v10833_v57 }
 0x330   :  { %9876 = vmatprep.subr.bf16.mxu1 %v10834_v58  ;;  %v10825_v57 = vld [vmem:[%s14784_s26 + $0xff4] ss:$8 sps:$4 sm:$0xff]   ;;  %v10823_v58 = vld [vmem:[%s14784_s26 + $0xff0] ss:$8 sps:$4 sm:$0xff]  }
 0x332   :  { %3782 = vmatpush1.bf16.msra.mxu0 %v10658_v59  ;;  %v10742_v59 = vld [vmem:[%s14784_s26 + $0xe44] ss:$8 sps:$4 sm:$0xff]  }
 0x333   :  { %3783 = vmatprep.subr.bf16.mxu0 %v10663_v60  ;;  %v10740_v60 = vld [vmem:[%s14784_s26 + $0xe40] ss:$8 sps:$4 sm:$0xff]  }
 0x336   :  { %3784 = vmatpush1.bf16.msra.mxu0 %v10661_v61  ;;  %v10745_v61 = vld [vmem:[%s14784_s26 + $0xe54] ss:$8 sps:$4 sm:$0xff]  }
 0x337   :  { %3785 = vmatprep.subr.bf16.mxu0 %v10666_v62  ;;  %v10835_v62 = vld [vmem:[%s14764_s3 + $0x18] sm:$0xff]  }
 0x338   :  { %9877 = vmatpush3.bf16.msra.mxu1 %v10835_v62  ;;  %v10842_v62 = vld [vmem:[%s14764_s3 + $0x78] sm:$0xff]  }
 0x33a   :  { %3786 = vmatpush1.bf16.msra.mxu0 %v10664_v63  ;;  %v10836_v63 = vld [vmem:[%s14764_s3 + $0x60] sm:$0xff]  }
 0x33b   :  { %3787 = vmatprep.subr.bf16.mxu0 %v10669_v0  ;;  %v10837_v0 = vld [vmem:[%s14764_s3 + $0x20] sm:$0xff]   ;;  %9878 = vmatprep.subr.bf16.mxu1 %v10836_v63  ;;  %v10843_v63 = vld [vmem:[%s14764_s3 + $0x38] sm:$0xff]  }
 0x33c   :  { %9879 = vmatpush3.bf16.msra.mxu1 %v10837_v0  ;;  %v11014_v0 = vmov 0.0  }
 0x33e   :  { %3788 = vmatpush1.bf16.msra.mxu0 %v10667_v1  ;;  %v10743_v1 = vld [vmem:[%s14784_s26 + $0xe50] ss:$8 sps:$4 sm:$0xff]  }
 0x33f   :  { %3789 = vmatprep.subr.bf16.mxu0 %v10672_v2  ;;  %v10838_v2 = vld [vmem:[%s14764_s3 + $0x68] sm:$0xff]  }
 0x340   :  { %9880 = vmatprep.subr.bf16.mxu1 %v10838_v2 }
 0x342   :  { %3790 = vmatpush1.bf16.msra.mxu0 %v10670_v3  ;;  %v10748_v3 = vld [vmem:[%s14784_s26 + $0xe64] ss:$8 sps:$4 sm:$0xff]  }
 0x343   :  { %3791 = vmatprep.subr.bf16.mxu0 %v10675_v4  ;;  %v10839_v4 = vld [vmem:[%s14764_s3 + $0x28] sm:$0xff]  }
 0x344   :  { %9881 = vmatpush3.bf16.msra.mxu1 %v10839_v4  ;;  %v585_v4 = vld [vmem:[%s14766_s2] sm:$0x3] }
 0x346   :  { %3792 = vmatpush1.bf16.msra.mxu0 %v10673_v5  ;;  %v10746_v5 = vld [vmem:[%s14784_s26 + $0xe60] ss:$8 sps:$4 sm:$0xff]  }
 0x347   :  { %3802 = vmatprep.subr.bf16.mxu0 %v10680_v6  ;;  %v10751_v6 = vld [vmem:[%s14784_s26 + $0xe74] ss:$8 sps:$4 sm:$0xff]  }
 0x349   :  { %3794 = vmatmul.mubr.bf16.vlgmr.msra.gmra.mrb[0].mxu0 %v8749_v8  ;;  %v10754_v8 = vld [vmem:[%s14784_s26 + $0xe84] ss:$8 sps:$4 sm:$0xff]  }
 0x34a   :  { %3803 = vmatpush1.bf16.msra.mxu0 %v10678_v9  ;;  %3834 = vmatprep.mubr.bf16.mxu0 %v8752_v10  ;;  %v10752_v9 = vld [vmem:[%s14784_s26 + $0xe80] ss:$8 sps:$4 sm:$0xff]   ;;  %v10757_v10 = vld [vmem:[%s14784_s26 + $0xe94] ss:$8 sps:$4 sm:$0xff]  }
 0x34b   :  { %3804 = vmatprep.subr.bf16.mxu0 %v10683_v11  ;;  %v10755_v11 = vld [vmem:[%s14784_s26 + $0xe90] ss:$8 sps:$4 sm:$0xff]  }
 0x34e   :  { %3805 = vmatpush1.bf16.msra.mxu0 %v10681_v12  ;;  %v10760_v12 = vld [vmem:[%s14784_s26 + $0xea4] ss:$8 sps:$4 sm:$0xff]  }
 0x34f   :  { %3806 = vmatprep.subr.bf16.mxu0 %v10686_v13  ;;  %v10758_v13 = vld [vmem:[%s14784_s26 + $0xea0] ss:$8 sps:$4 sm:$0xff]  }
 0x352   :  { %3807 = vmatpush1.bf16.msra.mxu0 %v10684_v14  ;;  %v10763_v14 = vld [vmem:[%s14784_s26 + $0xeb4] ss:$8 sps:$4 sm:$0xff]  }
 0x353   :  { %3808 = vmatprep.subr.bf16.mxu0 %v10689_v15  ;;  %v10761_v15 = vld [vmem:[%s14784_s26 + $0xeb0] ss:$8 sps:$4 sm:$0xff]  }
 0x356   :  { %3809 = vmatpush1.bf16.msra.mxu0 %v10687_v16  ;;  %v10766_v16 = vld [vmem:[%s14784_s26 + $0xec4] ss:$8 sps:$4 sm:$0xff]  }
 0x357   :  { %3810 = vmatprep.subr.bf16.mxu0 %v10692_v17  ;;  %v10764_v17 = vld [vmem:[%s14784_s26 + $0xec0] ss:$8 sps:$4 sm:$0xff]  }
 0x35a   :  { %3811 = vmatpush1.bf16.msra.mxu0 %v10690_v18  ;;  %v10769_v18 = vld [vmem:[%s14784_s26 + $0xed4] ss:$8 sps:$4 sm:$0xff]  }
 0x35b   :  { %3812 = vmatprep.subr.bf16.mxu0 %v10695_v19  ;;  %v10767_v19 = vld [vmem:[%s14784_s26 + $0xed0] ss:$8 sps:$4 sm:$0xff]  }
 0x35e   :  { %3813 = vmatpush1.bf16.msra.mxu0 %v10693_v20  ;;  %v10772_v20 = vld [vmem:[%s14784_s26 + $0xee4] ss:$8 sps:$4 sm:$0xff]  }
 0x35f   :  { %3814 = vmatprep.subr.bf16.mxu0 %v10698_v21  ;;  %v10770_v21 = vld [vmem:[%s14784_s26 + $0xee0] ss:$8 sps:$4 sm:$0xff]  }
 0x362   :  { %3815 = vmatpush1.bf16.msra.mxu0 %v10696_v22  ;;  %v10775_v22 = vld [vmem:[%s14784_s26 + $0xef4] ss:$8 sps:$4 sm:$0xff]  }
 0x363   :  { %3816 = vmatprep.subr.bf16.mxu0 %v10701_v23  ;;  %v10773_v23 = vld [vmem:[%s14784_s26 + $0xef0] ss:$8 sps:$4 sm:$0xff]  }
 0x366   :  { %3817 = vmatpush1.bf16.msra.mxu0 %v10699_v24  ;;  %v10780_v24 = vld [vmem:[%s14784_s26 + $0xf04] ss:$8 sps:$4 sm:$0xff]  }
 0x367   :  { %3818 = vmatprep.subr.bf16.mxu0 %v10704_v25  ;;  %v12716_v25 = vld [vmem:[%s14785_s24 + $0x78] sm:$0xff] }
 0x36a   :  { %3819 = vmatpush1.bf16.msra.mxu0 %v10702_v26  ;;  %v8753_v26 = vcombine.low %v12575_v42, %v12575_v42  ;;  %v10799_v42 = vld [vmem:[%s14784_s26 + $0xf70] ss:$8 sps:$4 sm:$0xff]  }
 0x36b   :  { %3820 = vmatprep.subr.bf16.mxu0 %v10707_v27  ;;  %v10778_v27 = vld [vmem:[%s14784_s26 + $0xf00] ss:$8 sps:$4 sm:$0xff]  }
 0x36e   :  { %3821 = vmatpush1.bf16.msra.mxu0 %v10705_v28  ;;  %v8756_v28 = vcombine.high %v12716_v25, %v12716_v25 }
 0x36f   :  { %3822 = vmatprep.subr.bf16.mxu0 %v10710_v29  ;;  %v10783_v29 = vld [vmem:[%s14784_s26 + $0xf14] ss:$8 sps:$4 sm:$0xff]  }
 0x372   :  { %3823 = vmatpush1.bf16.msra.mxu0 %v10708_v30  ;;  %v10781_v30 = vld [vmem:[%s14784_s26 + $0xf10] ss:$8 sps:$4 sm:$0xff]  }
 0x373   :  { %3824 = vmatprep.subr.bf16.mxu0 %v10713_v31  ;;  %v10786_v31 = vld [vmem:[%s14784_s26 + $0xf24] ss:$8 sps:$4 sm:$0xff]  }
 0x376   :  { %3825 = vmatpush1.bf16.msra.mxu0 %v10711_v32  ;;  %v10784_v32 = vld [vmem:[%s14784_s26 + $0xf20] ss:$8 sps:$4 sm:$0xff]  }
 0x377   :  { %3826 = vmatprep.subr.bf16.mxu0 %v10716_v33  ;;  %v10789_v33 = vld [vmem:[%s14784_s26 + $0xf34] ss:$8 sps:$4 sm:$0xff]  }
 0x37a   :  { %3827 = vmatpush1.bf16.msra.mxu0 %v10714_v34  ;;  %v10787_v34 = vld [vmem:[%s14784_s26 + $0xf30] ss:$8 sps:$4 sm:$0xff]  }
 0x37b   :  { %3828 = vmatprep.subr.bf16.mxu0 %v10719_v35  ;;  %v10792_v35 = vld [vmem:[%s14784_s26 + $0xf44] ss:$8 sps:$4 sm:$0xff]  }
 0x37e   :  { %3829 = vmatpush1.bf16.msra.mxu0 %v10717_v36  ;;  %v10790_v36 = vld [vmem:[%s14784_s26 + $0xf40] ss:$8 sps:$4 sm:$0xff]  }
 0x37f   :  { %3830 = vmatprep.subr.bf16.mxu0 %v10722_v37  ;;  %v10795_v37 = vld [vmem:[%s14784_s26 + $0xf54] ss:$8 sps:$4 sm:$0xff]  }
 0x382   :  { %3831 = vmatpush1.bf16.msra.mxu0 %v10720_v38  ;;  %v10793_v38 = vld [vmem:[%s14784_s26 + $0xf50] ss:$8 sps:$4 sm:$0xff]  }
 0x383   :  { %3832 = vmatprep.subr.bf16.mxu0 %v10725_v39  ;;  %v10798_v39 = vld [vmem:[%s14784_s26 + $0xf64] ss:$8 sps:$4 sm:$0xff]  }
 0x386   :  { %3833 = vmatpush1.bf16.msra.mxu0 %v10723_v40  ;;  %v10796_v40 = vld [vmem:[%s14784_s26 + $0xf60] ss:$8 sps:$4 sm:$0xff]  }
 0x387   :  { %3843 = vmatprep.subr.bf16.mxu0 %v10730_v41  ;;  %v10801_v41 = vld [vmem:[%s14784_s26 + $0xf74] ss:$8 sps:$4 sm:$0xff]  }
 0x389   :  { %3835 = vmatmul.mubr.bf16.vlgmr.msra.gmra.mrb[0].mxu0 %v8751_v43  ;;  %v10804_v43 = vld [vmem:[%s14784_s26 + $0xf84] ss:$8 sps:$4 sm:$0xff]  }
 0x38a   :  { %3844 = vmatpush1.bf16.msra.mxu0 %v10728_v44  ;;  %3875 = vmatprep.mubr.bf16.mxu0 %v8754_v45  ;;  %v10802_v44 = vld [vmem:[%s14784_s26 + $0xf80] ss:$8 sps:$4 sm:$0xff]   ;;  %v10807_v45 = vld [vmem:[%s14784_s26 + $0xf94] ss:$8 sps:$4 sm:$0xff]  }
 0x38b   :  { %3845 = vmatprep.subr.bf16.mxu0 %v10733_v46  ;;  %v10805_v46 = vld [vmem:[%s14784_s26 + $0xf90] ss:$8 sps:$4 sm:$0xff]  }
 0x38e   :  { %3846 = vmatpush1.bf16.msra.mxu0 %v10731_v47  ;;  %v10810_v47 = vld [vmem:[%s14784_s26 + $0xfa4] ss:$8 sps:$4 sm:$0xff]  }
 0x38f   :  { %3847 = vmatprep.subr.bf16.mxu0 %v10736_v48  ;;  %v10808_v48 = vld [vmem:[%s14784_s26 + $0xfa0] ss:$8 sps:$4 sm:$0xff]  }
 0x392   :  { %3848 = vmatpush1.bf16.msra.mxu0 %v10734_v51  ;;  %v10816_v51 = vld [vmem:[%s14784_s26 + $0xfc4] ss:$8 sps:$4 sm:$0xff]  }
 0x393   :  { %3849 = vmatprep.subr.bf16.mxu0 %v10739_v55  ;;  %v10822_v55 = vld [vmem:[%s14784_s26 + $0xfe4] ss:$8 sps:$4 sm:$0xff]  }
 0x396   :  { %3850 = vmatpush1.bf16.msra.mxu0 %v10737_v56  ;;  %v10820_v56 = vld [vmem:[%s14784_s26 + $0xfe0] ss:$8 sps:$4 sm:$0xff]  }
 0x397   :  { %3851 = vmatprep.subr.bf16.mxu0 %v10742_v59  ;;  %v8755_v59 = vcombine.low %v12716_v25, %v12716_v25  ;;  %v10851_v25 = vld [vmem:[%s14765_s5 + $0x38] sm:$0xff]  }
 0x39a   :  { %3852 = vmatpush1.bf16.msra.mxu0 %v10740_v60  ;;  %v10840_v60 = vld [vmem:[%s14764_s3 + $0x70] sm:$0xff]  }
 0x39b   :  { %3853 = vmatprep.subr.bf16.mxu0 %v10745_v61  ;;  %v10841_v61 = vld [vmem:[%s14764_s3 + $0x30] sm:$0xff]   ;;  %9882 = vmatprep.subr.bf16.mxu1 %v10840_v60  ;;  %v9301_v60 = vld [vmem:[%s14774_s10] ss:$0 sm:$0xff] }
 0x39c   :  { %9883 = vmatpush3.bf16.msra.mxu1 %v10841_v61 }
 0x39d   :  { %9884 = vmatprep.subr.bf16.mxu1 %v10842_v62 }
 0x39e   :  { %3854 = vmatpush1.bf16.msra.mxu0 %v10743_v1  ;;  %v587_v1 = vlaneseq }
 0x39f   :  { %3855 = vmatprep.subr.bf16.mxu0 %v10748_v3 }
 0x3a0   :  { %9885 = vmatpush3.bf16.msra.mxu1 %v10843_v63  ;;  %v12830_v2 = vshrl.u32 %v587_v1, 7 }
 0x3a1   :  { %9913 = vmatprep.subr.bf16.mxu1 %v11014_v0 }
 0x3a2   :  { %3856 = vmatpush1.bf16.msra.mxu0 %v10746_v5  ;;  %v12833_v3 = vsub.s32 0, %v12830_v2  ;;  %v12839_v5 = vsub.s32 1, %v12830_v2 }
 0x3a3   :  { %3857 = vmatprep.subr.bf16.mxu0 %v10751_v6 }
 0x3a4   :  { %v590_v6 = vrot.slane %v585_v4, %v12833_v3 }
 0x3a6   :  { %3858 = vmatpush1.bf16.msra.mxu0 %v10749_v7  ;;  %v594_v7 = vrot.slane %v585_v4, %v12839_v5 }
 0x3a7   :  { %3859 = vmatprep.subr.bf16.mxu0 %v10754_v8 }
 0x3aa   :  { %3860 = vmatpush1.bf16.msra.mxu0 %v10752_v9 }
 0x3ab   :  { %3861 = vmatprep.subr.bf16.mxu0 %v10757_v10 }
 0x3ae   :  { %3862 = vmatpush1.bf16.msra.mxu0 %v10755_v11 }
 0x3af   :  { %3863 = vmatprep.subr.bf16.mxu0 %v10760_v12 }
 0x3b2   :  { %3864 = vmatpush1.bf16.msra.mxu0 %v10758_v13 }
 0x3b3   :  { %3865 = vmatprep.subr.bf16.mxu0 %v10763_v14 }
 0x3b6   :  { %3866 = vmatpush1.bf16.msra.mxu0 %v10761_v15 }
 0x3b7   :  { %3867 = vmatprep.subr.bf16.mxu0 %v10766_v16 }
 0x3ba   :  { %3868 = vmatpush1.bf16.msra.mxu0 %v10764_v17  ;;  %v10844_v17 = vld [vmem:[%s14765_s5] sm:$0xff]  }
 0x3bb   :  { %3869 = vmatprep.subr.bf16.mxu0 %v10769_v18 }
 0x3be   :  { %3870 = vmatpush1.bf16.msra.mxu0 %v10767_v19  ;;  %v10845_v19 = vld [vmem:[%s14765_s5 + $0x8] sm:$0xff]  }
 0x3bf   :  { %3871 = vmatprep.subr.bf16.mxu0 %v10772_v20  ;;  %v10846_v20 = vld [vmem:[%s14765_s5 + $0x10] sm:$0xff]  }
 0x3c2   :  { %3872 = vmatpush1.bf16.msra.mxu0 %v10770_v21  ;;  %v10847_v21 = vld [vmem:[%s14765_s5 + $0x18] sm:$0xff]  }
 0x3c3   :  { %3873 = vmatprep.subr.bf16.mxu0 %v10775_v22  ;;  %v10848_v22 = vld [vmem:[%s14765_s5 + $0x20] sm:$0xff]  }
 0x3c6   :  { %3874 = vmatpush1.bf16.msra.mxu0 %v10773_v23  ;;  %v10849_v23 = vld [vmem:[%s14765_s5 + $0x28] sm:$0xff]  }
 0x3c7   :  { %3884 = vmatprep.subr.bf16.mxu0 %v10780_v24  ;;  %v10850_v24 = vld [vmem:[%s14765_s5 + $0x30] sm:$0xff]  }
 0x3c9   :  { %3876 = vmatmul.mubr.bf16.vlgmr.msra.gmra.mrb[0].mxu0 %v8753_v26 }
 0x3ca   :  { %3885 = vmatpush1.bf16.msra.mxu0 %v10778_v27  ;;  %3916 = vmatprep.mubr.bf16.mxu0 %v8756_v28  ;;  %v9269_v27 = vld [vmem:[%s14768_s4] ss:$0 sm:$0xff] }
 0x3cb   :  { %3886 = vmatprep.subr.bf16.mxu0 %v10783_v29 }
 0x3ce   :  { %3887 = vmatpush1.bf16.msra.mxu0 %v10781_v30 }
 0x3cf   :  { %3888 = vmatprep.subr.bf16.mxu0 %v10786_v31 }
 0x3d2   :  { %3889 = vmatpush1.bf16.msra.mxu0 %v10784_v32 }
 0x3d3   :  { %3890 = vmatprep.subr.bf16.mxu0 %v10789_v33 }
 0x3d6   :  { %3891 = vmatpush1.bf16.msra.mxu0 %v10787_v34  ;;  %v10852_v34 = vld [vmem:[%s14767_s7] sm:$0xff]  }
 0x3d7   :  { %3892 = vmatprep.subr.bf16.mxu0 %v10792_v35 }
 0x3da   :  { %3893 = vmatpush1.bf16.msra.mxu0 %v10790_v36  ;;  %v10853_v36 = vld [vmem:[%s14767_s7 + $0x8] sm:$0xff]  }
 0x3db   :  { %3894 = vmatprep.subr.bf16.mxu0 %v10795_v37  ;;  %v10854_v37 = vld [vmem:[%s14767_s7 + $0x10] sm:$0xff]  }
 0x3de   :  { %3895 = vmatpush1.bf16.msra.mxu0 %v10793_v38  ;;  %v10855_v38 = vld [vmem:[%s14767_s7 + $0x18] sm:$0xff]  }
 0x3df   :  { %3896 = vmatprep.subr.bf16.mxu0 %v10798_v39  ;;  %v9286_v39 = vld [vmem:[%s14770_s6] ss:$0 sm:$0xff] }
 0x3e2   :  { %3897 = vmatpush1.bf16.msra.mxu0 %v10796_v40 }
 0x3e3   :  { %3898 = vmatprep.subr.bf16.mxu0 %v10801_v41 }
 0x3e6   :  { %3899 = vmatpush1.bf16.msra.mxu0 %v10799_v42 }
 0x3e7   :  { %3900 = vmatprep.subr.bf16.mxu0 %v10804_v43 }
 0x3ea   :  { %3901 = vmatpush1.bf16.msra.mxu0 %v10802_v44 }
 0x3eb   :  { %3902 = vmatprep.subr.bf16.mxu0 %v10807_v45 }
 0x3ee   :  { %3903 = vmatpush1.bf16.msra.mxu0 %v10805_v46  ;;  %v10856_v46 = vld [vmem:[%s14769_s9] sm:$0xff]  }
 0x3ef   :  { %3904 = vmatprep.subr.bf16.mxu0 %v10810_v47 }
 0x3f2   :  { %3905 = vmatpush1.bf16.msra.mxu0 %v10808_v48  ;;  %v9295_v48 = vld [vmem:[%s14772_s8] ss:$0 sm:$0xff] }
 0x3f3   :  { %3906 = vmatprep.subr.bf16.mxu0 %v10813_v49 }
 0x3f6   :  { %3907 = vmatpush1.bf16.msra.mxu0 %v10811_v50 }
 0x3f7   :  { %3908 = vmatprep.subr.bf16.mxu0 %v10816_v51 }
 0x3fa   :  { %3909 = vmatpush1.bf16.msra.mxu0 %v10814_v52 }
 0x3fb   :  { %3910 = vmatprep.subr.bf16.mxu0 %v10819_v53  ;;  %v10857_v53 = vld [vmem:[%s14771_s11] sm:$0xff]  }
 0x3fe   :  { %3911 = vmatpush1.bf16.msra.mxu0 %v10817_v54 }
 0x3ff   :  { %3912 = vmatprep.subr.bf16.mxu0 %v10822_v55 }
 0x402   :  { %3913 = vmatpush1.bf16.msra.mxu0 %v10820_v56  ;;  %v10858_v56 = vld [vmem:[%s14771_s11 + $0x8] sm:$0xff]  }
 0x403   :  { %3914 = vmatprep.subr.bf16.mxu0 %v10825_v57  ;;  %v10859_v57 = vld [vmem:[%s14771_s11 + $0x10] sm:$0xff]  }
 0x406   :  { %3915 = vmatpush1.bf16.msra.mxu0 %v10823_v58  ;;  %v10860_v58 = vld [vmem:[%s14771_s11 + $0x18] sm:$0xff]  }
 0x409   :  { %3917 = vmatmul.mubr.bf16.vlgmr.msra.gmra.mrb[0].mxu0 %v8755_v59  ;;  %v10863_v59 = vld [vmem:[%s14773_s13 + $0x4] ss:$8 sps:$4 sm:$0xff]  }
 0x4dc   :  { %v3918_v8 = vpop.f32.mrb[0].mxu0 }
 0x4dd   :  { %v9963_v9 = vadd.f32 %v3918_v8, %v590_v6  ;;  %v3920_v10 = vpop.f32.mrb[1].mxu0  ;;  %v10861_v6 = vld [vmem:[%s14773_s13] ss:$8 sps:$4 sm:$0xff]   ;;  %v10866_v8 = vld [vmem:[%s14773_s13 + $0x14] ss:$8 sps:$4 sm:$0xff]  }
 0x4de   :  { %v9964_v11 = vadd.f32 %v3920_v10, %v594_v7  ;;  %v3922_v12 = vpop.f32.mrb[2].mxu0  ;;  %v10869_v10 = vld [vmem:[%s14773_s13 + $0x24] ss:$8 sps:$4 sm:$0xff]  }
 0x4df   :  { %v3925_v13 = vmax.f32 %v9963_v9, 0.0  ;;  %v3923_v14 = vpop.f32.mrb[3].mxu0  ;;  %v10864_v9 = vld [vmem:[%s14773_s13 + $0x10] ss:$8 sps:$4 sm:$0xff]   ;;  %v10872_v12 = vld [vmem:[%s14773_s13 + $0x34] ss:$8 sps:$4 sm:$0xff]  }
 0x4e0   :  { %v3926_v15 = vmax.f32 %v9964_v11, 0.0  ;;  %v10867_v11 = vld [vmem:[%s14773_s13 + $0x20] ss:$8 sps:$4 sm:$0xff]   ;;  %v10875_v14 = vld [vmem:[%s14773_s13 + $0x44] ss:$8 sps:$4 sm:$0xff]  }
 0x4e1   :  { %v3960_v18 = vpack.c.bf16 %v3925_v13, %v3925_v13  ;;  %v10870_v13 = vld [vmem:[%s14773_s13 + $0x30] ss:$8 sps:$4 sm:$0xff]  }
 0x4e2   :  { %v3961_v16 = vpack.c.bf16 %v3926_v15, %v3926_v15  ;;  %v10873_v15 = vld [vmem:[%s14773_s13 + $0x40] ss:$8 sps:$4 sm:$0xff]  }
 0x4e4   :  { %4096 = vmatprep.mubr.bf16.mxu1 %v3961_v16  ;;  %v10878_v16 = vld [vmem:[%s14773_s13 + $0x54] ss:$8 sps:$4 sm:$0xff]  }
 0x4e5   :  { %4097 = vmatmul.mubr.bf16.vlgmr.msra.gmra.mrb[0].mxu1 %v3960_v18  ;;  %v10881_v18 = vld [vmem:[%s14773_s13 + $0x64] ss:$8 sps:$4 sm:$0xff]  }
 0x4e6   :  { %9914 = vmatpush3.bf16.msra.mxu1 %v10844_v17  ;;  %9929 = vmatprep.mubr.msk.bf16.mxu1 %vm11015_vm0, %v11014_v0  ;;  %v10876_v17 = vld [vmem:[%s14773_s13 + $0x50] ss:$8 sps:$4 sm:$0xff]  }
 0x4e7   :  { %9915 = vmatprep.subr.bf16.mxu1 %v11014_v0 }
 0x4ea   :  { %9916 = vmatpush3.bf16.msra.mxu1 %v10845_v19  ;;  %v10879_v19 = vld [vmem:[%s14773_s13 + $0x60] ss:$8 sps:$4 sm:$0xff]  }
 0x4eb   :  { %9917 = vmatprep.subr.bf16.mxu1 %v11014_v0 }
 0x4ee   :  { %9918 = vmatpush3.bf16.msra.mxu1 %v10846_v20  ;;  %v10884_v20 = vld [vmem:[%s14773_s13 + $0x74] ss:$8 sps:$4 sm:$0xff]  }
 0x4ef   :  { %9919 = vmatprep.subr.bf16.mxu1 %v11014_v0 }
 0x4f2   :  { %9920 = vmatpush3.bf16.msra.mxu1 %v10847_v21  ;;  %v10882_v21 = vld [vmem:[%s14773_s13 + $0x70] ss:$8 sps:$4 sm:$0xff]  }
 0x4f3   :  { %9921 = vmatprep.subr.bf16.mxu1 %v11014_v0 }
 0x4f6   :  { %9922 = vmatpush3.bf16.msra.mxu1 %v10848_v22  ;;  %v11016_v22 = vmov 0  }
 0x4f7   :  { %9923 = vmatprep.subr.bf16.mxu1 %v11014_v0 }
 0x4fa   :  { %9924 = vmatpush3.bf16.msra.mxu1 %v10849_v23  ;;  %v12983_v23 = vld [vmem:[%s14775_s15] sm:$0xff] }
 0x4fb   :  { %9925 = vmatprep.subr.bf16.mxu1 %v11014_v0 }
 0x4fe   :  { %9926 = vmatpush3.bf16.msra.mxu1 %v10850_v24  ;;  %v12988_v24 = vld [vmem:[%s14775_s15 + $0x80] sm:$0xff] }
 0x4ff   :  { %9927 = vmatprep.subr.bf16.mxu1 %v11014_v0 }
 0x502   :  { %9928 = vmatpush3.bf16.msra.mxu1 %v10851_v25  ;;  %v4613_v25 = vld [vmem:[%s14775_s15 + $0x70] sm:$0xff] }
 0x503   :  { %9933 = vmatprep.subr.bf16.mxu1 %v11014_v0 }
 0x5b8   :  { %v9886_v26 = vpop.f32.mrb[0].mxu1 }
 0x5b9   :  { %v9887_v28 = vpop.f32.mrb[1].mxu1 }
 0x5ba   :  { %v9888_v29 = vadd.f32 %v9887_v28, %v9886_v26  ;;  %v9889_v30 = vpop.f32.mrb[2].mxu1  ;;  %v9326_v26 = vcombine.low %v12983_v23, %v12988_v24  ;;  %v4629_v28 = vld [vmem:[%s14775_s15 + $0xf0] sm:$0xff] }
 0x5bb   :  { %v9890_v31 = vpop.f32.mrb[3].mxu1  ;;  %v9355_v30 = vcombine.high %v4613_v25, %v4629_v28 }
 0x5bc   :  { %v4099_v32 = vadd.f32 %v9888_v29, %v9269_v27  ;;  %v9327_v27 = vcombine.high %v12983_v23, %v12988_v24  ;;  %v9354_v29 = vcombine.low %v4613_v25, %v4629_v28  ;;  %v4645_v31 = vld [vmem:[%s14775_s15 + $0x170] sm:$0xff]  ;;  %v4727_v23 = vld [vmem:[%s14775_s15 + $0x400] sm:$0xff] }
 0x5bd   :  { %8415 = vmatprep.subr.bf16.mxu0 %v9355_v30  ;;  %v4631_v30 = vld [vmem:[%s14775_s15 + $0x100] sm:$0xff] }
 0x5be   :  { %v4104_v33 = vmax.f32 %v4099_v32, 0.0  ;;  %v4661_v32 = vld [vmem:[%s14775_s15 + $0x1f0] sm:$0xff]  ;;  %8416 = vmatpush1.bf16.msra.mxu0 %v9354_v29  ;;  %v4743_v24 = vld [vmem:[%s14775_s15 + $0x480] sm:$0xff] }
 0x5c0   :  { %v4122_v35 = vpack.c.bf16 %v4104_v33, %v4104_v33  ;;  %v9386_v33 = vcombine.low %v4645_v31, %v4661_v32 }
 0x5c2   :  { %9930 = vmatmul.mubr.bf16.vlgmr.msra.gmra.mrb[4].mxu1 %v4122_v35  ;;  %v4677_v35 = vld [vmem:[%s14775_s15 + $0x270] sm:$0xff] }
 0x5c3   :  { %9934 = vmatpush3.bf16.msra.mxu1 %v10852_v34  ;;  %9941 = vmatprep.mubr.msk.bf16.mxu1 %vm11015_vm0, %v11014_v0  ;;  %v9387_v34 = vcombine.high %v4645_v31, %v4661_v32  ;;  %v4647_v31 = vld [vmem:[%s14775_s15 + $0x180] sm:$0xff] }
 0x5c4   :  { %9935 = vmatprep.subr.bf16.mxu1 %v11014_v0 }
 0x5c5   :  { %8417 = vmatprep.subr.bf16.mxu0 %v9387_v34 }
 0x5c6   :  { %8418 = vmatpush1.bf16.msra.mxu0 %v9386_v33 }
 0x5c7   :  { %9936 = vmatpush3.bf16.msra.mxu1 %v10853_v36  ;;  %v4693_v36 = vld [vmem:[%s14775_s15 + $0x2f0] sm:$0xff] }
 0x5c8   :  { %9937 = vmatprep.subr.bf16.mxu1 %v11014_v0 }
 0x5cb   :  { %9938 = vmatpush3.bf16.msra.mxu1 %v10854_v37  ;;  %v9418_v37 = vcombine.low %v4677_v35, %v4693_v36 }
 0x5cc   :  { %9939 = vmatprep.subr.bf16.mxu1 %v11014_v0 }
 0x5cf   :  { %9940 = vmatpush3.bf16.msra.mxu1 %v10855_v38  ;;  %v9419_v38 = vcombine.high %v4677_v35, %v4693_v36  ;;  %v9359_v35 = vcombine.high %v4631_v30, %v4647_v31  ;;  %v4663_v36 = vld [vmem:[%s14775_s15 + $0x200] sm:$0xff] }
 0x5d0   :  { %9945 = vmatprep.subr.bf16.mxu1 %v11014_v0 }
 0x5d1   :  { %8419 = vmatprep.subr.bf16.mxu0 %v9419_v38  ;;  %v9358_v38 = vcombine.low %v4631_v30, %v4647_v31 }
 0x5d2   :  { %8420 = vmatpush1.bf16.msra.mxu0 %v9418_v37  ;;  %v4679_v37 = vld [vmem:[%s14775_s15 + $0x280] sm:$0xff] }
 0x695   :  { %v4211_v40 = vpop.f32.mrb[4].mxu1 }
 0x696   :  { %v4212_v41 = vadd.f32 %v9286_v39, %v4211_v40  ;;  %v9931_v42 = vpop.f32.mrb[5].mxu1  ;;  %v4709_v39 = vld [vmem:[%s14775_s15 + $0x370] sm:$0xff] }
 0x697   :  { %v4214_v43 = vpop.f32.mrb[6].mxu1  ;;  %v4725_v40 = vld [vmem:[%s14775_s15 + $0x3f0] sm:$0xff] }
 0x698   :  { %v4217_v44 = vmax.f32 %v4212_v41, 0.0  ;;  %v9932_v45 = vpop.f32.mrb[7].mxu1  ;;  %v9450_v41 = vcombine.low %v4709_v39, %v4725_v40  ;;  %v9451_v42 = vcombine.high %v4709_v39, %v4725_v40  ;;  %v4741_v43 = vld [vmem:[%s14775_s15 + $0x470] sm:$0xff]  ;;  %v9391_v39 = vcombine.high %v4663_v36, %v4679_v37  ;;  %v4695_v40 = vld [vmem:[%s14775_s15 + $0x300] sm:$0xff] }
 0x69a   :  { %v4227_v47 = vpack.c.bf16 %v4217_v44, %v4217_v44  ;;  %8421 = vmatprep.subr.bf16.mxu0 %v9451_v42  ;;  %v4757_v44 = vld [vmem:[%s14775_s15 + $0x4f0] sm:$0xff]  ;;  %v9390_v42 = vcombine.low %v4663_v36, %v4679_v37 }
 0x69b   :  { %8422 = vmatpush1.bf16.msra.mxu0 %v9450_v41  ;;  %v9482_v45 = vcombine.low %v4741_v43, %v4757_v44  ;;  %v4711_v41 = vld [vmem:[%s14775_s15 + $0x380] sm:$0xff]  ;;  %v5109_v36 = vld [vmem:[%s14775_s15 + $0xff0] sm:$0xff] }
 0x69c   :  { %9942 = vmatmul.mubr.msk.bf16.vlgmr.msra.gmra.mrb[8].mxu1 %vm4258_vm1, %v4227_v47  ;;  %v4773_v47 = vld [vmem:[%s14775_s15 + $0x570] sm:$0xff] }
 0x69d   :  { %9946 = vmatpush3.bf16.msra.mxu1 %v10856_v46  ;;  %9947 = vmatprep.mubr.msk.bf16.mxu1 %vm11015_vm0, %v11014_v0  ;;  %v9483_v46 = vcombine.high %v4741_v43, %v4757_v44  ;;  %v9423_v43 = vcombine.high %v4695_v40, %v4711_v41  ;;  %v9455_v44 = vcombine.high %v4727_v23, %v4743_v24 }
 0x69e   :  { %9951 = vmatprep.subr.bf16.mxu1 %v11014_v0 }
 0x69f   :  { %8423 = vmatprep.subr.bf16.mxu0 %v9483_v46  ;;  %v4775_v46 = vld [vmem:[%s14775_s15 + $0x580] sm:$0xff] }
 0x6a0   :  { %8424 = vmatpush1.bf16.msra.mxu0 %v9482_v45  ;;  %v4759_v45 = vld [vmem:[%s14775_s15 + $0x500] sm:$0xff] }
 0x76f   :  { %v4296_v49 = vpop.f32.mrb[8].mxu1 }
 0x770   :  { %v4297_v50 = vadd.f32 %v9295_v48, %v4296_v49  ;;  %v9943_v51 = vpop.f32.mrb[9].mxu1  ;;  %v4789_v48 = vld [vmem:[%s14775_s15 + $0x5f0] sm:$0xff] }
 0x771   :  { %v4299_v52 = vpop.f32.mrb[10].mxu1  ;;  %v9514_v49 = vcombine.low %v4773_v47, %v4789_v48  ;;  %v4805_v51 = vld [vmem:[%s14775_s15 + $0x670] sm:$0xff] }
 0x772   :  { %v4305_v54 = vpack.c.bf16 %v4297_v50, %v4297_v50  ;;  %v9944_v55 = vpop.f32.mrb[11].mxu1  ;;  %v9515_v50 = vcombine.high %v4773_v47, %v4789_v48  ;;  %v4821_v52 = vld [vmem:[%s14775_s15 + $0x6f0] sm:$0xff]  ;;  %v9454_v47 = vcombine.low %v4727_v23, %v4743_v24  ;;  %v9487_v48 = vcombine.high %v4759_v45, %v4775_v46  ;;  %v4463_v23 = vld [vmem:[%s14777_s14] sm:$0x3] }
 0x773   :  { %v4837_v55 = vld [vmem:[%s14775_s15 + $0x770] sm:$0xff]  ;;  %v4469_v24 = vrot.slane %v4463_v23, %v12833_v3 }
 0x774   :  { %9948 = vmatmul.mubr.msk.bf16.vlgmr.msra.gmra.mrb[12].mxu1 %vm4318_vm2, %v4305_v54  ;;  %8425 = vmatprep.subr.bf16.mxu0 %v9515_v50  ;;  %v9547_v54 = vcombine.high %v4805_v51, %v4821_v52  ;;  %v4807_v50 = vld [vmem:[%s14775_s15 + $0x680] sm:$0xff] }
 0x775   :  { %9952 = vmatpush3.bf16.msra.mxu1 %v10857_v53  ;;  %9959 = vmatprep.mubr.msk.bf16.mxu1 %vm11015_vm0, %v11014_v0  ;;  %v9546_v53 = vcombine.low %v4805_v51, %v4821_v52  ;;  %v9486_v51 = vcombine.low %v4759_v45, %v4775_v46 }
 0x776   :  { %9953 = vmatprep.subr.bf16.mxu1 %v11014_v0  ;;  %8426 = vmatpush1.bf16.msra.mxu0 %v9514_v49  ;;  %v4791_v49 = vld [vmem:[%s14775_s15 + $0x600] sm:$0xff] }
 0x777   :  { %8427 = vmatprep.subr.bf16.mxu0 %v9547_v54  ;;  %v9519_v52 = vcombine.high %v4791_v49, %v4807_v50  ;;  %v4839_v54 = vld [vmem:[%s14775_s15 + $0x780] sm:$0xff] }
 0x779   :  { %9954 = vmatpush3.bf16.msra.mxu1 %v10858_v56  ;;  %v4853_v56 = vld [vmem:[%s14775_s15 + $0x7f0] sm:$0xff] }
 0x77a   :  { %9955 = vmatprep.subr.bf16.mxu1 %v11014_v0  ;;  %8428 = vmatpush1.bf16.msra.mxu0 %v9546_v53  ;;  %v4823_v53 = vld [vmem:[%s14775_s15 + $0x700] sm:$0xff] }
 0x77d   :  { %9956 = vmatpush3.bf16.msra.mxu1 %v10859_v57  ;;  %v9578_v57 = vcombine.low %v4837_v55, %v4853_v56 }
 0x77e   :  { %9957 = vmatprep.subr.bf16.mxu1 %v11014_v0 }
 0x781   :  { %9958 = vmatpush3.bf16.msra.mxu1 %v10860_v58  ;;  %v9579_v58 = vcombine.high %v4837_v55, %v4853_v56  ;;  %v9518_v55 = vcombine.low %v4791_v49, %v4807_v50  ;;  %v9551_v56 = vcombine.high %v4823_v53, %v4839_v54 }
 0x782   :  { %4556 = vmatprep.subr.bf16.mxu1 %v10863_v59  ;;  %v4869_v59 = vld [vmem:[%s14775_s15 + $0x870] sm:$0xff] }
 0x783   :  { %8429 = vmatprep.subr.bf16.mxu0 %v9579_v58  ;;  %v4871_v58 = vld [vmem:[%s14775_s15 + $0x880] sm:$0xff] }
 0x784   :  { %8430 = vmatpush1.bf16.msra.mxu0 %v9578_v57  ;;  %v4855_v57 = vld [vmem:[%s14775_s15 + $0x800] sm:$0xff] }
 0x847   :  { %v4356_v61 = vpop.f32.mrb[12].mxu1 }
 0x848   :  { %v4357_v62 = vadd.f32 %v9301_v60, %v4356_v61  ;;  %v9949_v63 = vpop.f32.mrb[13].mxu1  ;;  %v4885_v60 = vld [vmem:[%s14775_s15 + $0x8f0] sm:$0xff] }
 0x849   :  { %v4359_v1 = vpop.f32.mrb[14].mxu1  ;;  %v9610_v61 = vcombine.low %v4869_v59, %v4885_v60  ;;  %v4901_v63 = vld [vmem:[%s14775_s15 + $0x970] sm:$0xff] }
 0x84a   :  { %v4362_v4 = vmax.f32 %v4357_v62, 0.0  ;;  %v9950_v0 = vpop.f32.mrb[15].mxu1  ;;  %v9611_v62 = vcombine.high %v4869_v59, %v4885_v60  ;;  %v4917_v1 = vld [vmem:[%s14775_s15 + $0x9f0] sm:$0xff]  ;;  %v9550_v59 = vcombine.low %v4823_v53, %v4839_v54  ;;  %v9583_v60 = vcombine.high %v4855_v57, %v4871_v58  ;;  %v4648_v53 = vld [vmem:[%s14775_s15 + $0x188] sm:$0xff] }
 0x84b   :  { %v9643_v0 = vcombine.high %v4901_v63, %v4917_v1 }
 0x84c   :  { %v4372_v7 = vpack.c.bf16 %v4362_v4, %v4362_v4  ;;  %8431 = vmatprep.subr.bf16.mxu0 %v9611_v62  ;;  %v9642_v4 = vcombine.low %v4901_v63, %v4917_v1  ;;  %v4903_v62 = vld [vmem:[%s14775_s15 + $0x980] sm:$0xff]  ;;  %v9582_v63 = vcombine.low %v4855_v57, %v4871_v58  ;;  %v4664_v57 = vld [vmem:[%s14775_s15 + $0x208] sm:$0xff] }
 0x84d   :  { %8432 = vmatpush1.bf16.msra.mxu0 %v9610_v61  ;;  %v4887_v61 = vld [vmem:[%s14775_s15 + $0x900] sm:$0xff]  ;;  %v4680_v58 = vld [vmem:[%s14775_s15 + $0x288] sm:$0xff] }
 0x84e   :  { %9960 = vmatmul.mubr.msk.bf16.vlgmr.msra.gmra.mrb[16].mxu1 %vm4258_vm1, %v4372_v7  ;;  %8433 = vmatprep.subr.bf16.mxu0 %v9643_v0  ;;  %v4949_v7 = vld [vmem:[%s14775_s15 + $0xaf0] sm:$0xff]  ;;  %v9615_v1 = vcombine.high %v4887_v61, %v4903_v62  ;;  %v4935_v0 = vld [vmem:[%s14775_s15 + $0xa80] sm:$0xff] }
 0x84f   :  { %4557 = vmatpush1.bf16.msra.mxu1 %v10861_v6  ;;  %4588 = vmatprep.mubr.bf16.mxu1 %v11016_v22  ;;  %v4933_v6 = vld [vmem:[%s14775_s15 + $0xa70] sm:$0xff]  ;;  %v9304_v22 = vld [vmem:[%s14776_s12] ss:$0 sm:$0xff] }
 0x850   :  { %4558 = vmatprep.subr.bf16.mxu1 %v10866_v8  ;;  %v9674_v8 = vcombine.low %v4933_v6, %v4949_v7 }
 0x851   :  { %8434 = vmatpush1.bf16.msra.mxu0 %v9642_v4  ;;  %v4919_v4 = vld [vmem:[%s14775_s15 + $0xa00] sm:$0xff] }
 0x853   :  { %4559 = vmatpush1.bf16.msra.mxu1 %v10864_v9  ;;  %v9675_v9 = vcombine.high %v4933_v6, %v4949_v7  ;;  %v9614_v6 = vcombine.low %v4887_v61, %v4903_v62  ;;  %v9647_v7 = vcombine.high %v4919_v4, %v4935_v0  ;;  %v4696_v61 = vld [vmem:[%s14775_s15 + $0x308] sm:$0xff] }
 0x854   :  { %4560 = vmatprep.subr.bf16.mxu1 %v10869_v10  ;;  %v4965_v10 = vld [vmem:[%s14775_s15 + $0xb70] sm:$0xff]  ;;  %v4712_v62 = vld [vmem:[%s14775_s15 + $0x388] sm:$0xff] }
 0x855   :  { %8435 = vmatprep.subr.bf16.mxu0 %v9675_v9  ;;  %v4967_v9 = vld [vmem:[%s14775_s15 + $0xb80] sm:$0xff] }
 0x856   :  { %8436 = vmatpush1.bf16.msra.mxu0 %v9674_v8  ;;  %v4951_v8 = vld [vmem:[%s14775_s15 + $0xb00] sm:$0xff] }
 0x857   :  { %4561 = vmatpush1.bf16.msra.mxu1 %v10867_v11  ;;  %v4981_v11 = vld [vmem:[%s14775_s15 + $0xbf0] sm:$0xff] }
 0x858   :  { %4562 = vmatprep.subr.bf16.mxu1 %v10872_v12  ;;  %v9706_v12 = vcombine.low %v4965_v10, %v4981_v11 }
 0x85b   :  { %4563 = vmatpush1.bf16.msra.mxu1 %v10870_v13  ;;  %v9707_v13 = vcombine.high %v4965_v10, %v4981_v11  ;;  %v9646_v10 = vcombine.low %v4919_v4, %v4935_v0  ;;  %v9679_v11 = vcombine.high %v4951_v8, %v4967_v9  ;;  %v4728_v4 = vld [vmem:[%s14775_s15 + $0x408] sm:$0xff] }
 0x85c   :  { %4564 = vmatprep.subr.bf16.mxu1 %v10875_v14  ;;  %v4997_v14 = vld [vmem:[%s14775_s15 + $0xc70] sm:$0xff]  ;;  %v4744_v0 = vld [vmem:[%s14775_s15 + $0x488] sm:$0xff] }
 0x85d   :  { %8437 = vmatprep.subr.bf16.mxu0 %v9707_v13  ;;  %v4999_v13 = vld [vmem:[%s14775_s15 + $0xc80] sm:$0xff] }
 0x85e   :  { %8438 = vmatpush1.bf16.msra.mxu0 %v9706_v12  ;;  %v4983_v12 = vld [vmem:[%s14775_s15 + $0xc00] sm:$0xff] }
 0x85f   :  { %4565 = vmatpush1.bf16.msra.mxu1 %v10873_v15  ;;  %v5013_v15 = vld [vmem:[%s14775_s15 + $0xcf0] sm:$0xff] }
 0x860   :  { %4566 = vmatprep.subr.bf16.mxu1 %v10878_v16  ;;  %v9738_v16 = vcombine.low %v4997_v14, %v5013_v15 }
 0x863   :  { %4567 = vmatpush1.bf16.msra.mxu1 %v10876_v17  ;;  %v9739_v17 = vcombine.high %v4997_v14, %v5013_v15  ;;  %v9678_v14 = vcombine.low %v4951_v8, %v4967_v9  ;;  %v9711_v15 = vcombine.high %v4983_v12, %v4999_v13  ;;  %v4760_v8 = vld [vmem:[%s14775_s15 + $0x508] sm:$0xff] }
 0x864   :  { %4568 = vmatprep.subr.bf16.mxu1 %v10881_v18  ;;  %v5029_v18 = vld [vmem:[%s14775_s15 + $0xd70] sm:$0xff]  ;;  %v4776_v9 = vld [vmem:[%s14775_s15 + $0x588] sm:$0xff] }
 0x865   :  { %8439 = vmatprep.subr.bf16.mxu0 %v9739_v17  ;;  %v5031_v17 = vld [vmem:[%s14775_s15 + $0xd80] sm:$0xff] }
 0x866   :  { %8440 = vmatpush1.bf16.msra.mxu0 %v9738_v16  ;;  %v5015_v16 = vld [vmem:[%s14775_s15 + $0xd00] sm:$0xff] }
 0x867   :  { %4569 = vmatpush1.bf16.msra.mxu1 %v10879_v19  ;;  %v5045_v19 = vld [vmem:[%s14775_s15 + $0xdf0] sm:$0xff] }
 0x868   :  { %4570 = vmatprep.subr.bf16.mxu1 %v10884_v20  ;;  %v9770_v20 = vcombine.low %v5029_v18, %v5045_v19 }
 0x86b   :  { %4571 = vmatpush1.bf16.msra.mxu1 %v10882_v21  ;;  %v9771_v21 = vcombine.high %v5029_v18, %v5045_v19  ;;  %v9710_v18 = vcombine.low %v4983_v12, %v4999_v13  ;;  %v9743_v19 = vcombine.high %v5015_v16, %v5031_v17  ;;  %v4792_v12 = vld [vmem:[%s14775_s15 + $0x608] sm:$0xff] }
 0x86c   :  { %7841 = vmatprep.subr.bf16.mxu1 %v9327_v27  ;;  %v4808_v13 = vld [vmem:[%s14775_s15 + $0x688] sm:$0xff] }
 0x86d   :  { %8441 = vmatprep.subr.bf16.mxu0 %v9771_v21  ;;  %v5047_v21 = vld [vmem:[%s14775_s15 + $0xe00] sm:$0xff] }
 0x86e   :  { %8442 = vmatpush1.bf16.msra.mxu0 %v9770_v20  ;;  %v9742_v20 = vcombine.low %v5015_v16, %v5031_v17  ;;  %v4824_v16 = vld [vmem:[%s14775_s15 + $0x708] sm:$0xff] }
 0x86f   :  { %v4840_v17 = vld [vmem:[%s14775_s15 + $0x788] sm:$0xff] }
 0x921   :  { %v4440_v25 = vpop.f32.mrb[16].mxu1 }
 0x922   :  { %v4441_v27 = vadd.f32 %v9304_v22, %v4440_v25  ;;  %v9961_v28 = vpop.f32.mrb[17].mxu1  ;;  %v5063_v22 = vld [vmem:[%s14775_s15 + $0xe80] sm:$0xff] }
 0x923   :  { %v4443_v29 = vpop.f32.mrb[18].mxu1  ;;  %v9775_v25 = vcombine.high %v5047_v21, %v5063_v22  ;;  %v5077_v28 = vld [vmem:[%s14775_s15 + $0xef0] sm:$0xff] }
 0x924   :  { %v4446_v32 = vmax.f32 %v4441_v27, 0.0  ;;  %v9962_v33 = vpop.f32.mrb[19].mxu1  ;;  %v5061_v27 = vld [vmem:[%s14775_s15 + $0xe70] sm:$0xff]  ;;  %v9774_v29 = vcombine.low %v5047_v21, %v5063_v22  ;;  %v4872_v21 = vld [vmem:[%s14775_s15 + $0x888] sm:$0xff]  ;;  %v9552_v22 = vcombine.low %v4824_v16, %v4840_v17 }
 0x925   :  { %v9803_v30 = vcombine.high %v5061_v27, %v5077_v28  ;;  %v9802_v31 = vcombine.low %v5061_v27, %v5077_v28  ;;  %v5095_v33 = vld [vmem:[%s14775_s15 + $0xf80] sm:$0xff]  ;;  %v4888_v27 = vld [vmem:[%s14775_s15 + $0x908] sm:$0xff] }
 0x926   :  { %v4464_v34 = vpack.c.bf16 %v4446_v32, %v4446_v32  ;;  %v5079_v32 = vld [vmem:[%s14775_s15 + $0xf00] sm:$0xff]  ;;  %v4904_v28 = vld [vmem:[%s14775_s15 + $0x988] sm:$0xff] }
 0x927   :  { %8443 = vmatprep.subr.bf16.mxu0 %v9803_v30  ;;  %v9806_v37 = vcombine.low %v5079_v32, %v5095_v33  ;;  %v9617_v30 = vcombine.high %v4888_v27, %v4904_v28 }
 0x928   :  { %4589 = vmatmul.mubr.bf16.vlgmr.msra.gmra.mrb[20].mxu1 %v4464_v34  ;;  %8444 = vmatpush1.bf16.msra.mxu0 %v9802_v31  ;;  %v9807_v34 = vcombine.high %v5079_v32, %v5095_v33  ;;  %v4920_v31 = vld [vmem:[%s14775_s15 + $0xa08] sm:$0xff]  ;;  %v9616_v33 = vcombine.low %v4888_v27, %v4904_v28  ;;  %v4857_v28 = vld [vmem:[%s14775_s15 + $0x810] sm:$0xff] }
 0x929   :  { %7842 = vmatpush1.bf16.msra.mxu1 %v9326_v26  ;;  %v9422_v26 = vcombine.low %v4695_v40, %v4711_v41  ;;  %v4600_v40 = vld [vmem:[%s14775_s15 + $0x8] sm:$0xff] }
 0x92a   :  { %7843 = vmatprep.subr.bf16.mxu1 %v9359_v35  ;;  %v5093_v35 = vld [vmem:[%s14775_s15 + $0xf70] sm:$0xff]  ;;  %v4616_v41 = vld [vmem:[%s14775_s15 + $0x88] sm:$0xff] }
 0x92b   :  { %v4936_v32 = vld [vmem:[%s14775_s15 + $0xa88] sm:$0xff] }
 0x92d   :  { %7844 = vmatpush1.bf16.msra.mxu1 %v9358_v38  ;;  %v9835_v38 = vcombine.high %v5093_v35, %v5109_v36 }
 0x92e   :  { %7845 = vmatprep.subr.bf16.mxu1 %v9391_v39  ;;  %v9834_v39 = vcombine.low %v5093_v35, %v5109_v36  ;;  %v4952_v35 = vld [vmem:[%s14775_s15 + $0xb08] sm:$0xff] }
 0x92f   :  { %8445 = vmatprep.subr.bf16.mxu0 %v9835_v38  ;;  %v4968_v36 = vld [vmem:[%s14775_s15 + $0xb88] sm:$0xff] }
 0x930   :  { %8446 = vmatpush1.bf16.msra.mxu0 %v9834_v39  ;;  %v9681_v38 = vcombine.high %v4952_v35, %v4968_v36  ;;  %v4984_v39 = vld [vmem:[%s14775_s15 + $0xc08] sm:$0xff] }
 0x931   :  { %7846 = vmatpush1.bf16.msra.mxu1 %v9390_v42  ;;  %v9329_v42 = vcombine.high %v4600_v40, %v4616_v41 }
 0x932   :  { %7847 = vmatprep.subr.bf16.mxu1 %v9423_v43  ;;  %v9328_v43 = vcombine.low %v4600_v40, %v4616_v41  ;;  %v5000_v40 = vld [vmem:[%s14775_s15 + $0xc88] sm:$0xff]  ;;  %v9680_v41 = vcombine.low %v4952_v35, %v4968_v36  ;;  %v4921_v36 = vld [vmem:[%s14775_s15 + $0xa10] sm:$0xff] }
 0x935   :  { %7848 = vmatpush1.bf16.msra.mxu1 %v9422_v26  ;;  %v4473_v26 = vrot.slane %v4463_v23, %v12839_v5  ;;  %v5032_v23 = vld [vmem:[%s14775_s15 + $0xd88] sm:$0xff] }
 0x936   :  { %7849 = vmatprep.subr.bf16.mxu1 %v9455_v44 }
 0x939   :  { %7850 = vmatpush1.bf16.msra.mxu1 %v9454_v47 }
 0x93a   :  { %7851 = vmatprep.subr.bf16.mxu1 %v9487_v48 }
 0x93d   :  { %7852 = vmatpush1.bf16.msra.mxu1 %v9486_v51 }
 0x93e   :  { %7853 = vmatprep.subr.bf16.mxu1 %v9519_v52  ;;  %v4632_v52 = vld [vmem:[%s14775_s15 + $0x108] sm:$0xff] }
 0x941   :  { %7854 = vmatpush1.bf16.msra.mxu1 %v9518_v55 }
 0x942   :  { %7855 = vmatprep.subr.bf16.mxu1 %v9551_v56  ;;  %v9361_v56 = vcombine.high %v4632_v52, %v4648_v53 }
 0x945   :  { %7856 = vmatpush1.bf16.msra.mxu1 %v9550_v59  ;;  %v9360_v59 = vcombine.low %v4632_v52, %v4648_v53  ;;  %v4601_v52 = vld [vmem:[%s14775_s15 + $0x10] sm:$0xff] }
 0x946   :  { %7857 = vmatprep.subr.bf16.mxu1 %v9583_v60  ;;  %v9393_v60 = vcombine.high %v4664_v57, %v4680_v58  ;;  %v4617_v53 = vld [vmem:[%s14775_s15 + $0x90] sm:$0xff] }
 0x949   :  { %7858 = vmatpush1.bf16.msra.mxu1 %v9582_v63  ;;  %v9392_v63 = vcombine.low %v4664_v57, %v4680_v58  ;;  %v9331_v57 = vcombine.high %v4601_v52, %v4617_v53  ;;  %v4633_v58 = vld [vmem:[%s14775_s15 + $0x110] sm:$0xff] }
 0x94a   :  { %7859 = vmatprep.subr.bf16.mxu1 %v9615_v1  ;;  %v9425_v1 = vcombine.high %v4696_v61, %v4712_v62 }
 0x94d   :  { %7860 = vmatpush1.bf16.msra.mxu1 %v9614_v6  ;;  %v9424_v6 = vcombine.low %v4696_v61, %v4712_v62  ;;  %v4665_v62 = vld [vmem:[%s14775_s15 + $0x210] sm:$0xff] }
 0x94e   :  { %7861 = vmatprep.subr.bf16.mxu1 %v9647_v7  ;;  %v9457_v7 = vcombine.high %v4728_v4, %v4744_v0 }
 0x951   :  { %7862 = vmatpush1.bf16.msra.mxu1 %v9646_v10  ;;  %v9456_v10 = vcombine.low %v4728_v4, %v4744_v0  ;;  %v4697_v0 = vld [vmem:[%s14775_s15 + $0x310] sm:$0xff] }
 0x952   :  { %7863 = vmatprep.subr.bf16.mxu1 %v9679_v11  ;;  %v9489_v11 = vcombine.high %v4760_v8, %v4776_v9 }
 0x955   :  { %7864 = vmatpush1.bf16.msra.mxu1 %v9678_v14  ;;  %v9488_v14 = vcombine.low %v4760_v8, %v4776_v9  ;;  %v4729_v9 = vld [vmem:[%s14775_s15 + $0x410] sm:$0xff] }
 0x956   :  { %7865 = vmatprep.subr.bf16.mxu1 %v9711_v15  ;;  %v9521_v15 = vcombine.high %v4792_v12, %v4808_v13 }
 0x959   :  { %7866 = vmatpush1.bf16.msra.mxu1 %v9710_v18  ;;  %v9520_v18 = vcombine.low %v4792_v12, %v4808_v13  ;;  %v4761_v13 = vld [vmem:[%s14775_s15 + $0x510] sm:$0xff] }
 0x95a   :  { %7867 = vmatprep.subr.bf16.mxu1 %v9743_v19  ;;  %v9553_v19 = vcombine.high %v4824_v16, %v4840_v17  ;;  %v4793_v17 = vld [vmem:[%s14775_s15 + $0x610] sm:$0xff] }
 0x95d   :  { %7868 = vmatpush1.bf16.msra.mxu1 %v9742_v20  ;;  %v4856_v20 = vld [vmem:[%s14775_s15 + $0x808] sm:$0xff] }
 0x95e   :  { %7869 = vmatprep.subr.bf16.mxu1 %v9775_v25  ;;  %v9585_v25 = vcombine.high %v4856_v20, %v4872_v21 }
 0x961   :  { %7870 = vmatpush1.bf16.msra.mxu1 %v9774_v29  ;;  %v9584_v29 = vcombine.low %v4856_v20, %v4872_v21  ;;  %v4825_v21 = vld [vmem:[%s14775_s15 + $0x710] sm:$0xff] }
 0x962   :  { %7871 = vmatprep.subr.bf16.mxu1 %v9807_v34  ;;  %v9649_v34 = vcombine.high %v4920_v31, %v4936_v32 }
 0x965   :  { %7872 = vmatpush1.bf16.msra.mxu1 %v9806_v37  ;;  %v9648_v37 = vcombine.low %v4920_v31, %v4936_v32  ;;  %v4889_v32 = vld [vmem:[%s14775_s15 + $0x910] sm:$0xff] }
 0x966   :  { %7882 = vmatprep.subr.bf16.mxu1 %v9329_v42  ;;  %v9713_v42 = vcombine.high %v4984_v39, %v5000_v40 }
 0x9fb   :  { %v4590_v44 = vpop.f32.mrb[20].mxu1 }
 0x9fc   :  { %v4591_v45 = vadd.f32 %v4590_v44, %v4469_v24  ;;  %v4592_v46 = vpop.f32.mrb[21].mxu1  ;;  %v9712_v24 = vcombine.low %v4984_v39, %v5000_v40  ;;  %v5048_v44 = vld [vmem:[%s14775_s15 + $0xe08] sm:$0xff]  ;;  %v4953_v40 = vld [vmem:[%s14775_s15 + $0xb10] sm:$0xff] }
 0x9fd   :  { %v4593_v47 = vadd.f32 %v4592_v46, %v4473_v26  ;;  %v4594_v48 = vpop.f32.mrb[22].mxu1 }
 0x9fe   :  { %v4597_v49 = vmax.f32 %v4591_v45, 0.0  ;;  %v4595_v50 = vpop.f32.mrb[23].mxu1  ;;  %v5064_v45 = vld [vmem:[%s14775_s15 + $0xe88] sm:$0xff] }
 0x9ff   :  { %v4598_v51 = vmax.f32 %v4593_v47, 0.0  ;;  %v9777_v47 = vcombine.high %v5048_v44, %v5064_v45  ;;  %v5080_v48 = vld [vmem:[%s14775_s15 + $0xf08] sm:$0xff]  ;;  %v9776_v50 = vcombine.low %v5048_v44, %v5064_v45  ;;  %v5017_v45 = vld [vmem:[%s14775_s15 + $0xd10] sm:$0xff] }
 0xa00   :  { %v13205_v55 = vpack.c.bf16 %v4597_v49, %v4597_v49  ;;  %v5096_v49 = vld [vmem:[%s14775_s15 + $0xf88] sm:$0xff] }
 0xa01   :  { %v13203_v54 = vpack.c.bf16 %v4598_v51, %v4598_v51  ;;  %v9809_v51 = vcombine.high %v5080_v48, %v5096_v49 }
 0xa03   :  { %7873 = vmatprep.mubr.bf16.mxu1 %v13203_v54  ;;  %8447 = vmatprep.mubr.bf16.mxu0 %v13203_v54 }
 0xa04   :  { %7874 = vmatmul.mubr.bf16.vlgmr.msra.gmra.mrb[24].mxu1 %v13205_v55  ;;  %8448 = vmatmul.mubr.bf16.vlgmr.msra.gmra.mrb[4].mxu0 %v13205_v55 }
 0xa05   :  { %7883 = vmatpush1.bf16.msra.mxu1 %v9328_v43  ;;  %7914 = vmatprep.mubr.bf16.mxu1 %v13203_v54  ;;  %v5016_v43 = vld [vmem:[%s14775_s15 + $0xd08] sm:$0xff] }
 0xa06   :  { %7884 = vmatprep.subr.bf16.mxu1 %v9361_v56  ;;  %v9745_v26 = vcombine.high %v5016_v43, %v5032_v23  ;;  %v9744_v46 = vcombine.low %v5016_v43, %v5032_v23  ;;  %v9808_v56 = vcombine.low %v5080_v48, %v5096_v49  ;;  %v4985_v23 = vld [vmem:[%s14775_s15 + $0xc10] sm:$0xff] }
 0xa07   :  { %v5049_v49 = vld [vmem:[%s14775_s15 + $0xe10] sm:$0xff] }
 0xa09   :  { %7885 = vmatpush1.bf16.msra.mxu1 %v9360_v59  ;;  %v4649_v59 = vld [vmem:[%s14775_s15 + $0x190] sm:$0xff] }
 0xa0a   :  { %7886 = vmatprep.subr.bf16.mxu1 %v9393_v60  ;;  %v9330_v60 = vcombine.low %v4601_v52, %v4617_v53  ;;  %v9363_v61 = vcombine.high %v4633_v58, %v4649_v59  ;;  %v5081_v53 = vld [vmem:[%s14775_s15 + $0xf10] sm:$0xff] }
 0xa0d   :  { %7887 = vmatpush1.bf16.msra.mxu1 %v9392_v63  ;;  %v4681_v63 = vld [vmem:[%s14775_s15 + $0x290] sm:$0xff] }
 0xa0e   :  { %7888 = vmatprep.subr.bf16.mxu1 %v9425_v1  ;;  %v9362_v1 = vcombine.low %v4633_v58, %v4649_v59  ;;  %v9395_v4 = vcombine.high %v4665_v62, %v4681_v63  ;;  %v4602_v59 = vld [vmem:[%s14775_s15 + $0x18] sm:$0xff] }
 0xa11   :  { %7889 = vmatpush1.bf16.msra.mxu1 %v9424_v6  ;;  %v4713_v6 = vld [vmem:[%s14775_s15 + $0x390] sm:$0xff] }
 0xa12   :  { %7890 = vmatprep.subr.bf16.mxu1 %v9457_v7  ;;  %v9394_v7 = vcombine.low %v4665_v62, %v4681_v63  ;;  %v9427_v8 = vcombine.high %v4697_v0, %v4713_v6  ;;  %v4634_v63 = vld [vmem:[%s14775_s15 + $0x118] sm:$0xff] }
 0xa15   :  { %7891 = vmatpush1.bf16.msra.mxu1 %v9456_v10  ;;  %v4745_v10 = vld [vmem:[%s14775_s15 + $0x490] sm:$0xff] }
 0xa16   :  { %7892 = vmatprep.subr.bf16.mxu1 %v9489_v11  ;;  %v9426_v11 = vcombine.low %v4697_v0, %v4713_v6  ;;  %v9459_v12 = vcombine.high %v4729_v9, %v4745_v10  ;;  %v4666_v6 = vld [vmem:[%s14775_s15 + $0x218] sm:$0xff] }
 0xa19   :  { %7893 = vmatpush1.bf16.msra.mxu1 %v9488_v14  ;;  %v4777_v14 = vld [vmem:[%s14775_s15 + $0x590] sm:$0xff] }
 0xa1a   :  { %7894 = vmatprep.subr.bf16.mxu1 %v9521_v15  ;;  %v9458_v15 = vcombine.low %v4729_v9, %v4745_v10  ;;  %v9491_v16 = vcombine.high %v4761_v13, %v4777_v14  ;;  %v4698_v10 = vld [vmem:[%s14775_s15 + $0x318] sm:$0xff] }
 0xa1d   :  { %7895 = vmatpush1.bf16.msra.mxu1 %v9520_v18  ;;  %v4809_v18 = vld [vmem:[%s14775_s15 + $0x690] sm:$0xff] }
 0xa1e   :  { %7896 = vmatprep.subr.bf16.mxu1 %v9553_v19  ;;  %v9490_v19 = vcombine.low %v4761_v13, %v4777_v14  ;;  %v9523_v20 = vcombine.high %v4793_v17, %v4809_v18  ;;  %v4730_v14 = vld [vmem:[%s14775_s15 + $0x418] sm:$0xff] }
 0xa21   :  { %7897 = vmatpush1.bf16.msra.mxu1 %v9552_v22  ;;  %v4841_v22 = vld [vmem:[%s14775_s15 + $0x790] sm:$0xff] }
 0xa22   :  { %7898 = vmatprep.subr.bf16.mxu1 %v9585_v25  ;;  %v9522_v25 = vcombine.low %v4793_v17, %v4809_v18  ;;  %v9555_v27 = vcombine.high %v4825_v21, %v4841_v22  ;;  %v4762_v18 = vld [vmem:[%s14775_s15 + $0x518] sm:$0xff] }
 0xa25   :  { %7899 = vmatpush1.bf16.msra.mxu1 %v9584_v29  ;;  %v4873_v29 = vld [vmem:[%s14775_s15 + $0x890] sm:$0xff] }
 0xa26   :  { %7900 = vmatprep.subr.bf16.mxu1 %v9617_v30  ;;  %v9554_v30 = vcombine.low %v4825_v21, %v4841_v22  ;;  %v9587_v31 = vcombine.high %v4857_v28, %v4873_v29  ;;  %v4794_v22 = vld [vmem:[%s14775_s15 + $0x618] sm:$0xff] }
 0xa29   :  { %7901 = vmatpush1.bf16.msra.mxu1 %v9616_v33  ;;  %v4905_v33 = vld [vmem:[%s14775_s15 + $0x990] sm:$0xff] }
 0xa2a   :  { %7902 = vmatprep.subr.bf16.mxu1 %v9649_v34  ;;  %v9586_v34 = vcombine.low %v4857_v28, %v4873_v29  ;;  %v9619_v35 = vcombine.high %v4889_v32, %v4905_v33  ;;  %v4826_v29 = vld [vmem:[%s14775_s15 + $0x718] sm:$0xff] }
 0xa2d   :  { %7903 = vmatpush1.bf16.msra.mxu1 %v9648_v37  ;;  %v4937_v37 = vld [vmem:[%s14775_s15 + $0xa90] sm:$0xff] }
 0xa2e   :  { %7904 = vmatprep.subr.bf16.mxu1 %v9681_v38  ;;  %v9618_v38 = vcombine.low %v4889_v32, %v4905_v33  ;;  %v9651_v39 = vcombine.high %v4921_v36, %v4937_v37  ;;  %v4858_v33 = vld [vmem:[%s14775_s15 + $0x818] sm:$0xff] }
 0xa31   :  { %7905 = vmatpush1.bf16.msra.mxu1 %v9680_v41  ;;  %v4969_v41 = vld [vmem:[%s14775_s15 + $0xb90] sm:$0xff] }
 0xa32   :  { %7906 = vmatprep.subr.bf16.mxu1 %v9713_v42  ;;  %v9650_v42 = vcombine.low %v4921_v36, %v4937_v37  ;;  %v9683_v43 = vcombine.high %v4953_v40, %v4969_v41  ;;  %v4890_v37 = vld [vmem:[%s14775_s15 + $0x918] sm:$0xff] }
 0xa35   :  { %7907 = vmatpush1.bf16.msra.mxu1 %v9712_v24  ;;  %v5001_v24 = vld [vmem:[%s14775_s15 + $0xc90] sm:$0xff] }
 0xa36   :  { %7908 = vmatprep.subr.bf16.mxu1 %v9745_v26  ;;  %v9682_v26 = vcombine.low %v4953_v40, %v4969_v41  ;;  %v9715_v44 = vcombine.high %v4985_v23, %v5001_v24  ;;  %v4922_v41 = vld [vmem:[%s14775_s15 + $0xa18] sm:$0xff] }
 0xa39   :  { %7909 = vmatpush1.bf16.msra.mxu1 %v9744_v46  ;;  %v5033_v46 = vld [vmem:[%s14775_s15 + $0xd90] sm:$0xff] }
 0xa3a   :  { %7910 = vmatprep.subr.bf16.mxu1 %v9777_v47  ;;  %v9714_v47 = vcombine.low %v4985_v23, %v5001_v24  ;;  %v9747_v48 = vcombine.high %v5017_v45, %v5033_v46  ;;  %v4954_v24 = vld [vmem:[%s14775_s15 + $0xb18] sm:$0xff] }
 0xa3d   :  { %7911 = vmatpush1.bf16.msra.mxu1 %v9776_v50  ;;  %v5065_v50 = vld [vmem:[%s14775_s15 + $0xe90] sm:$0xff] }
 0xa3e   :  { %7912 = vmatprep.subr.bf16.mxu1 %v9809_v51  ;;  %v9746_v51 = vcombine.low %v5017_v45, %v5033_v46  ;;  %v9779_v52 = vcombine.high %v5049_v49, %v5065_v50  ;;  %v4986_v46 = vld [vmem:[%s14775_s15 + $0xc18] sm:$0xff] }
 0xa41   :  { %7913 = vmatpush1.bf16.msra.mxu1 %v9808_v56  ;;  %v5097_v56 = vld [vmem:[%s14775_s15 + $0xf90] sm:$0xff] }
 0xa42   :  { %7923 = vmatprep.subr.bf16.mxu1 %v9331_v57  ;;  %v9778_v57 = vcombine.low %v5049_v49, %v5065_v50  ;;  %v9811_v58 = vcombine.high %v5081_v53, %v5097_v56  ;;  %v5018_v50 = vld [vmem:[%s14775_s15 + $0xd18] sm:$0xff] }
 0xa44   :  { %7915 = vmatmul.mubr.bf16.vlgmr.msra.gmra.mrb[28].mxu1 %v13205_v55 }
 0xa45   :  { %7924 = vmatpush1.bf16.msra.mxu1 %v9330_v60  ;;  %7955 = vmatprep.mubr.bf16.mxu1 %v13203_v54  ;;  %v4618_v60 = vld [vmem:[%s14775_s15 + $0x98] sm:$0xff] }
 0xa46   :  { %7925 = vmatprep.subr.bf16.mxu1 %v9363_v61  ;;  %v9810_v61 = vcombine.low %v5081_v53, %v5097_v56  ;;  %v9333_v62 = vcombine.high %v4602_v59, %v4618_v60  ;;  %v5050_v56 = vld [vmem:[%s14775_s15 + $0xe18] sm:$0xff] }
 0xa49   :  { %7926 = vmatpush1.bf16.msra.mxu1 %v9362_v1  ;;  %v4650_v1 = vld [vmem:[%s14775_s15 + $0x198] sm:$0xff] }
 0xa4a   :  { %7927 = vmatprep.subr.bf16.mxu1 %v9395_v4  ;;  %v9332_v4 = vcombine.low %v4602_v59, %v4618_v60  ;;  %v9365_v0 = vcombine.high %v4634_v63, %v4650_v1  ;;  %v5082_v60 = vld [vmem:[%s14775_s15 + $0xf18] sm:$0xff] }
 0xa4d   :  { %7928 = vmatpush1.bf16.msra.mxu1 %v9394_v7  ;;  %v4682_v7 = vld [vmem:[%s14775_s15 + $0x298] sm:$0xff] }
 0xa4e   :  { %7929 = vmatprep.subr.bf16.mxu1 %v9427_v8  ;;  %v9364_v8 = vcombine.low %v4634_v63, %v4650_v1  ;;  %v9397_v9 = vcombine.high %v4666_v6, %v4682_v7  ;;  %v4603_v1 = vld [vmem:[%s14775_s15 + $0x20] sm:$0xff] }
 0xa51   :  { %7930 = vmatpush1.bf16.msra.mxu1 %v9426_v11  ;;  %v4714_v11 = vld [vmem:[%s14775_s15 + $0x398] sm:$0xff] }
 0xa52   :  { %7931 = vmatprep.subr.bf16.mxu1 %v9459_v12  ;;  %v9396_v12 = vcombine.low %v4666_v6, %v4682_v7  ;;  %v9429_v13 = vcombine.high %v4698_v10, %v4714_v11  ;;  %v4635_v7 = vld [vmem:[%s14775_s15 + $0x120] sm:$0xff] }
 0xa55   :  { %7932 = vmatpush1.bf16.msra.mxu1 %v9458_v15  ;;  %v4746_v15 = vld [vmem:[%s14775_s15 + $0x498] sm:$0xff] }
 0xa56   :  { %7933 = vmatprep.subr.bf16.mxu1 %v9491_v16  ;;  %v9428_v16 = vcombine.low %v4698_v10, %v4714_v11  ;;  %v9461_v17 = vcombine.high %v4730_v14, %v4746_v15  ;;  %v4667_v11 = vld [vmem:[%s14775_s15 + $0x220] sm:$0xff] }
 0xa59   :  { %7934 = vmatpush1.bf16.msra.mxu1 %v9490_v19  ;;  %v4778_v19 = vld [vmem:[%s14775_s15 + $0x598] sm:$0xff] }
 0xa5a   :  { %7935 = vmatprep.subr.bf16.mxu1 %v9523_v20  ;;  %v9460_v20 = vcombine.low %v4730_v14, %v4746_v15  ;;  %v9493_v21 = vcombine.high %v4762_v18, %v4778_v19  ;;  %v4699_v15 = vld [vmem:[%s14775_s15 + $0x320] sm:$0xff] }
 0xa5d   :  { %7936 = vmatpush1.bf16.msra.mxu1 %v9522_v25  ;;  %v4810_v25 = vld [vmem:[%s14775_s15 + $0x698] sm:$0xff] }
 0xa5e   :  { %7937 = vmatprep.subr.bf16.mxu1 %v9555_v27  ;;  %v9492_v27 = vcombine.low %v4762_v18, %v4778_v19  ;;  %v9525_v28 = vcombine.high %v4794_v22, %v4810_v25  ;;  %v4731_v19 = vld [vmem:[%s14775_s15 + $0x420] sm:$0xff] }
 0xa61   :  { %7938 = vmatpush1.bf16.msra.mxu1 %v9554_v30  ;;  %v4842_v30 = vld [vmem:[%s14775_s15 + $0x798] sm:$0xff] }
 0xa62   :  { %7939 = vmatprep.subr.bf16.mxu1 %v9587_v31  ;;  %v9524_v31 = vcombine.low %v4794_v22, %v4810_v25  ;;  %v9557_v32 = vcombine.high %v4826_v29, %v4842_v30  ;;  %v4763_v25 = vld [vmem:[%s14775_s15 + $0x520] sm:$0xff] }
 0xa65   :  { %7940 = vmatpush1.bf16.msra.mxu1 %v9586_v34  ;;  %v4874_v34 = vld [vmem:[%s14775_s15 + $0x898] sm:$0xff] }
 0xa66   :  { %7941 = vmatprep.subr.bf16.mxu1 %v9619_v35  ;;  %v9556_v35 = vcombine.low %v4826_v29, %v4842_v30  ;;  %v9589_v36 = vcombine.high %v4858_v33, %v4874_v34  ;;  %v13536_v30 = vld [vmem:[%s14778_s16] sm:$0xff] }
 0xa69   :  { %7942 = vmatpush1.bf16.msra.mxu1 %v9618_v38  ;;  %v4906_v38 = vld [vmem:[%s14775_s15 + $0x998] sm:$0xff] }
 0xa6a   :  { %7943 = vmatprep.subr.bf16.mxu1 %v9651_v39  ;;  %v9588_v39 = vcombine.low %v4858_v33, %v4874_v34  ;;  %v9621_v40 = vcombine.high %v4890_v37, %v4906_v38  ;;  %v4795_v34 = vld [vmem:[%s14775_s15 + $0x620] sm:$0xff] }
 0xa6d   :  { %7944 = vmatpush1.bf16.msra.mxu1 %v9650_v42  ;;  %v4938_v42 = vld [vmem:[%s14775_s15 + $0xa98] sm:$0xff] }
 0xa6e   :  { %7945 = vmatprep.subr.bf16.mxu1 %v9683_v43  ;;  %v9620_v43 = vcombine.low %v4890_v37, %v4906_v38  ;;  %v9653_v23 = vcombine.high %v4922_v41, %v4938_v42 }
 0xa71   :  { %7946 = vmatpush1.bf16.msra.mxu1 %v9682_v26  ;;  %v4970_v26 = vld [vmem:[%s14775_s15 + $0xb98] sm:$0xff] }
 0xa72   :  { %7947 = vmatprep.subr.bf16.mxu1 %v9715_v44  ;;  %v9652_v44 = vcombine.low %v4922_v41, %v4938_v42  ;;  %v9685_v45 = vcombine.high %v4954_v24, %v4970_v26 }
 0xa75   :  { %7948 = vmatpush1.bf16.msra.mxu1 %v9714_v47  ;;  %v5002_v47 = vld [vmem:[%s14775_s15 + $0xc98] sm:$0xff] }
 0xa76   :  { %7949 = vmatprep.subr.bf16.mxu1 %v9747_v48  ;;  %v9684_v48 = vcombine.low %v4954_v24, %v4970_v26  ;;  %v9717_v49 = vcombine.high %v4986_v46, %v5002_v47  ;;  %v4843_v24 = vld [vmem:[%s14775_s15 + $0x7a0] sm:$0xff] }
 0xa79   :  { %7950 = vmatpush1.bf16.msra.mxu1 %v9746_v51  ;;  %v5034_v51 = vld [vmem:[%s14775_s15 + $0xd98] sm:$0xff] }
 0xa7a   :  { %7951 = vmatprep.subr.bf16.mxu1 %v9779_v52  ;;  %v9716_v52 = vcombine.low %v4986_v46, %v5002_v47  ;;  %v9749_v53 = vcombine.high %v5018_v50, %v5034_v51 }
 0xa7d   :  { %7952 = vmatpush1.bf16.msra.mxu1 %v9778_v57  ;;  %v5066_v57 = vld [vmem:[%s14775_s15 + $0xe98] sm:$0xff] }
 0xa7e   :  { %7953 = vmatprep.subr.bf16.mxu1 %v9811_v58  ;;  %v9748_v58 = vcombine.low %v5018_v50, %v5034_v51  ;;  %v9781_v59 = vcombine.high %v5050_v56, %v5066_v57 }
 0xa81   :  { %7954 = vmatpush1.bf16.msra.mxu1 %v9810_v61  ;;  %v5098_v61 = vld [vmem:[%s14775_s15 + $0xf98] sm:$0xff] }
 0xa82   :  { %7964 = vmatprep.subr.bf16.mxu1 %v9333_v62  ;;  %v9780_v62 = vcombine.low %v5050_v56, %v5066_v57  ;;  %v9813_v63 = vcombine.high %v5082_v60, %v5098_v61 }
 0xa84   :  { %7956 = vmatmul.mubr.bf16.vlgmr.msra.gmra.mrb[32].mxu1 %v13205_v55 }
 0xa85   :  { %7965 = vmatpush1.bf16.msra.mxu1 %v9332_v4  ;;  %7996 = vmatprep.mubr.bf16.mxu1 %v13203_v54  ;;  %v4619_v4 = vld [vmem:[%s14775_s15 + $0xa0] sm:$0xff] }
 0xa86   :  { %7966 = vmatprep.subr.bf16.mxu1 %v9365_v0  ;;  %v9812_v0 = vcombine.low %v5082_v60, %v5098_v61  ;;  %v9335_v6 = vcombine.high %v4603_v1, %v4619_v4  ;;  %v4859_v61 = vld [vmem:[%s14775_s15 + $0x820] sm:$0xff] }
 0xa89   :  { %7967 = vmatpush1.bf16.msra.mxu1 %v9364_v8  ;;  %v4651_v8 = vld [vmem:[%s14775_s15 + $0x1a0] sm:$0xff] }
 0xa8a   :  { %7968 = vmatprep.subr.bf16.mxu1 %v9397_v9  ;;  %v9334_v9 = vcombine.low %v4603_v1, %v4619_v4  ;;  %v9367_v10 = vcombine.high %v4635_v7, %v4651_v8  ;;  %v4891_v4 = vld [vmem:[%s14775_s15 + $0x920] sm:$0xff] }
 0xa8d   :  { %7969 = vmatpush1.bf16.msra.mxu1 %v9396_v12  ;;  %v4683_v12 = vld [vmem:[%s14775_s15 + $0x2a0] sm:$0xff] }
 0xa8e   :  { %7970 = vmatprep.subr.bf16.mxu1 %v9429_v13  ;;  %v9366_v13 = vcombine.low %v4635_v7, %v4651_v8  ;;  %v9399_v14 = vcombine.high %v4667_v11, %v4683_v12  ;;  %v4923_v8 = vld [vmem:[%s14775_s15 + $0xa20] sm:$0xff] }
 0xa91   :  { %7971 = vmatpush1.bf16.msra.mxu1 %v9428_v16  ;;  %v4715_v16 = vld [vmem:[%s14775_s15 + $0x3a0] sm:$0xff] }
 0xa92   :  { %7972 = vmatprep.subr.bf16.mxu1 %v9461_v17  ;;  %v9398_v17 = vcombine.low %v4667_v11, %v4683_v12  ;;  %v9431_v18 = vcombine.high %v4699_v15, %v4715_v16 }
 0xa95   :  { %7973 = vmatpush1.bf16.msra.mxu1 %v9460_v20  ;;  %v4747_v20 = vld [vmem:[%s14775_s15 + $0x4a0] sm:$0xff] }
 0xa96   :  { %7974 = vmatprep.subr.bf16.mxu1 %v9493_v21  ;;  %v9430_v21 = vcombine.low %v4699_v15, %v4715_v16  ;;  %v9463_v22 = vcombine.high %v4731_v19, %v4747_v20  ;;  %v9462_v29 = vcombine.low %v4731_v19, %v4747_v20  ;;  %v4955_v15 = vld [vmem:[%s14775_s15 + $0xb20] sm:$0xff] }
 0xa97   :  { %v4971_v16 = vld [vmem:[%s14775_s15 + $0xba0] sm:$0xff] }
 0xa99   :  { %7975 = vmatpush1.bf16.msra.mxu1 %v9492_v27  ;;  %v4779_v27 = vld [vmem:[%s14775_s15 + $0x5a0] sm:$0xff] }
 0xa9a   :  { %7976 = vmatprep.subr.bf16.mxu1 %v9525_v28  ;;  %v13531_v28 = vsub.s32 4, %v12830_v2  ;;  %v9495_v33 = vcombine.high %v4763_v25, %v4779_v27  ;;  %v9494_v38 = vcombine.low %v4763_v25, %v4779_v27  ;;  %v9687_v25 = vcombine.high %v4955_v15, %v4971_v16  ;;  %v4987_v27 = vld [vmem:[%s14775_s15 + $0xc20] sm:$0xff] }
 0xa9d   :  { %7977 = vmatpush1.bf16.msra.mxu1 %v9524_v31  ;;  %v5114_v31 = vld [vmem:[%s14778_s16 + $0x18] sm:$0xff] }
 0xa9e   :  { %7978 = vmatprep.subr.bf16.mxu1 %v9557_v32  ;;  %v13542_v32 = vsub.s32 5, %v12830_v2  ;;  %v5236_v37 = vrot.slane %v5114_v31, %v13531_v28 }
 0xaa1   :  { %7979 = vmatpush1.bf16.msra.mxu1 %v9556_v35  ;;  %v4811_v35 = vld [vmem:[%s14775_s15 + $0x6a0] sm:$0xff] }
 0xaa2   :  { %7980 = vmatprep.subr.bf16.mxu1 %v9589_v36  ;;  %v5124_v36 = vrot.slane %v13536_v30, %v12833_v3  ;;  %v9527_v41 = vcombine.high %v4795_v34, %v4811_v35  ;;  %v9526_v51 = vcombine.low %v4795_v34, %v4811_v35  ;;  %v5019_v34 = vld [vmem:[%s14775_s15 + $0xd20] sm:$0xff] }
 0xaa3   :  { %v5035_v35 = vld [vmem:[%s14775_s15 + $0xda0] sm:$0xff] }
 0xaa5   :  { %7981 = vmatpush1.bf16.msra.mxu1 %v9588_v39  ;;  %v5128_v39 = vrot.slane %v13536_v30, %v12839_v5 }
 0xaa6   :  { %7982 = vmatprep.subr.bf16.mxu1 %v9621_v40  ;;  %v5240_v40 = vrot.slane %v5114_v31, %v13542_v32  ;;  %v9686_v31 = vcombine.low %v4955_v15, %v4971_v16  ;;  %v4812_v15 = vld [vmem:[%s14775_s15 + $0x6a8] sm:$0xff] }
 0xaa9   :  { %7983 = vmatpush1.bf16.msra.mxu1 %v9620_v43 }
 0xaaa   :  { %7984 = vmatprep.subr.bf16.mxu1 %v9653_v23  ;;  %v4827_v23 = vld [vmem:[%s14775_s15 + $0x720] sm:$0xff] }
 0xaad   :  { %7985 = vmatpush1.bf16.msra.mxu1 %v9652_v44 }
 0xaae   :  { %7986 = vmatprep.subr.bf16.mxu1 %v9685_v45 }
 0xab1   :  { %7987 = vmatpush1.bf16.msra.mxu1 %v9684_v48 }
 0xab2   :  { %7988 = vmatprep.subr.bf16.mxu1 %v9717_v49 }
 0xab5   :  { %7989 = vmatpush1.bf16.msra.mxu1 %v9716_v52 }
 0xab6   :  { %7990 = vmatprep.subr.bf16.mxu1 %v9749_v53 }
 0xab9   :  { %7991 = vmatpush1.bf16.msra.mxu1 %v9748_v58  ;;  %v9559_v58 = vcombine.high %v4827_v23, %v4843_v24 }
 0xaba   :  { %7992 = vmatprep.subr.bf16.mxu1 %v9781_v59 }
 0xabd   :  { %7993 = vmatpush1.bf16.msra.mxu1 %v9780_v62  ;;  %v4875_v62 = vld [vmem:[%s14775_s15 + $0x8a0] sm:$0xff] }
 0xabe   :  { %7994 = vmatprep.subr.bf16.mxu1 %v9813_v63  ;;  %v9558_v63 = vcombine.low %v4827_v23, %v4843_v24  ;;  %v9591_v1 = vcombine.high %v4859_v61, %v4875_v62 }
 0xac1   :  { %7995 = vmatpush1.bf16.msra.mxu1 %v9812_v0  ;;  %v4907_v0 = vld [vmem:[%s14775_s15 + $0x9a0] sm:$0xff] }
 0xac2   :  { %8005 = vmatprep.subr.bf16.mxu1 %v9335_v6  ;;  %v9590_v6 = vcombine.low %v4859_v61, %v4875_v62  ;;  %v9623_v7 = vcombine.high %v4891_v4, %v4907_v0  ;;  %v4700_v61 = vld [vmem:[%s14775_s15 + $0x328] sm:$0xff] }
 0xac3   :  { %v4716_v62 = vld [vmem:[%s14775_s15 + $0x3a8] sm:$0xff] }
 0xac4   :  { %7997 = vmatmul.mubr.bf16.vlgmr.msra.gmra.mrb[36].mxu1 %v13205_v55 }
 0xac5   :  { %8006 = vmatpush1.bf16.msra.mxu1 %v9334_v9  ;;  %8037 = vmatprep.mubr.bf16.mxu1 %v13203_v54  ;;  %v4939_v9 = vld [vmem:[%s14775_s15 + $0xaa0] sm:$0xff] }
 0xac6   :  { %8007 = vmatprep.subr.bf16.mxu1 %v9367_v10  ;;  %v9622_v10 = vcombine.low %v4891_v4, %v4907_v0  ;;  %v9655_v12 = vcombine.high %v4923_v8, %v4939_v9  ;;  %v4732_v4 = vld [vmem:[%s14775_s15 + $0x428] sm:$0xff] }
 0xac7   :  { %v4748_v0 = vld [vmem:[%s14775_s15 + $0x4a8] sm:$0xff] }
 0xac9   :  { %8008 = vmatpush1.bf16.msra.mxu1 %v9366_v13 }
 0xaca   :  { %8009 = vmatprep.subr.bf16.mxu1 %v9399_v14 }
 0xacd   :  { %8010 = vmatpush1.bf16.msra.mxu1 %v9398_v17 }
 0xace   :  { %8011 = vmatprep.subr.bf16.mxu1 %v9431_v18 }
 0xad1   :  { %8012 = vmatpush1.bf16.msra.mxu1 %v9430_v21  ;;  %v9654_v21 = vcombine.low %v4923_v8, %v4939_v9  ;;  %v4764_v8 = vld [vmem:[%s14775_s15 + $0x528] sm:$0xff] }
 0xad2   :  { %8013 = vmatprep.subr.bf16.mxu1 %v9463_v22  ;;  %v4780_v9 = vld [vmem:[%s14775_s15 + $0x5a8] sm:$0xff] }
 0xad5   :  { %8014 = vmatpush1.bf16.msra.mxu1 %v9462_v29  ;;  %v5003_v29 = vld [vmem:[%s14775_s15 + $0xca0] sm:$0xff] }
 0xad6   :  { %8015 = vmatprep.subr.bf16.mxu1 %v9495_v33  ;;  %v9719_v33 = vcombine.high %v4987_v27, %v5003_v29 }
 0xad7   :  { %v7875_v42 = vpop.f32.mrb[24].mxu1  ;;  %v8449_v43 = vpop.f32.mrb[4].mxu0 }
 0xad8   :  { %v7876_v26 = vadd.f32 %v7875_v42, %v5124_v36  ;;  %v8450_v44 = vadd.f32 %v8449_v43, %v5236_v37  ;;  %v7877_v45 = vpop.f32.mrb[25].mxu1  ;;  %v8451_v46 = vpop.f32.mrb[5].mxu0  ;;  %v9718_v36 = vcombine.low %v4987_v27, %v5003_v29  ;;  %v9751_v37 = vcombine.high %v5019_v34, %v5035_v35 }
 0xad9   :  { %v7878_v47 = vadd.f32 %v7877_v45, %v5128_v39  ;;  %8016 = vmatpush1.bf16.msra.mxu1 %v9494_v38  ;;  %v8452_v48 = vadd.f32 %v8451_v46, %v5240_v40  ;;  %v7879_v49 = vpop.f32.mrb[26].mxu1  ;;  %v8453_v50 = vpop.f32.mrb[6].mxu0  ;;  %v5051_v39 = vld [vmem:[%s14775_s15 + $0xe20] sm:$0xff]  ;;  %v9750_v43 = vcombine.low %v5019_v34, %v5035_v35 }
 0xada   :  { %v9838_v52 = vmul.f32 -1.442695, %v7876_v26  ;;  %v9866_v53 = vmul.f32 -1.442695, %v8450_v44  ;;  %v7880_v56 = vpop.f32.mrb[27].mxu1  ;;  %v8454_v57 = vpop.f32.mrb[7].mxu0  ;;  %8017 = vmatprep.subr.bf16.mxu1 %v9527_v41 }
 0xadb   :  { %v9839_v59 = vmul.f32 -1.442695, %v7878_v47  ;;  %v9867_v60 = vmul.f32 -1.442695, %v8452_v48  ;;  %v5067_v40 = vld [vmem:[%s14775_s15 + $0xea0] sm:$0xff]  ;;  %v4604_v47 = vld [vmem:[%s14775_s15 + $0x28] sm:$0xff] }
 0xadc   :  { %10885 = vpow2.f32 %v9838_v52  ;;  %v9783_v24 = vcombine.high %v5051_v39, %v5067_v40  ;;  %v5083_v26 = vld [vmem:[%s14775_s15 + $0xf20] sm:$0xff]  ;;  %v9782_v45 = vcombine.low %v5051_v39, %v5067_v40  ;;  %v4620_v48 = vld [vmem:[%s14775_s15 + $0xa8] sm:$0xff] }
 0xadd   :  { %10887 = vpow2.f32 %v9866_v53  ;;  %8018 = vmatpush1.bf16.msra.mxu1 %v9526_v51  ;;  %v5099_v44 = vld [vmem:[%s14775_s15 + $0xfa0] sm:$0xff]  ;;  %v9337_v50 = vcombine.high %v4604_v47, %v4620_v48  ;;  %v4636_v51 = vld [vmem:[%s14775_s15 + $0x128] sm:$0xff]  ;;  %v9336_v53 = vcombine.low %v4604_v47, %v4620_v48 }
 0xade   :  { %10889 = vpow2.f32 %v9839_v59  ;;  %8019 = vmatprep.subr.bf16.mxu1 %v9559_v58  ;;  %v9815_v46 = vcombine.high %v5083_v26, %v5099_v44  ;;  %v9814_v49 = vcombine.low %v5083_v26, %v5099_v44  ;;  %v4652_v52 = vld [vmem:[%s14775_s15 + $0x1a8] sm:$0xff] }
 0xadf   :  { %10891 = vpow2.f32 %v9867_v60  ;;  %v9369_v56 = vcombine.high %v4636_v51, %v4652_v52  ;;  %v4668_v57 = vld [vmem:[%s14775_s15 + $0x228] sm:$0xff]  ;;  %v9368_v59 = vcombine.low %v4636_v51, %v4652_v52 }
 0xae0   :  { %v4684_v58 = vld [vmem:[%s14775_s15 + $0x2a8] sm:$0xff] }
 0xae1   :  { %8020 = vmatpush1.bf16.msra.mxu1 %v9558_v63  ;;  %v9401_v60 = vcombine.high %v4668_v57, %v4684_v58  ;;  %v9400_v63 = vcombine.low %v4668_v57, %v4684_v58  ;;  %v4876_v39 = vld [vmem:[%s14775_s15 + $0x8a8] sm:$0xff] }
 0xae2   :  { %8021 = vmatprep.subr.bf16.mxu1 %v9591_v1  ;;  %v9433_v1 = vcombine.high %v4700_v61, %v4716_v62  ;;  %v4924_v26 = vld [vmem:[%s14775_s15 + $0xa28] sm:$0xff] }
 0xae3   :  { %v4940_v44 = vld [vmem:[%s14775_s15 + $0xaa8] sm:$0xff] }
 0xae4   :  { %v9657_v47 = vcombine.high %v4924_v26, %v4940_v44  ;;  %v4972_v51 = vld [vmem:[%s14775_s15 + $0xba8] sm:$0xff] }
 0xae5   :  { %8022 = vmatpush1.bf16.msra.mxu1 %v9590_v6  ;;  %v9432_v6 = vcombine.low %v4700_v61, %v4716_v62  ;;  %v4988_v57 = vld [vmem:[%s14775_s15 + $0xc28] sm:$0xff] }
 0xae6   :  { %v10886_v11 = vpop.eup %10885  ;;  %8023 = vmatprep.subr.bf16.mxu1 %v9623_v7  ;;  %v9465_v7 = vcombine.high %v4732_v4, %v4748_v0  ;;  %v5004_v58 = vld [vmem:[%s14775_s15 + $0xca8] sm:$0xff] }
 0xae7   :  { %v10888_v13 = vpop.eup %10887  ;;  %v8593_v14 = vadd.f32 1.0, %v10886_v11  ;;  %v9464_v11 = vcombine.low %v4732_v4, %v4748_v0  ;;  %v5020_v61 = vld [vmem:[%s14775_s15 + $0xd28] sm:$0xff] }
 0xae8   :  { %v10890_v17 = vpop.eup %10889  ;;  %v8621_v18 = vadd.f32 1.0, %v10888_v13  ;;  %v9497_v13 = vcombine.high %v4764_v8, %v4780_v9  ;;  %v5036_v62 = vld [vmem:[%s14775_s15 + $0xda8] sm:$0xff] }
 0xae9   :  { %v10892_v19 = vpop.eup %10891  ;;  %10893 = vrcp.f32 %v8593_v14  ;;  %v8594_v20 = vadd.f32 1.0, %v10890_v17  ;;  %8024 = vmatpush1.bf16.msra.mxu1 %v9622_v10  ;;  %v13661_v10 = vsub.s32 2, %v12830_v2  ;;  %v4796_v14 = vld [vmem:[%s14775_s15 + $0x628] sm:$0xff] }
 0xaea   :  { %10895 = vrcp.f32 %v8621_v18  ;;  %v8622_v22 = vadd.f32 1.0, %v10892_v19  ;;  %8025 = vmatprep.subr.bf16.mxu1 %v9655_v12  ;;  %v13664_v12 = vsub.s32 3, %v12830_v2  ;;  %v9496_v18 = vcombine.low %v4764_v8, %v4780_v9  ;;  %v5052_v0 = vld [vmem:[%s14775_s15 + $0xe28] sm:$0xff] }
 0xaeb   :  { %10897 = vrcp.f32 %v8594_v20  ;;  %v5132_v16 = vrot.slane %v13536_v30, %v13661_v10  ;;  %v9529_v19 = vcombine.high %v4796_v14, %v4812_v15  ;;  %v9752_v8 = vcombine.low %v5020_v61, %v5036_v62 }
 0xaec   :  { %10899 = vrcp.f32 %v8622_v22  ;;  %v5136_v17 = vrot.slane %v13536_v30, %v13664_v12  ;;  %v4844_v22 = vld [vmem:[%s14775_s15 + $0x7a8] sm:$0xff] }
 0xaed   :  { %8026 = vmatpush1.bf16.msra.mxu1 %v9654_v21  ;;  %v4828_v21 = vld [vmem:[%s14775_s15 + $0x728] sm:$0xff] }
 0xaee   :  { %8027 = vmatprep.subr.bf16.mxu1 %v9687_v25  ;;  %v9560_v40 = vcombine.low %v4828_v21, %v4844_v22 }
 0xaf1   :  { %8028 = vmatpush1.bf16.msra.mxu1 %v9686_v31 }
 0xaf2   :  { %8029 = vmatprep.subr.bf16.mxu1 %v9719_v33  ;;  %v9528_v33 = vcombine.low %v4796_v14, %v4812_v15 }
 0xaf3   :  { %v10894_v38 = vpop.eup %10893 }
 0xaf4   :  { %v10896_v41 = vpop.eup %10895  ;;  %8689 = vst [vmem:[%s14779_s17] sm:$0xff] %v10894_v38  ;;  %v4860_v38 = vld [vmem:[%s14775_s15 + $0x828] sm:$0xff] }
 0xaf5   :  { %v10898_v42 = vpop.eup %10897  ;;  %8717 = vst [vmem:[%s14779_s17 + $0xe0] sm:$0xff] %v10896_v41  ;;  %8030 = vmatpush1.bf16.msra.mxu1 %v9718_v36  ;;  %v9561_v36 = vcombine.high %v4828_v21, %v4844_v22  ;;  %v9593_v41 = vcombine.high %v4860_v38, %v4876_v39  ;;  %v4653_v21 = vld [vmem:[%s14775_s15 + $0x1b0] sm:$0xff] }
 0xaf6   :  { %v10900_v23 = vpop.eup %10899  ;;  %8690 = vst [vmem:[%s14779_s17 + $0x8] sm:$0xff] %v10898_v42  ;;  %8031 = vmatprep.subr.bf16.mxu1 %v9751_v37  ;;  %v4892_v42 = vld [vmem:[%s14775_s15 + $0x928] sm:$0xff] }
 0xaf7   :  { %8718 = vst [vmem:[%s14779_s17 + $0xe8] sm:$0xff] %v10900_v23  ;;  %v9592_v23 = vcombine.low %v4860_v38, %v4876_v39  ;;  %v4733_v38 = vld [vmem:[%s14775_s15 + $0x430] sm:$0xff] }
 0xaf8   :  { %v4749_v39 = vld [vmem:[%s14775_s15 + $0x4b0] sm:$0xff] }
 0xaf9   :  { %8032 = vmatpush1.bf16.msra.mxu1 %v9750_v43  ;;  %v4908_v43 = vld [vmem:[%s14775_s15 + $0x9a8] sm:$0xff] }
 0xafa   :  { %8033 = vmatprep.subr.bf16.mxu1 %v9783_v24  ;;  %v9625_v24 = vcombine.high %v4892_v42, %v4908_v43 }
 0xafd   :  { %8034 = vmatpush1.bf16.msra.mxu1 %v9782_v45  ;;  %v9624_v45 = vcombine.low %v4892_v42, %v4908_v43  ;;  %v4765_v42 = vld [vmem:[%s14775_s15 + $0x530] sm:$0xff] }
 0xafe   :  { %8035 = vmatprep.subr.bf16.mxu1 %v9815_v46  ;;  %v4781_v43 = vld [vmem:[%s14775_s15 + $0x5b0] sm:$0xff] }
 0xb01   :  { %8036 = vmatpush1.bf16.msra.mxu1 %v9814_v49 }
 0xb02   :  { %8046 = vmatprep.subr.bf16.mxu1 %v9337_v50  ;;  %v4956_v50 = vld [vmem:[%s14775_s15 + $0xb28] sm:$0xff] }
 0xb04   :  { %8038 = vmatmul.mubr.bf16.vlgmr.msra.gmra.mrb[40].mxu1 %v13205_v55 }
 0xb05   :  { %8047 = vmatpush1.bf16.msra.mxu1 %v9336_v53  ;;  %8078 = vmatprep.mubr.bf16.mxu1 %v13203_v54  ;;  %v9656_v53 = vcombine.low %v4924_v26, %v4940_v44  ;;  %v4797_v26 = vld [vmem:[%s14775_s15 + $0x630] sm:$0xff] }
 0xb06   :  { %8048 = vmatprep.subr.bf16.mxu1 %v9369_v56  ;;  %v9689_v56 = vcombine.high %v4956_v50, %v4972_v51  ;;  %v4813_v44 = vld [vmem:[%s14775_s15 + $0x6b0] sm:$0xff] }
 0xb09   :  { %8049 = vmatpush1.bf16.msra.mxu1 %v9368_v59  ;;  %v9688_v59 = vcombine.low %v4956_v50, %v4972_v51  ;;  %v4829_v50 = vld [vmem:[%s14775_s15 + $0x730] sm:$0xff] }
 0xb0a   :  { %8050 = vmatprep.subr.bf16.mxu1 %v9401_v60  ;;  %v9721_v60 = vcombine.high %v4988_v57, %v5004_v58  ;;  %v4845_v51 = vld [vmem:[%s14775_s15 + $0x7b0] sm:$0xff] }
 0xb0d   :  { %8051 = vmatpush1.bf16.msra.mxu1 %v9400_v63  ;;  %v9720_v63 = vcombine.low %v4988_v57, %v5004_v58  ;;  %v9530_v58 = vcombine.low %v4797_v26, %v4813_v44 }
 0xb0e   :  { %8052 = vmatprep.subr.bf16.mxu1 %v9433_v1  ;;  %v9753_v1 = vcombine.high %v5020_v61, %v5036_v62  ;;  %v9563_v61 = vcombine.high %v4829_v50, %v4845_v51 }
 0xb11   :  { %8053 = vmatpush1.bf16.msra.mxu1 %v9432_v6  ;;  %v5068_v6 = vld [vmem:[%s14775_s15 + $0xea8] sm:$0xff] }
 0xb12   :  { %8054 = vmatprep.subr.bf16.mxu1 %v9465_v7  ;;  %v9785_v9 = vcombine.high %v5052_v0, %v5068_v6  ;;  %v9784_v14 = vcombine.low %v5052_v0, %v5068_v6  ;;  %v4893_v6 = vld [vmem:[%s14775_s15 + $0x930] sm:$0xff] }
 0xb15   :  { %8055 = vmatpush1.bf16.msra.mxu1 %v9464_v11  ;;  %v5084_v11 = vld [vmem:[%s14775_s15 + $0xf28] sm:$0xff] }
 0xb16   :  { %8056 = vmatprep.subr.bf16.mxu1 %v9497_v13  ;;  %v5100_v13 = vld [vmem:[%s14775_s15 + $0xfa8] sm:$0xff] }
 0xb17   :  { %v7916_v20 = vpop.f32.mrb[28].mxu1  ;;  %v9817_v15 = vcombine.high %v5084_v11, %v5100_v13 }
 0xb18   :  { %v7917_v25 = vadd.f32 %v7916_v20, %v5132_v16  ;;  %v7918_v27 = vpop.f32.mrb[29].mxu1  ;;  %v4605_v16 = vld [vmem:[%s14775_s15 + $0x30] sm:$0xff] }
 0xb19   :  { %v7919_v29 = vadd.f32 %v7918_v27, %v5136_v17  ;;  %v7920_v31 = vpop.f32.mrb[30].mxu1  ;;  %8057 = vmatpush1.bf16.msra.mxu1 %v9496_v18  ;;  %v4621_v17 = vld [vmem:[%s14775_s15 + $0xb0] sm:$0xff]  ;;  %v9816_v18 = vcombine.low %v5084_v11, %v5100_v13 }
 0xb1a   :  { %v9840_v34 = vmul.f32 -1.442695, %v7917_v25  ;;  %v7921_v35 = vpop.f32.mrb[31].mxu1  ;;  %8058 = vmatprep.subr.bf16.mxu1 %v9529_v19  ;;  %v9339_v19 = vcombine.high %v4605_v16, %v4621_v17  ;;  %v4637_v20 = vld [vmem:[%s14775_s15 + $0x130] sm:$0xff]  ;;  %v9338_v22 = vcombine.low %v4605_v16, %v4621_v17 }
 0xb1b   :  { %v9841_v37 = vmul.f32 -1.442695, %v7919_v29  ;;  %v9371_v25 = vcombine.high %v4637_v20, %v4653_v21  ;;  %v4669_v27 = vld [vmem:[%s14775_s15 + $0x230] sm:$0xff]  ;;  %v9370_v31 = vcombine.low %v4637_v20, %v4653_v21 }
 0xb1c   :  { %10901 = vpow2.f32 %v9840_v34  ;;  %v4685_v29 = vld [vmem:[%s14775_s15 + $0x2b0] sm:$0xff] }
 0xb1d   :  { %10903 = vpow2.f32 %v9841_v37  ;;  %8059 = vmatpush1.bf16.msra.mxu1 %v9528_v33  ;;  %v9403_v33 = vcombine.high %v4669_v27, %v4685_v29  ;;  %v4701_v34 = vld [vmem:[%s14775_s15 + $0x330] sm:$0xff] }
 0xb1e   :  { %8060 = vmatprep.subr.bf16.mxu1 %v9561_v36  ;;  %v4717_v35 = vld [vmem:[%s14775_s15 + $0x3b0] sm:$0xff]  ;;  %v9402_v36 = vcombine.low %v4669_v27, %v4685_v29 }
 0xb1f   :  { %v9435_v37 = vcombine.high %v4701_v34, %v4717_v35  ;;  %v4925_v11 = vld [vmem:[%s14775_s15 + $0xa30] sm:$0xff] }
 0xb20   :  { %v4941_v13 = vld [vmem:[%s14775_s15 + $0xab0] sm:$0xff] }
 0xb21   :  { %8061 = vmatpush1.bf16.msra.mxu1 %v9560_v40  ;;  %v9434_v40 = vcombine.low %v4701_v34, %v4717_v35  ;;  %v9659_v16 = vcombine.high %v4925_v11, %v4941_v13  ;;  %v4973_v20 = vld [vmem:[%s14775_s15 + $0xbb0] sm:$0xff] }
 0xb22   :  { %8062 = vmatprep.subr.bf16.mxu1 %v9593_v41  ;;  %v9467_v41 = vcombine.high %v4733_v38, %v4749_v39  ;;  %v4989_v27 = vld [vmem:[%s14775_s15 + $0xc30] sm:$0xff] }
 0xb23   :  { %v5005_v29 = vld [vmem:[%s14775_s15 + $0xcb0] sm:$0xff] }
 0xb24   :  { %v5021_v34 = vld [vmem:[%s14775_s15 + $0xd30] sm:$0xff] }
 0xb25   :  { %8063 = vmatpush1.bf16.msra.mxu1 %v9592_v23  ;;  %v9466_v23 = vcombine.low %v4733_v38, %v4749_v39  ;;  %v5037_v35 = vld [vmem:[%s14775_s15 + $0xdb0] sm:$0xff] }
 0xb26   :  { %v10902_v46 = vpop.eup %10901  ;;  %8064 = vmatprep.subr.bf16.mxu1 %v9625_v24  ;;  %v9499_v24 = vcombine.high %v4765_v42, %v4781_v43  ;;  %v5053_v39 = vld [vmem:[%s14775_s15 + $0xe30] sm:$0xff] }
 0xb27   :  { %v10904_v48 = vpop.eup %10903  ;;  %v8595_v49 = vadd.f32 1.0, %v10902_v46  ;;  %v5144_v46 = vrot.slane %v13536_v30, %v13542_v32 }
 0xb28   :  { %v8596_v52 = vadd.f32 1.0, %v10904_v48  ;;  %v9531_v48 = vcombine.high %v4797_v26, %v4813_v44 }
 0xb29   :  { %10905 = vrcp.f32 %v8595_v49  ;;  %8065 = vmatpush1.bf16.msra.mxu1 %v9624_v45  ;;  %v5140_v45 = vrot.slane %v13536_v30, %v13531_v28 }
 0xb2a   :  { %10907 = vrcp.f32 %v8596_v52  ;;  %8066 = vmatprep.subr.bf16.mxu1 %v9657_v47  ;;  %v9498_v47 = vcombine.low %v4765_v42, %v4781_v43  ;;  %v9754_v42 = vcombine.low %v5021_v34, %v5037_v35 }
 0xb2d   :  { %8067 = vmatpush1.bf16.msra.mxu1 %v9656_v53 }
 0xb2e   :  { %8068 = vmatprep.subr.bf16.mxu1 %v9689_v56 }
 0xb31   :  { %8069 = vmatpush1.bf16.msra.mxu1 %v9688_v59 }
 0xb32   :  { %8070 = vmatprep.subr.bf16.mxu1 %v9721_v60 }
 0xb33   :  { %v10906_v4 = vpop.eup %10905 }
 0xb34   :  { %v10908_v7 = vpop.eup %10907  ;;  %8691 = vst [vmem:[%s14779_s17 + $0x10] sm:$0xff] %v10906_v4  ;;  %v9562_v4 = vcombine.low %v4829_v50, %v4845_v51  ;;  %v4654_v50 = vld [vmem:[%s14775_s15 + $0x1b8] sm:$0xff] }
 0xb35   :  { %8692 = vst [vmem:[%s14779_s17 + $0x18] sm:$0xff] %v10908_v7  ;;  %8071 = vmatpush1.bf16.msra.mxu1 %v9720_v63  ;;  %v4861_v63 = vld [vmem:[%s14775_s15 + $0x830] sm:$0xff] }
 0xb36   :  { %8072 = vmatprep.subr.bf16.mxu1 %v9753_v1  ;;  %v4877_v1 = vld [vmem:[%s14775_s15 + $0x8b0] sm:$0xff] }
 0xb37   :  { %v9595_v0 = vcombine.high %v4861_v63, %v4877_v1  ;;  %v4909_v7 = vld [vmem:[%s14775_s15 + $0x9b0] sm:$0xff] }
 0xb39   :  { %8073 = vmatpush1.bf16.msra.mxu1 %v9752_v8  ;;  %v9594_v8 = vcombine.low %v4861_v63, %v4877_v1  ;;  %v4734_v63 = vld [vmem:[%s14775_s15 + $0x438] sm:$0xff] }
 0xb3a   :  { %8074 = vmatprep.subr.bf16.mxu1 %v9785_v9  ;;  %v9627_v9 = vcombine.high %v4893_v6, %v4909_v7  ;;  %v4750_v1 = vld [vmem:[%s14775_s15 + $0x4b8] sm:$0xff] }
 0xb3d   :  { %8075 = vmatpush1.bf16.msra.mxu1 %v9784_v14  ;;  %v9626_v14 = vcombine.low %v4893_v6, %v4909_v7  ;;  %v4766_v6 = vld [vmem:[%s14775_s15 + $0x538] sm:$0xff] }
 0xb3e   :  { %8076 = vmatprep.subr.bf16.mxu1 %v9817_v15  ;;  %v4782_v7 = vld [vmem:[%s14775_s15 + $0x5b8] sm:$0xff] }
 0xb41   :  { %8077 = vmatpush1.bf16.msra.mxu1 %v9816_v18 }
 0xb42   :  { %8087 = vmatprep.subr.bf16.mxu1 %v9339_v19  ;;  %v4957_v19 = vld [vmem:[%s14775_s15 + $0xb30] sm:$0xff] }
 0xb44   :  { %8079 = vmatmul.mubr.bf16.vlgmr.msra.gmra.mrb[44].mxu1 %v13205_v55 }
 0xb45   :  { %8088 = vmatpush1.bf16.msra.mxu1 %v9338_v22  ;;  %8119 = vmatprep.mubr.bf16.mxu1 %v13203_v54  ;;  %v9658_v22 = vcombine.low %v4925_v11, %v4941_v13  ;;  %v13886_v11 = vsub.s32 7, %v12830_v2  ;;  %v9501_v13 = vcombine.high %v4766_v6, %v4782_v7 }
 0xb46   :  { %8089 = vmatprep.subr.bf16.mxu1 %v9371_v25  ;;  %v9691_v25 = vcombine.high %v4957_v19, %v4973_v20 }
 0xb49   :  { %8090 = vmatpush1.bf16.msra.mxu1 %v9370_v31  ;;  %v9690_v31 = vcombine.low %v4957_v19, %v4973_v20  ;;  %v4830_v20 = vld [vmem:[%s14775_s15 + $0x738] sm:$0xff] }
 0xb4a   :  { %8091 = vmatprep.subr.bf16.mxu1 %v9403_v33  ;;  %v9723_v33 = vcombine.high %v4989_v27, %v5005_v29 }
 0xb4d   :  { %8092 = vmatpush1.bf16.msra.mxu1 %v9402_v36  ;;  %v9722_v36 = vcombine.low %v4989_v27, %v5005_v29 }
 0xb4e   :  { %8093 = vmatprep.subr.bf16.mxu1 %v9435_v37  ;;  %v9755_v37 = vcombine.high %v5021_v34, %v5037_v35 }
 0xb51   :  { %8094 = vmatpush1.bf16.msra.mxu1 %v9434_v40  ;;  %v5069_v40 = vld [vmem:[%s14775_s15 + $0xeb0] sm:$0xff] }
 0xb52   :  { %8095 = vmatprep.subr.bf16.mxu1 %v9467_v41  ;;  %v9787_v43 = vcombine.high %v5053_v39, %v5069_v40  ;;  %v9786_v26 = vcombine.low %v5053_v39, %v5069_v40  ;;  %v4894_v40 = vld [vmem:[%s14775_s15 + $0x938] sm:$0xff] }
 0xb55   :  { %8096 = vmatpush1.bf16.msra.mxu1 %v9466_v23  ;;  %v5085_v23 = vld [vmem:[%s14775_s15 + $0xf30] sm:$0xff] }
 0xb56   :  { %8097 = vmatprep.subr.bf16.mxu1 %v9499_v24  ;;  %v5101_v24 = vld [vmem:[%s14775_s15 + $0xfb0] sm:$0xff] }
 0xb57   :  { %v7957_v49 = vpop.f32.mrb[32].mxu1  ;;  %v9819_v44 = vcombine.high %v5085_v23, %v5101_v24 }
 0xb58   :  { %v7958_v52 = vadd.f32 %v7957_v49, %v5140_v45  ;;  %v7959_v53 = vpop.f32.mrb[33].mxu1  ;;  %v4606_v45 = vld [vmem:[%s14775_s15 + $0x38] sm:$0xff] }
 0xb59   :  { %v7960_v56 = vadd.f32 %v7959_v53, %v5144_v46  ;;  %v7961_v57 = vpop.f32.mrb[34].mxu1  ;;  %8098 = vmatpush1.bf16.msra.mxu1 %v9498_v47  ;;  %v4622_v46 = vld [vmem:[%s14775_s15 + $0xb8] sm:$0xff]  ;;  %v9818_v47 = vcombine.low %v5085_v23, %v5101_v24 }
 0xb5a   :  { %v9842_v59 = vmul.f32 -1.442695, %v7958_v52  ;;  %v7962_v60 = vpop.f32.mrb[35].mxu1  ;;  %8099 = vmatprep.subr.bf16.mxu1 %v9531_v48  ;;  %v9341_v48 = vcombine.high %v4606_v45, %v4622_v46  ;;  %v4638_v49 = vld [vmem:[%s14775_s15 + $0x138] sm:$0xff]  ;;  %v9340_v51 = vcombine.low %v4606_v45, %v4622_v46 }
 0xb5b   :  { %v9843_v62 = vmul.f32 -1.442695, %v7960_v56  ;;  %v9373_v52 = vcombine.high %v4638_v49, %v4654_v50  ;;  %v4670_v53 = vld [vmem:[%s14775_s15 + $0x238] sm:$0xff]  ;;  %v9372_v57 = vcombine.low %v4638_v49, %v4654_v50 }
 0xb5c   :  { %10909 = vpow2.f32 %v9842_v59  ;;  %v4686_v56 = vld [vmem:[%s14775_s15 + $0x2b8] sm:$0xff] }
 0xb5d   :  { %10911 = vpow2.f32 %v9843_v62  ;;  %8100 = vmatpush1.bf16.msra.mxu1 %v9530_v58  ;;  %v9405_v58 = vcombine.high %v4670_v53, %v4686_v56  ;;  %v4702_v59 = vld [vmem:[%s14775_s15 + $0x338] sm:$0xff] }
 0xb5e   :  { %8101 = vmatprep.subr.bf16.mxu1 %v9563_v61  ;;  %v4718_v60 = vld [vmem:[%s14775_s15 + $0x3b8] sm:$0xff]  ;;  %v9404_v61 = vcombine.low %v4670_v53, %v4686_v56 }
 0xb5f   :  { %v9437_v62 = vcombine.high %v4702_v59, %v4718_v60  ;;  %v4926_v23 = vld [vmem:[%s14775_s15 + $0xa38] sm:$0xff] }
 0xb60   :  { %v4942_v24 = vld [vmem:[%s14775_s15 + $0xab8] sm:$0xff] }
 0xb61   :  { %8102 = vmatpush1.bf16.msra.mxu1 %v9562_v4  ;;  %v9436_v4 = vcombine.low %v4702_v59, %v4718_v60  ;;  %v9661_v45 = vcombine.high %v4926_v23, %v4942_v24  ;;  %v4974_v49 = vld [vmem:[%s14775_s15 + $0xbb8] sm:$0xff] }
 0xb62   :  { %8103 = vmatprep.subr.bf16.mxu1 %v9595_v0  ;;  %v9469_v0 = vcombine.high %v4734_v63, %v4750_v1  ;;  %v4990_v53 = vld [vmem:[%s14775_s15 + $0xc38] sm:$0xff] }
 0xb63   :  { %v5006_v56 = vld [vmem:[%s14775_s15 + $0xcb8] sm:$0xff] }
 0xb64   :  { %v5022_v59 = vld [vmem:[%s14775_s15 + $0xd38] sm:$0xff] }
 0xb65   :  { %8104 = vmatpush1.bf16.msra.mxu1 %v9594_v8  ;;  %v13883_v8 = vsub.s32 6, %v12830_v2  ;;  %v5038_v60 = vld [vmem:[%s14775_s15 + $0xdb8] sm:$0xff] }
 0xb66   :  { %v10910_v15 = vpop.eup %10909  ;;  %8105 = vmatprep.subr.bf16.mxu1 %v9627_v9  ;;  %v9468_v9 = vcombine.low %v4734_v63, %v4750_v1  ;;  %v5054_v1 = vld [vmem:[%s14775_s15 + $0xe38] sm:$0xff] }
 0xb67   :  { %v10912_v17 = vpop.eup %10911  ;;  %v8597_v18 = vadd.f32 1.0, %v10910_v15  ;;  %v4814_v15 = vld [vmem:[%s14775_s15 + $0x6b8] sm:$0xff] }
 0xb68   :  { %v8598_v21 = vadd.f32 1.0, %v10912_v17  ;;  %v5152_v17 = vrot.slane %v13536_v30, %v13886_v11 }
 0xb69   :  { %10913 = vrcp.f32 %v8597_v18  ;;  %8106 = vmatpush1.bf16.msra.mxu1 %v9626_v14  ;;  %v4798_v14 = vld [vmem:[%s14775_s15 + $0x638] sm:$0xff]  ;;  %v9500_v18 = vcombine.low %v4766_v6, %v4782_v7  ;;  %v9756_v6 = vcombine.low %v5022_v59, %v5038_v60 }
 0xb6a   :  { %10915 = vrcp.f32 %v8598_v21  ;;  %8107 = vmatprep.subr.bf16.mxu1 %v9659_v16  ;;  %v5148_v16 = vrot.slane %v13536_v30, %v13883_v8  ;;  %v9533_v2 = vcombine.high %v4798_v14, %v4814_v15  ;;  %v4846_v21 = vld [vmem:[%s14775_s15 + $0x7b8] sm:$0xff] }
 0xb6b   :  { %v9565_v34 = vcombine.high %v4830_v20, %v4846_v21 }
 0xb6d   :  { %8108 = vmatpush1.bf16.msra.mxu1 %v9658_v22 }
 0xb6e   :  { %8109 = vmatprep.subr.bf16.mxu1 %v9691_v25 }
 0xb71   :  { %8110 = vmatpush1.bf16.msra.mxu1 %v9690_v31  ;;  %v9532_v31 = vcombine.low %v4798_v14, %v4814_v15 }
 0xb72   :  { %8111 = vmatprep.subr.bf16.mxu1 %v9723_v33 }
 0xb73   :  { %v10914_v38 = vpop.eup %10913 }
 0xb74   :  { %v10916_v41 = vpop.eup %10915  ;;  %8693 = vst [vmem:[%s14779_s17 + $0x20] sm:$0xff] %v10914_v38  ;;  %v9564_v38 = vcombine.low %v4830_v20, %v4846_v21  ;;  %v4655_v20 = vld [vmem:[%s14775_s15 + $0x1c0] sm:$0xff] }
 0xb75   :  { %8694 = vst [vmem:[%s14779_s17 + $0x28] sm:$0xff] %v10916_v41  ;;  %8112 = vmatpush1.bf16.msra.mxu1 %v9722_v36  ;;  %v4862_v36 = vld [vmem:[%s14775_s15 + $0x838] sm:$0xff] }
 0xb76   :  { %8113 = vmatprep.subr.bf16.mxu1 %v9755_v37  ;;  %v4878_v37 = vld [vmem:[%s14775_s15 + $0x8b8] sm:$0xff] }
 0xb77   :  { %v9597_v39 = vcombine.high %v4862_v36, %v4878_v37  ;;  %v4910_v41 = vld [vmem:[%s14775_s15 + $0x9b8] sm:$0xff] }
 0xb79   :  { %8114 = vmatpush1.bf16.msra.mxu1 %v9754_v42  ;;  %v9596_v42 = vcombine.low %v4862_v36, %v4878_v37  ;;  %v4735_v36 = vld [vmem:[%s14775_s15 + $0x440] sm:$0xff] }
 0xb7a   :  { %8115 = vmatprep.subr.bf16.mxu1 %v9787_v43  ;;  %v9629_v43 = vcombine.high %v4894_v40, %v4910_v41  ;;  %v4751_v37 = vld [vmem:[%s14775_s15 + $0x4c0] sm:$0xff] }
 0xb7d   :  { %8116 = vmatpush1.bf16.msra.mxu1 %v9786_v26  ;;  %v9628_v26 = vcombine.low %v4894_v40, %v4910_v41  ;;  %v4767_v40 = vld [vmem:[%s14775_s15 + $0x540] sm:$0xff] }
 0xb7e   :  { %8117 = vmatprep.subr.bf16.mxu1 %v9819_v44  ;;  %v4783_v41 = vld [vmem:[%s14775_s15 + $0x5c0] sm:$0xff] }
 0xb81   :  { %8118 = vmatpush1.bf16.msra.mxu1 %v9818_v47 }
 0xb82   :  { %8128 = vmatprep.subr.bf16.mxu1 %v9341_v48  ;;  %v4958_v48 = vld [vmem:[%s14775_s15 + $0xb38] sm:$0xff] }
 0xb84   :  { %8120 = vmatmul.mubr.bf16.vlgmr.msra.gmra.mrb[48].mxu1 %v13205_v55 }
 0xb85   :  { %8129 = vmatpush1.bf16.msra.mxu1 %v9340_v51  ;;  %8160 = vmatprep.mubr.bf16.mxu1 %v13203_v54  ;;  %v9660_v51 = vcombine.low %v4926_v23, %v4942_v24  ;;  %v9503_v23 = vcombine.high %v4767_v40, %v4783_v41  ;;  %v4799_v24 = vld [vmem:[%s14775_s15 + $0x640] sm:$0xff] }
 0xb86   :  { %8130 = vmatprep.subr.bf16.mxu1 %v9373_v52  ;;  %v9693_v52 = vcombine.high %v4958_v48, %v4974_v49 }
 0xb89   :  { %8131 = vmatpush1.bf16.msra.mxu1 %v9372_v57  ;;  %v9692_v57 = vcombine.low %v4958_v48, %v4974_v49  ;;  %v4831_v49 = vld [vmem:[%s14775_s15 + $0x740] sm:$0xff] }
 0xb8a   :  { %8132 = vmatprep.subr.bf16.mxu1 %v9405_v58  ;;  %v9725_v58 = vcombine.high %v4990_v53, %v5006_v56 }
 0xb8d   :  { %8133 = vmatpush1.bf16.msra.mxu1 %v9404_v61  ;;  %v9724_v61 = vcombine.low %v4990_v53, %v5006_v56 }
 0xb8e   :  { %8134 = vmatprep.subr.bf16.mxu1 %v9437_v62  ;;  %v9757_v62 = vcombine.high %v5022_v59, %v5038_v60 }
 0xb91   :  { %8135 = vmatpush1.bf16.msra.mxu1 %v9436_v4  ;;  %v5070_v4 = vld [vmem:[%s14775_s15 + $0xeb8] sm:$0xff] }
 0xb92   :  { %8136 = vmatprep.subr.bf16.mxu1 %v9469_v0  ;;  %v9789_v7 = vcombine.high %v5054_v1, %v5070_v4  ;;  %v9788_v14 = vcombine.low %v5054_v1, %v5070_v4 }
 0xb95   :  { %8137 = vmatpush1.bf16.msra.mxu1 %v9468_v9  ;;  %v5086_v9 = vld [vmem:[%s14775_s15 + $0xf38] sm:$0xff] }
 0xb96   :  { %8138 = vmatprep.subr.bf16.mxu1 %v9501_v13  ;;  %v5102_v13 = vld [vmem:[%s14775_s15 + $0xfb8] sm:$0xff] }
 0xb97   :  { %v7998_v19 = vpop.f32.mrb[36].mxu1  ;;  %v9821_v15 = vcombine.high %v5086_v9, %v5102_v13 }
 0xb98   :  { %v7999_v22 = vadd.f32 %v7998_v19, %v5148_v16  ;;  %v8000_v25 = vpop.f32.mrb[37].mxu1  ;;  %v4607_v16 = vld [vmem:[%s14775_s15 + $0x40] sm:$0xff] }
 0xb99   :  { %v8001_v27 = vadd.f32 %v8000_v25, %v5152_v17  ;;  %v8002_v29 = vpop.f32.mrb[38].mxu1  ;;  %8139 = vmatpush1.bf16.msra.mxu1 %v9500_v18  ;;  %v4623_v17 = vld [vmem:[%s14775_s15 + $0xc0] sm:$0xff]  ;;  %v9820_v18 = vcombine.low %v5086_v9, %v5102_v13 }
 0xb9a   :  { %v9844_v33 = vmul.f32 -1.442695, %v7999_v22  ;;  %v8003_v30 = vpop.f32.mrb[39].mxu1  ;;  %8140 = vmatprep.subr.bf16.mxu1 %v9533_v2  ;;  %v9343_v2 = vcombine.high %v4607_v16, %v4623_v17  ;;  %v4639_v19 = vld [vmem:[%s14775_s15 + $0x140] sm:$0xff]  ;;  %v9342_v21 = vcombine.low %v4607_v16, %v4623_v17 }
 0xb9b   :  { %v9845_v35 = vmul.f32 -1.442695, %v8001_v27  ;;  %v9375_v22 = vcombine.high %v4639_v19, %v4655_v20  ;;  %v4671_v25 = vld [vmem:[%s14775_s15 + $0x240] sm:$0xff]  ;;  %v9374_v29 = vcombine.low %v4639_v19, %v4655_v20 }
 0xb9c   :  { %10917 = vpow2.f32 %v9844_v33  ;;  %v4687_v27 = vld [vmem:[%s14775_s15 + $0x2c0] sm:$0xff] }
 0xb9d   :  { %10919 = vpow2.f32 %v9845_v35  ;;  %8141 = vmatpush1.bf16.msra.mxu1 %v9532_v31  ;;  %v9407_v31 = vcombine.high %v4671_v25, %v4687_v27  ;;  %v4703_v33 = vld [vmem:[%s14775_s15 + $0x340] sm:$0xff] }
 0xb9e   :  { %8142 = vmatprep.subr.bf16.mxu1 %v9565_v34  ;;  %v4719_v30 = vld [vmem:[%s14775_s15 + $0x3c0] sm:$0xff]  ;;  %v9406_v34 = vcombine.low %v4671_v25, %v4687_v27 }
 0xb9f   :  { %v9439_v35 = vcombine.high %v4703_v33, %v4719_v30  ;;  %v4927_v13 = vld [vmem:[%s14775_s15 + $0xa40] sm:$0xff] }
 0xba0   :  { %v4959_v19 = vld [vmem:[%s14775_s15 + $0xb40] sm:$0xff] }
 0xba1   :  { %8143 = vmatpush1.bf16.msra.mxu1 %v9564_v38  ;;  %v9438_v38 = vcombine.low %v4703_v33, %v4719_v30  ;;  %v4975_v20 = vld [vmem:[%s14775_s15 + $0xbc0] sm:$0xff] }
 0xba2   :  { %8144 = vmatprep.subr.bf16.mxu1 %v9597_v39  ;;  %v9471_v39 = vcombine.high %v4735_v36, %v4751_v37  ;;  %v9695_v25 = vcombine.high %v4959_v19, %v4975_v20  ;;  %v4991_v27 = vld [vmem:[%s14775_s15 + $0xc40] sm:$0xff] }
 0xba3   :  { %v5023_v30 = vld [vmem:[%s14775_s15 + $0xd40] sm:$0xff] }
 0xba5   :  { %8145 = vmatpush1.bf16.msra.mxu1 %v9596_v42  ;;  %v9470_v42 = vcombine.low %v4735_v36, %v4751_v37 }
 0xba6   :  { %v10918_v44 = vpop.eup %10917  ;;  %8146 = vmatprep.subr.bf16.mxu1 %v9629_v43  ;;  %v13999_v43 = vld [vmem:[%s14778_s16 + $0x8] sm:$0xff] }
 0xba7   :  { %v10920_v46 = vpop.eup %10919  ;;  %v8599_v47 = vadd.f32 1.0, %v10918_v44  ;;  %v5156_v44 = vrot.slane %v13999_v43, %v12833_v3 }
 0xba8   :  { %v8600_v50 = vadd.f32 1.0, %v10920_v46  ;;  %v9502_v46 = vcombine.low %v4767_v40, %v4783_v41 }
 0xba9   :  { %10921 = vrcp.f32 %v8599_v47  ;;  %8147 = vmatpush1.bf16.msra.mxu1 %v9628_v26  ;;  %v4815_v26 = vld [vmem:[%s14775_s15 + $0x6c0] sm:$0xff] }
 0xbaa   :  { %10923 = vrcp.f32 %v8600_v50  ;;  %8148 = vmatprep.subr.bf16.mxu1 %v9661_v45  ;;  %v5160_v45 = vrot.slane %v13999_v43, %v12839_v5  ;;  %v9535_v47 = vcombine.high %v4799_v24, %v4815_v26  ;;  %v4847_v50 = vld [vmem:[%s14775_s15 + $0x7c0] sm:$0xff] }
 0xbab   :  { %v9567_v60 = vcombine.high %v4831_v49, %v4847_v50  ;;  %v9566_v1 = vcombine.low %v4831_v49, %v4847_v50  ;;  %v4640_v49 = vld [vmem:[%s14775_s15 + $0x148] sm:$0xff] }
 0xbac   :  { %v4656_v50 = vld [vmem:[%s14775_s15 + $0x1c8] sm:$0xff] }
 0xbad   :  { %8149 = vmatpush1.bf16.msra.mxu1 %v9660_v51 }
 0xbae   :  { %8150 = vmatprep.subr.bf16.mxu1 %v9693_v52 }
 0xbb1   :  { %8151 = vmatpush1.bf16.msra.mxu1 %v9692_v57  ;;  %v9534_v57 = vcombine.low %v4799_v24, %v4815_v26  ;;  %v5103_v24 = vld [vmem:[%s14775_s15 + $0xfc0] sm:$0xff] }
 0xbb2   :  { %8152 = vmatprep.subr.bf16.mxu1 %v9725_v58 }
 0xbb3   :  { %v10922_v63 = vpop.eup %10921 }
 0xbb4   :  { %v10924_v0 = vpop.eup %10923  ;;  %8695 = vst [vmem:[%s14779_s17 + $0x30] sm:$0xff] %v10922_v63  ;;  %v4879_v63 = vld [vmem:[%s14775_s15 + $0x8c0] sm:$0xff] }
 0xbb5   :  { %8696 = vst [vmem:[%s14779_s17 + $0x38] sm:$0xff] %v10924_v0  ;;  %8153 = vmatpush1.bf16.msra.mxu1 %v9724_v61  ;;  %v4895_v0 = vld [vmem:[%s14775_s15 + $0x940] sm:$0xff] }
 0xbb6   :  { %8154 = vmatprep.subr.bf16.mxu1 %v9757_v62  ;;  %v4863_v62 = vld [vmem:[%s14775_s15 + $0x840] sm:$0xff] }
 0xbb7   :  { %v9599_v4 = vcombine.high %v4863_v62, %v4879_v63 }
 0xbb9   :  { %8155 = vmatpush1.bf16.msra.mxu1 %v9756_v6  ;;  %v4911_v6 = vld [vmem:[%s14775_s15 + $0x9c0] sm:$0xff] }
 0xbba   :  { %8156 = vmatprep.subr.bf16.mxu1 %v9789_v7  ;;  %v9598_v7 = vcombine.low %v4863_v62, %v4879_v63  ;;  %v9631_v9 = vcombine.high %v4895_v0, %v4911_v6  ;;  %v4736_v63 = vld [vmem:[%s14775_s15 + $0x448] sm:$0xff] }
 0xbbd   :  { %8157 = vmatpush1.bf16.msra.mxu1 %v9788_v14  ;;  %v4943_v14 = vld [vmem:[%s14775_s15 + $0xac0] sm:$0xff] }
 0xbbe   :  { %8158 = vmatprep.subr.bf16.mxu1 %v9821_v15  ;;  %v9630_v15 = vcombine.low %v4895_v0, %v4911_v6  ;;  %v9663_v17 = vcombine.high %v4927_v13, %v4943_v14  ;;  %v4768_v6 = vld [vmem:[%s14775_s15 + $0x548] sm:$0xff] }
 0xbc1   :  { %8159 = vmatpush1.bf16.msra.mxu1 %v9820_v18 }
 0xbc2   :  { %8169 = vmatprep.subr.bf16.mxu1 %v9343_v2 }
 0xbc4   :  { %8161 = vmatmul.mubr.bf16.vlgmr.msra.gmra.mrb[52].mxu1 %v13205_v55 }
 0xbc5   :  { %8170 = vmatpush1.bf16.msra.mxu1 %v9342_v21  ;;  %8201 = vmatprep.mubr.bf16.mxu1 %v13203_v54 }
 0xbc6   :  { %8171 = vmatprep.subr.bf16.mxu1 %v9375_v22  ;;  %v9662_v22 = vcombine.low %v4927_v13, %v4943_v14  ;;  %v4800_v14 = vld [vmem:[%s14775_s15 + $0x648] sm:$0xff] }
 0xbc9   :  { %8172 = vmatpush1.bf16.msra.mxu1 %v9374_v29  ;;  %v5007_v29 = vld [vmem:[%s14775_s15 + $0xcc0] sm:$0xff] }
 0xbca   :  { %8173 = vmatprep.subr.bf16.mxu1 %v9407_v31  ;;  %v9694_v31 = vcombine.low %v4959_v19, %v4975_v20  ;;  %v9727_v33 = vcombine.high %v4991_v27, %v5007_v29  ;;  %v4832_v20 = vld [vmem:[%s14775_s15 + $0x748] sm:$0xff] }
 0xbcd   :  { %8174 = vmatpush1.bf16.msra.mxu1 %v9406_v34  ;;  %v5039_v34 = vld [vmem:[%s14775_s15 + $0xdc0] sm:$0xff] }
 0xbce   :  { %8175 = vmatprep.subr.bf16.mxu1 %v9439_v35  ;;  %v9726_v35 = vcombine.low %v4991_v27, %v5007_v29  ;;  %v9759_v36 = vcombine.high %v5023_v30, %v5039_v34  ;;  %v9758_v41 = vcombine.low %v5023_v30, %v5039_v34 }
 0xbd1   :  { %8176 = vmatpush1.bf16.msra.mxu1 %v9438_v38  ;;  %v5055_v38 = vld [vmem:[%s14775_s15 + $0xe40] sm:$0xff] }
 0xbd2   :  { %8177 = vmatprep.subr.bf16.mxu1 %v9471_v39  ;;  %v5071_v39 = vld [vmem:[%s14775_s15 + $0xec0] sm:$0xff] }
 0xbd3   :  { %v9790_v26 = vcombine.low %v5055_v38, %v5071_v39 }
 0xbd5   :  { %8178 = vmatpush1.bf16.msra.mxu1 %v9470_v42  ;;  %v9791_v42 = vcombine.high %v5055_v38, %v5071_v39 }
 0xbd6   :  { %8179 = vmatprep.subr.bf16.mxu1 %v9503_v23  ;;  %v5087_v23 = vld [vmem:[%s14775_s15 + $0xf40] sm:$0xff] }
 0xbd7   :  { %v8039_v48 = vpop.f32.mrb[40].mxu1 }
 0xbd8   :  { %v8040_v51 = vadd.f32 %v8039_v48, %v5156_v44  ;;  %v8041_v52 = vpop.f32.mrb[41].mxu1  ;;  %v9823_v44 = vcombine.high %v5087_v23, %v5103_v24 }
 0xbd9   :  { %v8042_v53 = vadd.f32 %v8041_v52, %v5160_v45  ;;  %v8043_v56 = vpop.f32.mrb[42].mxu1  ;;  %8180 = vmatpush1.bf16.msra.mxu1 %v9502_v46  ;;  %v4608_v45 = vld [vmem:[%s14775_s15 + $0x48] sm:$0xff]  ;;  %v9377_v52 = vcombine.high %v4640_v49, %v4656_v50 }
 0xbda   :  { %v9846_v58 = vmul.f32 -1.442695, %v8040_v51  ;;  %v8044_v59 = vpop.f32.mrb[43].mxu1  ;;  %8181 = vmatprep.subr.bf16.mxu1 %v9535_v47  ;;  %v4624_v46 = vld [vmem:[%s14775_s15 + $0xc8] sm:$0xff]  ;;  %v9822_v47 = vcombine.low %v5087_v23, %v5103_v24 }
 0xbdb   :  { %v9847_v61 = vmul.f32 -1.442695, %v8042_v53  ;;  %v9345_v48 = vcombine.high %v4608_v45, %v4624_v46  ;;  %v9344_v51 = vcombine.low %v4608_v45, %v4624_v46  ;;  %v4672_v53 = vld [vmem:[%s14775_s15 + $0x248] sm:$0xff] }
 0xbdc   :  { %10925 = vpow2.f32 %v9846_v58  ;;  %v4688_v56 = vld [vmem:[%s14775_s15 + $0x2c8] sm:$0xff] }
 0xbdd   :  { %10927 = vpow2.f32 %v9847_v61  ;;  %8182 = vmatpush1.bf16.msra.mxu1 %v9534_v57  ;;  %v9376_v57 = vcombine.low %v4640_v49, %v4656_v50  ;;  %v9409_v58 = vcombine.high %v4672_v53, %v4688_v56  ;;  %v4704_v59 = vld [vmem:[%s14775_s15 + $0x348] sm:$0xff]  ;;  %v9408_v61 = vcombine.low %v4672_v53, %v4688_v56 }
 0xbde   :  { %8183 = vmatprep.subr.bf16.mxu1 %v9567_v60  ;;  %v4720_v60 = vld [vmem:[%s14775_s15 + $0x3c8] sm:$0xff] }
 0xbdf   :  { %v9441_v62 = vcombine.high %v4704_v59, %v4720_v60  ;;  %v4928_v24 = vld [vmem:[%s14775_s15 + $0xa48] sm:$0xff] }
 0xbe0   :  { %v4960_v49 = vld [vmem:[%s14775_s15 + $0xb48] sm:$0xff] }
 0xbe1   :  { %8184 = vmatpush1.bf16.msra.mxu1 %v9566_v1  ;;  %v4752_v1 = vld [vmem:[%s14775_s15 + $0x4c8] sm:$0xff] }
 0xbe2   :  { %8185 = vmatprep.subr.bf16.mxu1 %v9599_v4  ;;  %v9440_v4 = vcombine.low %v4704_v59, %v4720_v60  ;;  %v9473_v0 = vcombine.high %v4736_v63, %v4752_v1  ;;  %v4976_v50 = vld [vmem:[%s14775_s15 + $0xbc8] sm:$0xff] }
 0xbe3   :  { %v9697_v53 = vcombine.high %v4960_v49, %v4976_v50  ;;  %v4992_v56 = vld [vmem:[%s14775_s15 + $0xc48] sm:$0xff] }
 0xbe4   :  { %v5024_v60 = vld [vmem:[%s14775_s15 + $0xd48] sm:$0xff] }
 0xbe5   :  { %8186 = vmatpush1.bf16.msra.mxu1 %v9598_v7  ;;  %v4784_v7 = vld [vmem:[%s14775_s15 + $0x5c8] sm:$0xff] }
 0xbe6   :  { %v10926_v16 = vpop.eup %10925  ;;  %8187 = vmatprep.subr.bf16.mxu1 %v9631_v9  ;;  %v9472_v9 = vcombine.low %v4736_v63, %v4752_v1  ;;  %v9505_v13 = vcombine.high %v4768_v6, %v4784_v7 }
 0xbe7   :  { %v10928_v18 = vpop.eup %10927  ;;  %v8601_v2 = vadd.f32 1.0, %v10926_v16  ;;  %v5164_v16 = vrot.slane %v13999_v43, %v13661_v10 }
 0xbe8   :  { %v8602_v21 = vadd.f32 1.0, %v10928_v18  ;;  %v9504_v18 = vcombine.low %v4768_v6, %v4784_v7 }
 0xbe9   :  { %10929 = vrcp.f32 %v8601_v2  ;;  %8188 = vmatpush1.bf16.msra.mxu1 %v9630_v15  ;;  %v4816_v15 = vld [vmem:[%s14775_s15 + $0x6c8] sm:$0xff] }
 0xbea   :  { %10931 = vrcp.f32 %v8602_v21  ;;  %8189 = vmatprep.subr.bf16.mxu1 %v9663_v17  ;;  %v5168_v17 = vrot.slane %v13999_v43, %v13664_v12  ;;  %v9537_v2 = vcombine.high %v4800_v14, %v4816_v15  ;;  %v4848_v21 = vld [vmem:[%s14775_s15 + $0x7c8] sm:$0xff] }
 0xbeb   :  { %v9569_v34 = vcombine.high %v4832_v20, %v4848_v21  ;;  %v9568_v38 = vcombine.low %v4832_v20, %v4848_v21  ;;  %v4641_v20 = vld [vmem:[%s14775_s15 + $0x150] sm:$0xff] }
 0xbec   :  { %v4657_v21 = vld [vmem:[%s14775_s15 + $0x1d0] sm:$0xff] }
 0xbed   :  { %8190 = vmatpush1.bf16.msra.mxu1 %v9662_v22 }
 0xbee   :  { %8191 = vmatprep.subr.bf16.mxu1 %v9695_v25 }
 0xbf1   :  { %8192 = vmatpush1.bf16.msra.mxu1 %v9694_v31  ;;  %v9536_v31 = vcombine.low %v4800_v14, %v4816_v15  ;;  %v5104_v14 = vld [vmem:[%s14775_s15 + $0xfc8] sm:$0xff] }
 0xbf2   :  { %8193 = vmatprep.subr.bf16.mxu1 %v9727_v33 }
 0xbf3   :  { %v10930_v37 = vpop.eup %10929 }
 0xbf4   :  { %v10932_v40 = vpop.eup %10931  ;;  %8697 = vst [vmem:[%s14779_s17 + $0x40] sm:$0xff] %v10930_v37  ;;  %v4880_v37 = vld [vmem:[%s14775_s15 + $0x8c8] sm:$0xff] }
 0xbf5   :  { %8698 = vst [vmem:[%s14779_s17 + $0x48] sm:$0xff] %v10932_v40  ;;  %8194 = vmatpush1.bf16.msra.mxu1 %v9726_v35  ;;  %v4896_v40 = vld [vmem:[%s14775_s15 + $0x948] sm:$0xff] }
 0xbf6   :  { %8195 = vmatprep.subr.bf16.mxu1 %v9759_v36  ;;  %v4864_v36 = vld [vmem:[%s14775_s15 + $0x848] sm:$0xff] }
 0xbf7   :  { %v9601_v39 = vcombine.high %v4864_v36, %v4880_v37 }
 0xbf9   :  { %8196 = vmatpush1.bf16.msra.mxu1 %v9758_v41  ;;  %v4912_v41 = vld [vmem:[%s14775_s15 + $0x9c8] sm:$0xff] }
 0xbfa   :  { %8197 = vmatprep.subr.bf16.mxu1 %v9791_v42  ;;  %v9600_v42 = vcombine.low %v4864_v36, %v4880_v37  ;;  %v9633_v23 = vcombine.high %v4896_v40, %v4912_v41  ;;  %v4737_v37 = vld [vmem:[%s14775_s15 + $0x450] sm:$0xff] }
 0xbfd   :  { %8198 = vmatpush1.bf16.msra.mxu1 %v9790_v26  ;;  %v4944_v26 = vld [vmem:[%s14775_s15 + $0xac8] sm:$0xff] }
 0xbfe   :  { %8199 = vmatprep.subr.bf16.mxu1 %v9823_v44  ;;  %v9632_v44 = vcombine.low %v4896_v40, %v4912_v41  ;;  %v9665_v46 = vcombine.high %v4928_v24, %v4944_v26  ;;  %v4769_v41 = vld [vmem:[%s14775_s15 + $0x550] sm:$0xff] }
 0xc01   :  { %8200 = vmatpush1.bf16.msra.mxu1 %v9822_v47 }
 0xc02   :  { %8210 = vmatprep.subr.bf16.mxu1 %v9345_v48 }
 0xc04   :  { %8202 = vmatmul.mubr.bf16.vlgmr.msra.gmra.mrb[56].mxu1 %v13205_v55 }
 0xc05   :  { %8211 = vmatpush1.bf16.msra.mxu1 %v9344_v51  ;;  %8242 = vmatprep.mubr.bf16.mxu1 %v13203_v54 }
 0xc06   :  { %8212 = vmatprep.subr.bf16.mxu1 %v9377_v52  ;;  %v9664_v52 = vcombine.low %v4928_v24, %v4944_v26  ;;  %v4801_v26 = vld [vmem:[%s14775_s15 + $0x650] sm:$0xff] }
 0xc09   :  { %8213 = vmatpush1.bf16.msra.mxu1 %v9376_v57  ;;  %v5008_v57 = vld [vmem:[%s14775_s15 + $0xcc8] sm:$0xff] }
 0xc0a   :  { %8214 = vmatprep.subr.bf16.mxu1 %v9409_v58  ;;  %v9696_v58 = vcombine.low %v4960_v49, %v4976_v50  ;;  %v9729_v59 = vcombine.high %v4992_v56, %v5008_v57  ;;  %v4833_v50 = vld [vmem:[%s14775_s15 + $0x750] sm:$0xff] }
 0xc0d   :  { %8215 = vmatpush1.bf16.msra.mxu1 %v9408_v61  ;;  %v5040_v61 = vld [vmem:[%s14775_s15 + $0xdc8] sm:$0xff] }
 0xc0e   :  { %8216 = vmatprep.subr.bf16.mxu1 %v9441_v62  ;;  %v9728_v62 = vcombine.low %v4992_v56, %v5008_v57  ;;  %v9761_v63 = vcombine.high %v5024_v60, %v5040_v61  ;;  %v9760_v7 = vcombine.low %v5024_v60, %v5040_v61 }
 0xc11   :  { %8217 = vmatpush1.bf16.msra.mxu1 %v9440_v4  ;;  %v5056_v4 = vld [vmem:[%s14775_s15 + $0xe48] sm:$0xff] }
 0xc12   :  { %8218 = vmatprep.subr.bf16.mxu1 %v9473_v0  ;;  %v5072_v0 = vld [vmem:[%s14775_s15 + $0xec8] sm:$0xff] }
 0xc13   :  { %v9792_v15 = vcombine.low %v5056_v4, %v5072_v0 }
 0xc15   :  { %8219 = vmatpush1.bf16.msra.mxu1 %v9472_v9  ;;  %v9793_v9 = vcombine.high %v5056_v4, %v5072_v0 }
 0xc16   :  { %8220 = vmatprep.subr.bf16.mxu1 %v9505_v13  ;;  %v5088_v13 = vld [vmem:[%s14775_s15 + $0xf48] sm:$0xff] }
 0xc17   :  { %v8080_v19 = vpop.f32.mrb[44].mxu1 }
 0xc18   :  { %v8081_v22 = vadd.f32 %v8080_v19, %v5164_v16  ;;  %v8082_v25 = vpop.f32.mrb[45].mxu1  ;;  %v9825_v16 = vcombine.high %v5088_v13, %v5104_v14 }
 0xc19   :  { %v8083_v27 = vadd.f32 %v8082_v25, %v5168_v17  ;;  %v8084_v29 = vpop.f32.mrb[46].mxu1  ;;  %8221 = vmatpush1.bf16.msra.mxu1 %v9504_v18  ;;  %v4609_v17 = vld [vmem:[%s14775_s15 + $0x50] sm:$0xff]  ;;  %v9379_v25 = vcombine.high %v4641_v20, %v4657_v21 }
 0xc1a   :  { %v9848_v33 = vmul.f32 -1.442695, %v8081_v22  ;;  %v8085_v30 = vpop.f32.mrb[47].mxu1  ;;  %8222 = vmatprep.subr.bf16.mxu1 %v9537_v2  ;;  %v4625_v18 = vld [vmem:[%s14775_s15 + $0xd0] sm:$0xff]  ;;  %v9824_v2 = vcombine.low %v5088_v13, %v5104_v14 }
 0xc1b   :  { %v9849_v35 = vmul.f32 -1.442695, %v8083_v27  ;;  %v9347_v19 = vcombine.high %v4609_v17, %v4625_v18  ;;  %v9346_v22 = vcombine.low %v4609_v17, %v4625_v18  ;;  %v4673_v27 = vld [vmem:[%s14775_s15 + $0x250] sm:$0xff] }
 0xc1c   :  { %10933 = vpow2.f32 %v9848_v33  ;;  %v4689_v29 = vld [vmem:[%s14775_s15 + $0x2d0] sm:$0xff] }
 0xc1d   :  { %10935 = vpow2.f32 %v9849_v35  ;;  %8223 = vmatpush1.bf16.msra.mxu1 %v9536_v31  ;;  %v9378_v31 = vcombine.low %v4641_v20, %v4657_v21  ;;  %v9411_v33 = vcombine.high %v4673_v27, %v4689_v29  ;;  %v4705_v30 = vld [vmem:[%s14775_s15 + $0x350] sm:$0xff]  ;;  %v9410_v35 = vcombine.low %v4673_v27, %v4689_v29 }
 0xc1e   :  { %8224 = vmatprep.subr.bf16.mxu1 %v9569_v34  ;;  %v4721_v34 = vld [vmem:[%s14775_s15 + $0x3d0] sm:$0xff] }
 0xc1f   :  { %v9443_v36 = vcombine.high %v4705_v30, %v4721_v34  ;;  %v4929_v14 = vld [vmem:[%s14775_s15 + $0xa50] sm:$0xff] }
 0xc20   :  { %v4961_v20 = vld [vmem:[%s14775_s15 + $0xb50] sm:$0xff] }
 0xc21   :  { %8225 = vmatpush1.bf16.msra.mxu1 %v9568_v38  ;;  %v4753_v38 = vld [vmem:[%s14775_s15 + $0x4d0] sm:$0xff] }
 0xc22   :  { %8226 = vmatprep.subr.bf16.mxu1 %v9601_v39  ;;  %v9442_v39 = vcombine.low %v4705_v30, %v4721_v34  ;;  %v9475_v40 = vcombine.high %v4737_v37, %v4753_v38  ;;  %v4977_v21 = vld [vmem:[%s14775_s15 + $0xbd0] sm:$0xff] }
 0xc23   :  { %v9699_v27 = vcombine.high %v4961_v20, %v4977_v21  ;;  %v4993_v29 = vld [vmem:[%s14775_s15 + $0xc50] sm:$0xff] }
 0xc24   :  { %v5025_v34 = vld [vmem:[%s14775_s15 + $0xd50] sm:$0xff] }
 0xc25   :  { %8227 = vmatpush1.bf16.msra.mxu1 %v9600_v42  ;;  %v4785_v42 = vld [vmem:[%s14775_s15 + $0x5d0] sm:$0xff] }
 0xc26   :  { %v10934_v45 = vpop.eup %10933  ;;  %8228 = vmatprep.subr.bf16.mxu1 %v9633_v23  ;;  %v9474_v23 = vcombine.low %v4737_v37, %v4753_v38  ;;  %v9507_v24 = vcombine.high %v4769_v41, %v4785_v42 }
 0xc27   :  { %v10936_v47 = vpop.eup %10935  ;;  %v8603_v48 = vadd.f32 1.0, %v10934_v45  ;;  %v5172_v45 = vrot.slane %v13999_v43, %v13531_v28 }
 0xc28   :  { %v8604_v51 = vadd.f32 1.0, %v10936_v47  ;;  %v9506_v47 = vcombine.low %v4769_v41, %v4785_v42 }
 0xc29   :  { %10937 = vrcp.f32 %v8603_v48  ;;  %8229 = vmatpush1.bf16.msra.mxu1 %v9632_v44  ;;  %v4817_v44 = vld [vmem:[%s14775_s15 + $0x6d0] sm:$0xff] }
 0xc2a   :  { %10939 = vrcp.f32 %v8604_v51  ;;  %8230 = vmatprep.subr.bf16.mxu1 %v9665_v46  ;;  %v5176_v46 = vrot.slane %v13999_v43, %v13542_v32  ;;  %v9539_v48 = vcombine.high %v4801_v26, %v4817_v44  ;;  %v4849_v51 = vld [vmem:[%s14775_s15 + $0x7d0] sm:$0xff] }
 0xc2b   :  { %v9571_v61 = vcombine.high %v4833_v50, %v4849_v51  ;;  %v9570_v4 = vcombine.low %v4833_v50, %v4849_v51  ;;  %v4642_v50 = vld [vmem:[%s14775_s15 + $0x158] sm:$0xff] }
 0xc2c   :  { %v4658_v51 = vld [vmem:[%s14775_s15 + $0x1d8] sm:$0xff] }
 0xc2d   :  { %8231 = vmatpush1.bf16.msra.mxu1 %v9664_v52 }
 0xc2e   :  { %8232 = vmatprep.subr.bf16.mxu1 %v9697_v53 }
 0xc31   :  { %8233 = vmatpush1.bf16.msra.mxu1 %v9696_v58  ;;  %v9538_v58 = vcombine.low %v4801_v26, %v4817_v44  ;;  %v5105_v26 = vld [vmem:[%s14775_s15 + $0xfd0] sm:$0xff] }
 0xc32   :  { %8234 = vmatprep.subr.bf16.mxu1 %v9729_v59 }
 0xc33   :  { %v10938_v1 = vpop.eup %10937 }
 0xc34   :  { %v10940_v6 = vpop.eup %10939  ;;  %8699 = vst [vmem:[%s14779_s17 + $0x50] sm:$0xff] %v10938_v1  ;;  %v4881_v1 = vld [vmem:[%s14775_s15 + $0x8d0] sm:$0xff] }
 0xc35   :  { %8700 = vst [vmem:[%s14779_s17 + $0x58] sm:$0xff] %v10940_v6  ;;  %8235 = vmatpush1.bf16.msra.mxu1 %v9728_v62  ;;  %v4897_v6 = vld [vmem:[%s14775_s15 + $0x950] sm:$0xff] }
 0xc36   :  { %8236 = vmatprep.subr.bf16.mxu1 %v9761_v63  ;;  %v4865_v63 = vld [vmem:[%s14775_s15 + $0x850] sm:$0xff] }
 0xc37   :  { %v9603_v0 = vcombine.high %v4865_v63, %v4881_v1 }
 0xc39   :  { %8237 = vmatpush1.bf16.msra.mxu1 %v9760_v7  ;;  %v4913_v7 = vld [vmem:[%s14775_s15 + $0x9d0] sm:$0xff] }
 0xc3a   :  { %8238 = vmatprep.subr.bf16.mxu1 %v9793_v9  ;;  %v9602_v9 = vcombine.low %v4865_v63, %v4881_v1  ;;  %v9635_v13 = vcombine.high %v4897_v6, %v4913_v7  ;;  %v4738_v1 = vld [vmem:[%s14775_s15 + $0x458] sm:$0xff] }
 0xc3d   :  { %8239 = vmatpush1.bf16.msra.mxu1 %v9792_v15  ;;  %v4945_v15 = vld [vmem:[%s14775_s15 + $0xad0] sm:$0xff] }
 0xc3e   :  { %8240 = vmatprep.subr.bf16.mxu1 %v9825_v16  ;;  %v9634_v16 = vcombine.low %v4897_v6, %v4913_v7  ;;  %v9667_v18 = vcombine.high %v4929_v14, %v4945_v15  ;;  %v4770_v7 = vld [vmem:[%s14775_s15 + $0x558] sm:$0xff] }
 0xc41   :  { %8241 = vmatpush1.bf16.msra.mxu1 %v9824_v2 }
 0xc42   :  { %8251 = vmatprep.subr.bf16.mxu1 %v9347_v19 }
 0xc44   :  { %8243 = vmatmul.mubr.bf16.vlgmr.msra.gmra.mrb[60].mxu1 %v13205_v55 }
 0xc45   :  { %8252 = vmatpush1.bf16.msra.mxu1 %v9346_v22  ;;  %8283 = vmatprep.mubr.bf16.mxu1 %v13203_v54 }
 0xc46   :  { %8253 = vmatprep.subr.bf16.mxu1 %v9379_v25  ;;  %v9666_v25 = vcombine.low %v4929_v14, %v4945_v15  ;;  %v4802_v15 = vld [vmem:[%s14775_s15 + $0x658] sm:$0xff] }
 0xc49   :  { %8254 = vmatpush1.bf16.msra.mxu1 %v9378_v31  ;;  %v5009_v31 = vld [vmem:[%s14775_s15 + $0xcd0] sm:$0xff] }
 0xc4a   :  { %8255 = vmatprep.subr.bf16.mxu1 %v9411_v33  ;;  %v9698_v33 = vcombine.low %v4961_v20, %v4977_v21  ;;  %v9731_v30 = vcombine.high %v4993_v29, %v5009_v31  ;;  %v4834_v21 = vld [vmem:[%s14775_s15 + $0x758] sm:$0xff] }
 0xc4d   :  { %8256 = vmatpush1.bf16.msra.mxu1 %v9410_v35  ;;  %v5041_v35 = vld [vmem:[%s14775_s15 + $0xdd0] sm:$0xff] }
 0xc4e   :  { %8257 = vmatprep.subr.bf16.mxu1 %v9443_v36  ;;  %v9730_v36 = vcombine.low %v4993_v29, %v5009_v31  ;;  %v9763_v37 = vcombine.high %v5025_v34, %v5041_v35  ;;  %v9762_v42 = vcombine.low %v5025_v34, %v5041_v35 }
 0xc51   :  { %8258 = vmatpush1.bf16.msra.mxu1 %v9442_v39  ;;  %v5057_v39 = vld [vmem:[%s14775_s15 + $0xe50] sm:$0xff] }
 0xc52   :  { %8259 = vmatprep.subr.bf16.mxu1 %v9475_v40  ;;  %v5073_v40 = vld [vmem:[%s14775_s15 + $0xed0] sm:$0xff] }
 0xc53   :  { %v9794_v44 = vcombine.low %v5057_v39, %v5073_v40 }
 0xc55   :  { %8260 = vmatpush1.bf16.msra.mxu1 %v9474_v23  ;;  %v9795_v23 = vcombine.high %v5057_v39, %v5073_v40  ;;  %v4898_v40 = vld [vmem:[%s14775_s15 + $0x958] sm:$0xff] }
 0xc56   :  { %8261 = vmatprep.subr.bf16.mxu1 %v9507_v24  ;;  %v5089_v24 = vld [vmem:[%s14775_s15 + $0xf50] sm:$0xff] }
 0xc57   :  { %v8121_v49 = vpop.f32.mrb[48].mxu1 }
 0xc58   :  { %v8122_v52 = vadd.f32 %v8121_v49, %v5172_v45  ;;  %v8123_v53 = vpop.f32.mrb[49].mxu1  ;;  %v9827_v45 = vcombine.high %v5089_v24, %v5105_v26 }
 0xc59   :  { %v8124_v56 = vadd.f32 %v8123_v53, %v5176_v46  ;;  %v8125_v57 = vpop.f32.mrb[50].mxu1  ;;  %8262 = vmatpush1.bf16.msra.mxu1 %v9506_v47  ;;  %v4610_v46 = vld [vmem:[%s14775_s15 + $0x58] sm:$0xff]  ;;  %v9381_v53 = vcombine.high %v4642_v50, %v4658_v51 }
 0xc5a   :  { %v9850_v59 = vmul.f32 -1.442695, %v8122_v52  ;;  %v8126_v60 = vpop.f32.mrb[51].mxu1  ;;  %8263 = vmatprep.subr.bf16.mxu1 %v9539_v48  ;;  %v4626_v47 = vld [vmem:[%s14775_s15 + $0xd8] sm:$0xff]  ;;  %v9826_v48 = vcombine.low %v5089_v24, %v5105_v26 }
 0xc5b   :  { %v9851_v62 = vmul.f32 -1.442695, %v8124_v56  ;;  %v9349_v49 = vcombine.high %v4610_v46, %v4626_v47  ;;  %v9348_v52 = vcombine.low %v4610_v46, %v4626_v47  ;;  %v4674_v56 = vld [vmem:[%s14775_s15 + $0x258] sm:$0xff] }
 0xc5c   :  { %10941 = vpow2.f32 %v9850_v59  ;;  %v4690_v57 = vld [vmem:[%s14775_s15 + $0x2d8] sm:$0xff] }
 0xc5d   :  { %10943 = vpow2.f32 %v9851_v62  ;;  %8264 = vmatpush1.bf16.msra.mxu1 %v9538_v58  ;;  %v9380_v58 = vcombine.low %v4642_v50, %v4658_v51  ;;  %v9413_v59 = vcombine.high %v4674_v56, %v4690_v57  ;;  %v4706_v60 = vld [vmem:[%s14775_s15 + $0x358] sm:$0xff]  ;;  %v9412_v62 = vcombine.low %v4674_v56, %v4690_v57 }
 0xc5e   :  { %8265 = vmatprep.subr.bf16.mxu1 %v9571_v61  ;;  %v4722_v61 = vld [vmem:[%s14775_s15 + $0x3d8] sm:$0xff] }
 0xc5f   :  { %v9445_v63 = vcombine.high %v4706_v60, %v4722_v61  ;;  %v4930_v24 = vld [vmem:[%s14775_s15 + $0xa58] sm:$0xff] }
 0xc60   :  { %v4946_v26 = vld [vmem:[%s14775_s15 + $0xad8] sm:$0xff] }
 0xc61   :  { %8266 = vmatpush1.bf16.msra.mxu1 %v9570_v4  ;;  %v4754_v4 = vld [vmem:[%s14775_s15 + $0x4d8] sm:$0xff]  ;;  %v9669_v46 = vcombine.high %v4930_v24, %v4946_v26 }
 0xc62   :  { %8267 = vmatprep.subr.bf16.mxu1 %v9603_v0  ;;  %v9444_v0 = vcombine.low %v4706_v60, %v4722_v61  ;;  %v9477_v6 = vcombine.high %v4738_v1, %v4754_v4  ;;  %v4978_v50 = vld [vmem:[%s14775_s15 + $0xbd8] sm:$0xff] }
 0xc63   :  { %v4994_v56 = vld [vmem:[%s14775_s15 + $0xc58] sm:$0xff] }
 0xc64   :  { %v5010_v57 = vld [vmem:[%s14775_s15 + $0xcd8] sm:$0xff] }
 0xc65   :  { %8268 = vmatpush1.bf16.msra.mxu1 %v9602_v9  ;;  %v4786_v9 = vld [vmem:[%s14775_s15 + $0x5d8] sm:$0xff] }
 0xc66   :  { %v10942_v17 = vpop.eup %10941  ;;  %8269 = vmatprep.subr.bf16.mxu1 %v9635_v13  ;;  %v9476_v13 = vcombine.low %v4738_v1, %v4754_v4  ;;  %v9509_v14 = vcombine.high %v4770_v7, %v4786_v9  ;;  %v5026_v60 = vld [vmem:[%s14775_s15 + $0xd58] sm:$0xff] }
 0xc67   :  { %v10944_v2 = vpop.eup %10943  ;;  %v8605_v19 = vadd.f32 1.0, %v10942_v17  ;;  %v5180_v17 = vrot.slane %v13999_v43, %v13883_v8  ;;  %v5042_v61 = vld [vmem:[%s14775_s15 + $0xdd8] sm:$0xff] }
 0xc68   :  { %v8606_v22 = vadd.f32 1.0, %v10944_v2  ;;  %v9508_v2 = vcombine.low %v4770_v7, %v4786_v9  ;;  %v5058_v4 = vld [vmem:[%s14775_s15 + $0xe58] sm:$0xff]  ;;  %v9764_v7 = vcombine.low %v5026_v60, %v5042_v61 }
 0xc69   :  { %10945 = vrcp.f32 %v8605_v19  ;;  %8270 = vmatpush1.bf16.msra.mxu1 %v9634_v16  ;;  %v4818_v16 = vld [vmem:[%s14775_s15 + $0x6d8] sm:$0xff] }
 0xc6a   :  { %10947 = vrcp.f32 %v8606_v22  ;;  %8271 = vmatprep.subr.bf16.mxu1 %v9667_v18  ;;  %v5184_v18 = vrot.slane %v13999_v43, %v13886_v11  ;;  %v9541_v19 = vcombine.high %v4802_v15, %v4818_v16  ;;  %v4850_v22 = vld [vmem:[%s14775_s15 + $0x7d8] sm:$0xff] }
 0xc6b   :  { %v9573_v34 = vcombine.high %v4834_v21, %v4850_v22 }
 0xc6d   :  { %8272 = vmatpush1.bf16.msra.mxu1 %v9666_v25 }
 0xc6e   :  { %8273 = vmatprep.subr.bf16.mxu1 %v9699_v27 }
 0xc71   :  { %8274 = vmatpush1.bf16.msra.mxu1 %v9698_v33  ;;  %v9540_v33 = vcombine.low %v4802_v15, %v4818_v16 }
 0xc72   :  { %8275 = vmatprep.subr.bf16.mxu1 %v9731_v30 }
 0xc73   :  { %v10946_v38 = vpop.eup %10945 }
 0xc74   :  { %v10948_v41 = vpop.eup %10947  ;;  %8701 = vst [vmem:[%s14779_s17 + $0x60] sm:$0xff] %v10946_v38  ;;  %v9572_v38 = vcombine.low %v4834_v21, %v4850_v22  ;;  %v4659_v21 = vld [vmem:[%s14775_s15 + $0x1e0] sm:$0xff] }
 0xc75   :  { %8702 = vst [vmem:[%s14779_s17 + $0x68] sm:$0xff] %v10948_v41  ;;  %8276 = vmatpush1.bf16.msra.mxu1 %v9730_v36  ;;  %v4866_v36 = vld [vmem:[%s14775_s15 + $0x858] sm:$0xff] }
 0xc76   :  { %8277 = vmatprep.subr.bf16.mxu1 %v9763_v37  ;;  %v4882_v37 = vld [vmem:[%s14775_s15 + $0x8d8] sm:$0xff] }
 0xc77   :  { %v9605_v39 = vcombine.high %v4866_v36, %v4882_v37  ;;  %v4914_v41 = vld [vmem:[%s14775_s15 + $0x9d8] sm:$0xff] }
 0xc79   :  { %8278 = vmatpush1.bf16.msra.mxu1 %v9762_v42  ;;  %v9604_v42 = vcombine.low %v4866_v36, %v4882_v37  ;;  %v4739_v36 = vld [vmem:[%s14775_s15 + $0x460] sm:$0xff] }
 0xc7a   :  { %8279 = vmatprep.subr.bf16.mxu1 %v9795_v23  ;;  %v9637_v23 = vcombine.high %v4898_v40, %v4914_v41  ;;  %v4755_v37 = vld [vmem:[%s14775_s15 + $0x4e0] sm:$0xff] }
 0xc7d   :  { %8280 = vmatpush1.bf16.msra.mxu1 %v9794_v44  ;;  %v9636_v44 = vcombine.low %v4898_v40, %v4914_v41  ;;  %v4771_v40 = vld [vmem:[%s14775_s15 + $0x560] sm:$0xff] }
 0xc7e   :  { %8281 = vmatprep.subr.bf16.mxu1 %v9827_v45  ;;  %v4787_v41 = vld [vmem:[%s14775_s15 + $0x5e0] sm:$0xff] }
 0xc81   :  { %8282 = vmatpush1.bf16.msra.mxu1 %v9826_v48 }
 0xc82   :  { %8292 = vmatprep.subr.bf16.mxu1 %v9349_v49  ;;  %v4962_v49 = vld [vmem:[%s14775_s15 + $0xb58] sm:$0xff] }
 0xc84   :  { %8284 = vmatmul.mubr.bf16.vlgmr.msra.gmra.mrb[64].mxu1 %v13205_v55 }
 0xc85   :  { %8293 = vmatpush1.bf16.msra.mxu1 %v9348_v52  ;;  %8324 = vmatprep.mubr.bf16.mxu1 %v13203_v54  ;;  %v9668_v52 = vcombine.low %v4930_v24, %v4946_v26  ;;  %v9511_v24 = vcombine.high %v4771_v40, %v4787_v41  ;;  %v4803_v26 = vld [vmem:[%s14775_s15 + $0x660] sm:$0xff] }
 0xc86   :  { %8294 = vmatprep.subr.bf16.mxu1 %v9381_v53  ;;  %v9701_v53 = vcombine.high %v4962_v49, %v4978_v50 }
 0xc89   :  { %8295 = vmatpush1.bf16.msra.mxu1 %v9380_v58  ;;  %v9700_v58 = vcombine.low %v4962_v49, %v4978_v50  ;;  %v4835_v50 = vld [vmem:[%s14775_s15 + $0x760] sm:$0xff] }
 0xc8a   :  { %8296 = vmatprep.subr.bf16.mxu1 %v9413_v59  ;;  %v9733_v59 = vcombine.high %v4994_v56, %v5010_v57 }
 0xc8d   :  { %8297 = vmatpush1.bf16.msra.mxu1 %v9412_v62  ;;  %v9732_v62 = vcombine.low %v4994_v56, %v5010_v57 }
 0xc8e   :  { %8298 = vmatprep.subr.bf16.mxu1 %v9445_v63  ;;  %v9765_v63 = vcombine.high %v5026_v60, %v5042_v61 }
 0xc91   :  { %8299 = vmatpush1.bf16.msra.mxu1 %v9444_v0  ;;  %v5074_v0 = vld [vmem:[%s14775_s15 + $0xed8] sm:$0xff] }
 0xc92   :  { %8300 = vmatprep.subr.bf16.mxu1 %v9477_v6  ;;  %v9797_v9 = vcombine.high %v5058_v4, %v5074_v0  ;;  %v9796_v15 = vcombine.low %v5058_v4, %v5074_v0 }
 0xc95   :  { %8301 = vmatpush1.bf16.msra.mxu1 %v9476_v13  ;;  %v5090_v13 = vld [vmem:[%s14775_s15 + $0xf58] sm:$0xff] }
 0xc96   :  { %8302 = vmatprep.subr.bf16.mxu1 %v9509_v14  ;;  %v5106_v14 = vld [vmem:[%s14775_s15 + $0xfd8] sm:$0xff] }
 0xc97   :  { %v8162_v20 = vpop.f32.mrb[52].mxu1  ;;  %v9829_v16 = vcombine.high %v5090_v13, %v5106_v14 }
 0xc98   :  { %v8163_v25 = vadd.f32 %v8162_v20, %v5180_v17  ;;  %v8164_v27 = vpop.f32.mrb[53].mxu1  ;;  %v4611_v17 = vld [vmem:[%s14775_s15 + $0x60] sm:$0xff] }
 0xc99   :  { %v8165_v29 = vadd.f32 %v8164_v27, %v5184_v18  ;;  %v8166_v31 = vpop.f32.mrb[54].mxu1  ;;  %8303 = vmatpush1.bf16.msra.mxu1 %v9508_v2  ;;  %v4627_v18 = vld [vmem:[%s14775_s15 + $0xe0] sm:$0xff]  ;;  %v9828_v2 = vcombine.low %v5090_v13, %v5106_v14 }
 0xc9a   :  { %v9852_v30 = vmul.f32 -1.442695, %v8163_v25  ;;  %v8167_v43 = vpop.f32.mrb[55].mxu1  ;;  %8304 = vmatprep.subr.bf16.mxu1 %v9541_v19  ;;  %v9351_v19 = vcombine.high %v4611_v17, %v4627_v18  ;;  %v4643_v20 = vld [vmem:[%s14775_s15 + $0x160] sm:$0xff]  ;;  %v9350_v22 = vcombine.low %v4611_v17, %v4627_v18 }
 0xc9b   :  { %v9853_v35 = vmul.f32 -1.442695, %v8165_v29  ;;  %v9383_v25 = vcombine.high %v4643_v20, %v4659_v21  ;;  %v4675_v27 = vld [vmem:[%s14775_s15 + $0x260] sm:$0xff]  ;;  %v9382_v31 = vcombine.low %v4643_v20, %v4659_v21 }
 0xc9c   :  { %10949 = vpow2.f32 %v9852_v30  ;;  %v4691_v29 = vld [vmem:[%s14775_s15 + $0x2e0] sm:$0xff] }
 0xc9d   :  { %10951 = vpow2.f32 %v9853_v35  ;;  %8305 = vmatpush1.bf16.msra.mxu1 %v9540_v33  ;;  %v9415_v33 = vcombine.high %v4675_v27, %v4691_v29  ;;  %v4707_v30 = vld [vmem:[%s14775_s15 + $0x360] sm:$0xff] }
 0xc9e   :  { %8306 = vmatprep.subr.bf16.mxu1 %v9573_v34  ;;  %v4723_v43 = vld [vmem:[%s14775_s15 + $0x3e0] sm:$0xff]  ;;  %v9414_v34 = vcombine.low %v4675_v27, %v4691_v29 }
 0xc9f   :  { %v9447_v35 = vcombine.high %v4707_v30, %v4723_v43  ;;  %v4931_v14 = vld [vmem:[%s14775_s15 + $0xa60] sm:$0xff] }
 0xca0   :  { %v4963_v20 = vld [vmem:[%s14775_s15 + $0xb60] sm:$0xff] }
 0xca1   :  { %8307 = vmatpush1.bf16.msra.mxu1 %v9572_v38  ;;  %v9446_v38 = vcombine.low %v4707_v30, %v4723_v43  ;;  %v4979_v21 = vld [vmem:[%s14775_s15 + $0xbe0] sm:$0xff] }
 0xca2   :  { %8308 = vmatprep.subr.bf16.mxu1 %v9605_v39  ;;  %v9479_v39 = vcombine.high %v4739_v36, %v4755_v37  ;;  %v9703_v27 = vcombine.high %v4963_v20, %v4979_v21  ;;  %v4995_v29 = vld [vmem:[%s14775_s15 + $0xc60] sm:$0xff] }
 0xca3   :  { %v5027_v43 = vld [vmem:[%s14775_s15 + $0xd60] sm:$0xff] }
 0xca5   :  { %8309 = vmatpush1.bf16.msra.mxu1 %v9604_v42  ;;  %v9478_v42 = vcombine.low %v4739_v36, %v4755_v37 }
 0xca6   :  { %v10950_v45 = vpop.eup %10949  ;;  %8310 = vmatprep.subr.bf16.mxu1 %v9637_v23  ;;  %v14436_v23 = vld [vmem:[%s14778_s16 + $0x10] sm:$0xff] }
 0xca7   :  { %v10952_v47 = vpop.eup %10951  ;;  %v8607_v48 = vadd.f32 1.0, %v10950_v45  ;;  %v5188_v45 = vrot.slane %v14436_v23, %v12833_v3 }
 0xca8   :  { %v8608_v51 = vadd.f32 1.0, %v10952_v47  ;;  %v9510_v47 = vcombine.low %v4771_v40, %v4787_v41 }
 0xca9   :  { %10953 = vrcp.f32 %v8607_v48  ;;  %8311 = vmatpush1.bf16.msra.mxu1 %v9636_v44  ;;  %v4819_v44 = vld [vmem:[%s14775_s15 + $0x6e0] sm:$0xff] }
 0xcaa   :  { %10955 = vrcp.f32 %v8608_v51  ;;  %8312 = vmatprep.subr.bf16.mxu1 %v9669_v46  ;;  %v5192_v46 = vrot.slane %v14436_v23, %v12839_v5  ;;  %v9543_v48 = vcombine.high %v4803_v26, %v4819_v44  ;;  %v4851_v51 = vld [vmem:[%s14775_s15 + $0x7e0] sm:$0xff] }
 0xcab   :  { %v9575_v61 = vcombine.high %v4835_v50, %v4851_v51  ;;  %v9574_v4 = vcombine.low %v4835_v50, %v4851_v51  ;;  %v4644_v50 = vld [vmem:[%s14775_s15 + $0x168] sm:$0xff] }
 0xcac   :  { %v4660_v51 = vld [vmem:[%s14775_s15 + $0x1e8] sm:$0xff] }
 0xcad   :  { %8313 = vmatpush1.bf16.msra.mxu1 %v9668_v52 }
 0xcae   :  { %8314 = vmatprep.subr.bf16.mxu1 %v9701_v53 }
 0xcb1   :  { %8315 = vmatpush1.bf16.msra.mxu1 %v9700_v58  ;;  %v9542_v58 = vcombine.low %v4803_v26, %v4819_v44  ;;  %v5107_v26 = vld [vmem:[%s14775_s15 + $0xfe0] sm:$0xff] }
 0xcb2   :  { %8316 = vmatprep.subr.bf16.mxu1 %v9733_v59 }
 0xcb3   :  { %v10954_v1 = vpop.eup %10953 }
 0xcb4   :  { %v10956_v6 = vpop.eup %10955  ;;  %8703 = vst [vmem:[%s14779_s17 + $0x70] sm:$0xff] %v10954_v1  ;;  %v4883_v1 = vld [vmem:[%s14775_s15 + $0x8e0] sm:$0xff] }
 0xcb5   :  { %8704 = vst [vmem:[%s14779_s17 + $0x78] sm:$0xff] %v10956_v6  ;;  %8317 = vmatpush1.bf16.msra.mxu1 %v9732_v62  ;;  %v4899_v6 = vld [vmem:[%s14775_s15 + $0x960] sm:$0xff] }
 0xcb6   :  { %8318 = vmatprep.subr.bf16.mxu1 %v9765_v63  ;;  %v4867_v63 = vld [vmem:[%s14775_s15 + $0x860] sm:$0xff] }
 0xcb7   :  { %v9607_v0 = vcombine.high %v4867_v63, %v4883_v1 }
 0xcb9   :  { %8319 = vmatpush1.bf16.msra.mxu1 %v9764_v7  ;;  %v4915_v7 = vld [vmem:[%s14775_s15 + $0x9e0] sm:$0xff] }
 0xcba   :  { %8320 = vmatprep.subr.bf16.mxu1 %v9797_v9  ;;  %v9606_v9 = vcombine.low %v4867_v63, %v4883_v1  ;;  %v9639_v13 = vcombine.high %v4899_v6, %v4915_v7  ;;  %v4740_v1 = vld [vmem:[%s14775_s15 + $0x468] sm:$0xff] }
 0xcbd   :  { %8321 = vmatpush1.bf16.msra.mxu1 %v9796_v15  ;;  %v4947_v15 = vld [vmem:[%s14775_s15 + $0xae0] sm:$0xff] }
 0xcbe   :  { %8322 = vmatprep.subr.bf16.mxu1 %v9829_v16  ;;  %v9638_v16 = vcombine.low %v4899_v6, %v4915_v7  ;;  %v9671_v18 = vcombine.high %v4931_v14, %v4947_v15  ;;  %v4772_v7 = vld [vmem:[%s14775_s15 + $0x568] sm:$0xff] }
 0xcc1   :  { %8323 = vmatpush1.bf16.msra.mxu1 %v9828_v2 }
 0xcc2   :  { %8333 = vmatprep.subr.bf16.mxu1 %v9351_v19 }
 0xcc4   :  { %8325 = vmatmul.mubr.bf16.vlgmr.msra.gmra.mrb[68].mxu1 %v13205_v55 }
 0xcc5   :  { %8334 = vmatpush1.bf16.msra.mxu1 %v9350_v22  ;;  %8365 = vmatprep.mubr.bf16.mxu1 %v13203_v54 }
 0xcc6   :  { %8335 = vmatprep.subr.bf16.mxu1 %v9383_v25  ;;  %v9670_v25 = vcombine.low %v4931_v14, %v4947_v15  ;;  %v4804_v15 = vld [vmem:[%s14775_s15 + $0x668] sm:$0xff] }
 0xcc9   :  { %8336 = vmatpush1.bf16.msra.mxu1 %v9382_v31  ;;  %v5011_v31 = vld [vmem:[%s14775_s15 + $0xce0] sm:$0xff] }
 0xcca   :  { %8337 = vmatprep.subr.bf16.mxu1 %v9415_v33  ;;  %v9702_v33 = vcombine.low %v4963_v20, %v4979_v21  ;;  %v9735_v30 = vcombine.high %v4995_v29, %v5011_v31  ;;  %v4836_v21 = vld [vmem:[%s14775_s15 + $0x768] sm:$0xff] }
 0xccd   :  { %8338 = vmatpush1.bf16.msra.mxu1 %v9414_v34  ;;  %v5043_v34 = vld [vmem:[%s14775_s15 + $0xde0] sm:$0xff] }
 0xcce   :  { %8339 = vmatprep.subr.bf16.mxu1 %v9447_v35  ;;  %v9734_v35 = vcombine.low %v4995_v29, %v5011_v31  ;;  %v9767_v36 = vcombine.high %v5027_v43, %v5043_v34  ;;  %v9766_v41 = vcombine.low %v5027_v43, %v5043_v34 }
 0xcd1   :  { %8340 = vmatpush1.bf16.msra.mxu1 %v9446_v38  ;;  %v5059_v38 = vld [vmem:[%s14775_s15 + $0xe60] sm:$0xff] }
 0xcd2   :  { %8341 = vmatprep.subr.bf16.mxu1 %v9479_v39  ;;  %v5075_v39 = vld [vmem:[%s14775_s15 + $0xee0] sm:$0xff] }
 0xcd3   :  { %v9798_v44 = vcombine.low %v5059_v38, %v5075_v39 }
 0xcd5   :  { %8342 = vmatpush1.bf16.msra.mxu1 %v9478_v42  ;;  %v9799_v42 = vcombine.high %v5059_v38, %v5075_v39 }
 0xcd6   :  { %8343 = vmatprep.subr.bf16.mxu1 %v9511_v24  ;;  %v5091_v24 = vld [vmem:[%s14775_s15 + $0xf60] sm:$0xff] }
 0xcd7   :  { %v8203_v49 = vpop.f32.mrb[56].mxu1 }
 0xcd8   :  { %v8204_v52 = vadd.f32 %v8203_v49, %v5188_v45  ;;  %v8205_v53 = vpop.f32.mrb[57].mxu1  ;;  %v9831_v45 = vcombine.high %v5091_v24, %v5107_v26 }
 0xcd9   :  { %v8206_v56 = vadd.f32 %v8205_v53, %v5192_v46  ;;  %v8207_v57 = vpop.f32.mrb[58].mxu1  ;;  %8344 = vmatpush1.bf16.msra.mxu1 %v9510_v47  ;;  %v4612_v46 = vld [vmem:[%s14775_s15 + $0x68] sm:$0xff]  ;;  %v9385_v53 = vcombine.high %v4644_v50, %v4660_v51 }
 0xcda   :  { %v9854_v59 = vmul.f32 -1.442695, %v8204_v52  ;;  %v8208_v60 = vpop.f32.mrb[59].mxu1  ;;  %8345 = vmatprep.subr.bf16.mxu1 %v9543_v48  ;;  %v4628_v47 = vld [vmem:[%s14775_s15 + $0xe8] sm:$0xff]  ;;  %v9830_v48 = vcombine.low %v5091_v24, %v5107_v26 }
 0xcdb   :  { %v9855_v62 = vmul.f32 -1.442695, %v8206_v56  ;;  %v9353_v49 = vcombine.high %v4612_v46, %v4628_v47  ;;  %v9352_v52 = vcombine.low %v4612_v46, %v4628_v47  ;;  %v4676_v56 = vld [vmem:[%s14775_s15 + $0x268] sm:$0xff] }
 0xcdc   :  { %10957 = vpow2.f32 %v9854_v59  ;;  %v4692_v57 = vld [vmem:[%s14775_s15 + $0x2e8] sm:$0xff] }
 0xcdd   :  { %10959 = vpow2.f32 %v9855_v62  ;;  %8346 = vmatpush1.bf16.msra.mxu1 %v9542_v58  ;;  %v9384_v58 = vcombine.low %v4644_v50, %v4660_v51  ;;  %v9417_v59 = vcombine.high %v4676_v56, %v4692_v57  ;;  %v4708_v60 = vld [vmem:[%s14775_s15 + $0x368] sm:$0xff]  ;;  %v9416_v62 = vcombine.low %v4676_v56, %v4692_v57 }
 0xcde   :  { %8347 = vmatprep.subr.bf16.mxu1 %v9575_v61  ;;  %v4724_v61 = vld [vmem:[%s14775_s15 + $0x3e8] sm:$0xff] }
 0xcdf   :  { %v9449_v63 = vcombine.high %v4708_v60, %v4724_v61  ;;  %v4932_v26 = vld [vmem:[%s14775_s15 + $0xa68] sm:$0xff] }
 0xce0   :  { %v4964_v50 = vld [vmem:[%s14775_s15 + $0xb68] sm:$0xff] }
 0xce1   :  { %8348 = vmatpush1.bf16.msra.mxu1 %v9574_v4  ;;  %v4756_v4 = vld [vmem:[%s14775_s15 + $0x4e8] sm:$0xff] }
 0xce2   :  { %8349 = vmatprep.subr.bf16.mxu1 %v9607_v0  ;;  %v9448_v0 = vcombine.low %v4708_v60, %v4724_v61  ;;  %v9481_v6 = vcombine.high %v4740_v1, %v4756_v4  ;;  %v4980_v51 = vld [vmem:[%s14775_s15 + $0xbe8] sm:$0xff] }
 0xce3   :  { %v9705_v56 = vcombine.high %v4964_v50, %v4980_v51  ;;  %v4996_v57 = vld [vmem:[%s14775_s15 + $0xc68] sm:$0xff] }
 0xce4   :  { %v5028_v61 = vld [vmem:[%s14775_s15 + $0xd68] sm:$0xff] }
 0xce5   :  { %8350 = vmatpush1.bf16.msra.mxu1 %v9606_v9  ;;  %v4788_v9 = vld [vmem:[%s14775_s15 + $0x5e8] sm:$0xff] }
 0xce6   :  { %v10958_v17 = vpop.eup %10957  ;;  %8351 = vmatprep.subr.bf16.mxu1 %v9639_v13  ;;  %v9480_v13 = vcombine.low %v4740_v1, %v4756_v4  ;;  %v9513_v14 = vcombine.high %v4772_v7, %v4788_v9 }
 0xce7   :  { %v10960_v2 = vpop.eup %10959  ;;  %v8609_v19 = vadd.f32 1.0, %v10958_v17  ;;  %v5196_v17 = vrot.slane %v14436_v23, %v13661_v10 }
 0xce8   :  { %v8610_v22 = vadd.f32 1.0, %v10960_v2  ;;  %v9512_v2 = vcombine.low %v4772_v7, %v4788_v9 }
 0xce9   :  { %10961 = vrcp.f32 %v8609_v19  ;;  %8352 = vmatpush1.bf16.msra.mxu1 %v9638_v16  ;;  %v4820_v16 = vld [vmem:[%s14775_s15 + $0x6e8] sm:$0xff] }
 0xcea   :  { %10963 = vrcp.f32 %v8610_v22  ;;  %8353 = vmatprep.subr.bf16.mxu1 %v9671_v18  ;;  %v5200_v18 = vrot.slane %v14436_v23, %v13664_v12  ;;  %v9545_v19 = vcombine.high %v4804_v15, %v4820_v16  ;;  %v4852_v22 = vld [vmem:[%s14775_s15 + $0x7e8] sm:$0xff] }
 0xceb   :  { %v9577_v34 = vcombine.high %v4836_v21, %v4852_v22  ;;  %v9576_v38 = vcombine.low %v4836_v21, %v4852_v22  ;;  %v4646_v21 = vld [vmem:[%s14775_s15 + $0x178] sm:$0xff] }
 0xcec   :  { %v4662_v22 = vld [vmem:[%s14775_s15 + $0x1f8] sm:$0xff] }
 0xced   :  { %8354 = vmatpush1.bf16.msra.mxu1 %v9670_v25 }
 0xcee   :  { %8355 = vmatprep.subr.bf16.mxu1 %v9703_v27 }
 0xcf1   :  { %8356 = vmatpush1.bf16.msra.mxu1 %v9702_v33  ;;  %v9544_v33 = vcombine.low %v4804_v15, %v4820_v16  ;;  %v5108_v15 = vld [vmem:[%s14775_s15 + $0xfe8] sm:$0xff] }
 0xcf2   :  { %8357 = vmatprep.subr.bf16.mxu1 %v9735_v30 }
 0xcf3   :  { %v10962_v37 = vpop.eup %10961 }
 0xcf4   :  { %v10964_v40 = vpop.eup %10963  ;;  %8705 = vst [vmem:[%s14779_s17 + $0x80] sm:$0xff] %v10962_v37  ;;  %v4884_v37 = vld [vmem:[%s14775_s15 + $0x8e8] sm:$0xff] }
 0xcf5   :  { %8706 = vst [vmem:[%s14779_s17 + $0x88] sm:$0xff] %v10964_v40  ;;  %8358 = vmatpush1.bf16.msra.mxu1 %v9734_v35  ;;  %v4900_v40 = vld [vmem:[%s14775_s15 + $0x968] sm:$0xff] }
 0xcf6   :  { %8359 = vmatprep.subr.bf16.mxu1 %v9767_v36  ;;  %v4868_v36 = vld [vmem:[%s14775_s15 + $0x868] sm:$0xff] }
 0xcf7   :  { %v9609_v39 = vcombine.high %v4868_v36, %v4884_v37 }
 0xcf9   :  { %8360 = vmatpush1.bf16.msra.mxu1 %v9766_v41  ;;  %v4916_v41 = vld [vmem:[%s14775_s15 + $0x9e8] sm:$0xff] }
 0xcfa   :  { %8361 = vmatprep.subr.bf16.mxu1 %v9799_v42  ;;  %v9608_v42 = vcombine.low %v4868_v36, %v4884_v37  ;;  %v9641_v24 = vcombine.high %v4900_v40, %v4916_v41  ;;  %v4742_v37 = vld [vmem:[%s14775_s15 + $0x478] sm:$0xff] }
 0xcfd   :  { %8362 = vmatpush1.bf16.msra.mxu1 %v9798_v44  ;;  %v4948_v44 = vld [vmem:[%s14775_s15 + $0xae8] sm:$0xff] }
 0xcfe   :  { %8363 = vmatprep.subr.bf16.mxu1 %v9831_v45  ;;  %v9640_v45 = vcombine.low %v4900_v40, %v4916_v41  ;;  %v9673_v47 = vcombine.high %v4932_v26, %v4948_v44  ;;  %v4774_v40 = vld [vmem:[%s14775_s15 + $0x578] sm:$0xff] }
 0xcff   :  { %v4790_v41 = vld [vmem:[%s14775_s15 + $0x5f8] sm:$0xff] }
 0xd01   :  { %8364 = vmatpush1.bf16.msra.mxu1 %v9830_v48 }
 0xd02   :  { %8374 = vmatprep.subr.bf16.mxu1 %v9353_v49 }
 0xd04   :  { %8366 = vmatmul.mubr.bf16.vlgmr.msra.gmra.mrb[72].mxu1 %v13205_v55 }
 0xd05   :  { %8375 = vmatpush1.bf16.msra.mxu1 %v9352_v52  ;;  %8406 = vmatprep.mubr.bf16.mxu1 %v13203_v54 }
 0xd06   :  { %8376 = vmatprep.subr.bf16.mxu1 %v9385_v53  ;;  %v9672_v53 = vcombine.low %v4932_v26, %v4948_v44  ;;  %v4806_v26 = vld [vmem:[%s14775_s15 + $0x678] sm:$0xff] }
 0xd07   :  { %v4822_v44 = vld [vmem:[%s14775_s15 + $0x6f8] sm:$0xff] }
 0xd09   :  { %8377 = vmatpush1.bf16.msra.mxu1 %v9384_v58  ;;  %v5012_v58 = vld [vmem:[%s14775_s15 + $0xce8] sm:$0xff] }
 0xd0a   :  { %8378 = vmatprep.subr.bf16.mxu1 %v9417_v59  ;;  %v9704_v59 = vcombine.low %v4964_v50, %v4980_v51  ;;  %v9737_v60 = vcombine.high %v4996_v57, %v5012_v58  ;;  %v4838_v50 = vld [vmem:[%s14775_s15 + $0x778] sm:$0xff] }
 0xd0b   :  { %v4854_v51 = vld [vmem:[%s14775_s15 + $0x7f8] sm:$0xff] }
 0xd0d   :  { %8379 = vmatpush1.bf16.msra.mxu1 %v9416_v62  ;;  %v5044_v62 = vld [vmem:[%s14775_s15 + $0xde8] sm:$0xff] }
 0xd0e   :  { %8380 = vmatprep.subr.bf16.mxu1 %v9449_v63  ;;  %v9736_v63 = vcombine.low %v4996_v57, %v5012_v58  ;;  %v9769_v1 = vcombine.high %v5028_v61, %v5044_v62  ;;  %v9768_v9 = vcombine.low %v5028_v61, %v5044_v62  ;;  %v9548_v57 = vcombine.low %v4806_v26, %v4822_v44  ;;  %v4870_v61 = vld [vmem:[%s14775_s15 + $0x878] sm:$0xff] }
 0xd0f   :  { %v4886_v62 = vld [vmem:[%s14775_s15 + $0x8f8] sm:$0xff] }
 0xd11   :  { %8381 = vmatpush1.bf16.msra.mxu1 %v9448_v0  ;;  %v5060_v0 = vld [vmem:[%s14775_s15 + $0xe68] sm:$0xff] }
 0xd12   :  { %8382 = vmatprep.subr.bf16.mxu1 %v9481_v6  ;;  %v5076_v6 = vld [vmem:[%s14775_s15 + $0xee8] sm:$0xff] }
 0xd13   :  { %v9800_v16 = vcombine.low %v5060_v0, %v5076_v6 }
 0xd15   :  { %8383 = vmatpush1.bf16.msra.mxu1 %v9480_v13  ;;  %v9801_v13 = vcombine.high %v5060_v0, %v5076_v6  ;;  %v4918_v0 = vld [vmem:[%s14775_s15 + $0x9f8] sm:$0xff]  ;;  %v9612_v6 = vcombine.low %v4870_v61, %v4886_v62 }
 0xd16   :  { %8384 = vmatprep.subr.bf16.mxu1 %v9513_v14  ;;  %v5092_v14 = vld [vmem:[%s14775_s15 + $0xf68] sm:$0xff] }
 0xd17   :  { %v8244_v20 = vpop.f32.mrb[60].mxu1 }
 0xd18   :  { %v8245_v25 = vadd.f32 %v8244_v20, %v5196_v17  ;;  %v8246_v27 = vpop.f32.mrb[61].mxu1  ;;  %v9833_v17 = vcombine.high %v5092_v14, %v5108_v15 }
 0xd19   :  { %v8247_v29 = vadd.f32 %v8246_v27, %v5200_v18  ;;  %v8248_v31 = vpop.f32.mrb[62].mxu1  ;;  %8385 = vmatpush1.bf16.msra.mxu1 %v9512_v2  ;;  %v4614_v18 = vld [vmem:[%s14775_s15 + $0x78] sm:$0xff]  ;;  %v9389_v27 = vcombine.high %v4646_v21, %v4662_v22 }
 0xd1a   :  { %v9856_v30 = vmul.f32 -1.442695, %v8245_v25  ;;  %v8249_v43 = vpop.f32.mrb[63].mxu1  ;;  %8386 = vmatprep.subr.bf16.mxu1 %v9545_v19  ;;  %v4630_v2 = vld [vmem:[%s14775_s15 + $0xf8] sm:$0xff]  ;;  %v9832_v19 = vcombine.low %v5092_v14, %v5108_v15 }
 0xd1b   :  { %v9857_v35 = vmul.f32 -1.442695, %v8247_v29  ;;  %v9357_v20 = vcombine.high %v4614_v18, %v4630_v2  ;;  %v9356_v25 = vcombine.low %v4614_v18, %v4630_v2  ;;  %v4678_v29 = vld [vmem:[%s14775_s15 + $0x278] sm:$0xff] }
 0xd1c   :  { %10965 = vpow2.f32 %v9856_v30  ;;  %v4694_v31 = vld [vmem:[%s14775_s15 + $0x2f8] sm:$0xff] }
 0xd1d   :  { %10967 = vpow2.f32 %v9857_v35  ;;  %8387 = vmatpush1.bf16.msra.mxu1 %v9544_v33  ;;  %v9388_v33 = vcombine.low %v4646_v21, %v4662_v22  ;;  %v9421_v30 = vcombine.high %v4678_v29, %v4694_v31  ;;  %v4710_v43 = vld [vmem:[%s14775_s15 + $0x378] sm:$0xff]  ;;  %v9420_v35 = vcombine.low %v4678_v29, %v4694_v31 }
 0xd1e   :  { %8388 = vmatprep.subr.bf16.mxu1 %v9577_v34  ;;  %v4726_v34 = vld [vmem:[%s14775_s15 + $0x3f8] sm:$0xff] }
 0xd1f   :  { %v9453_v36 = vcombine.high %v4710_v43, %v4726_v34  ;;  %v4966_v2 = vld [vmem:[%s14775_s15 + $0xb78] sm:$0xff] }
 0xd21   :  { %8389 = vmatpush1.bf16.msra.mxu1 %v9576_v38  ;;  %v9452_v38 = vcombine.low %v4710_v43, %v4726_v34 }
 0xd22   :  { %8390 = vmatprep.subr.bf16.mxu1 %v9609_v39 }
 0xd25   :  { %8391 = vmatpush1.bf16.msra.mxu1 %v9608_v42 }
 0xd26   :  { %v10966_v46 = vpop.eup %10965  ;;  %8392 = vmatprep.subr.bf16.mxu1 %v9641_v24  ;;  %v9517_v24 = vcombine.high %v4774_v40, %v4790_v41 }
 0xd27   :  { %v10968_v48 = vpop.eup %10967  ;;  %v8611_v49 = vadd.f32 1.0, %v10966_v46  ;;  %v5208_v46 = vrot.slane %v14436_v23, %v13542_v32 }
 0xd28   :  { %v8612_v52 = vadd.f32 1.0, %v10968_v48  ;;  %v9549_v48 = vcombine.high %v4806_v26, %v4822_v44  ;;  %v5212_v44 = vrot.slane %v14436_v23, %v13883_v8 }
 0xd29   :  { %10969 = vrcp.f32 %v8611_v49  ;;  %8393 = vmatpush1.bf16.msra.mxu1 %v9640_v45  ;;  %v5204_v45 = vrot.slane %v14436_v23, %v13531_v28 }
 0xd2a   :  { %10971 = vrcp.f32 %v8612_v52  ;;  %8394 = vmatprep.subr.bf16.mxu1 %v9673_v47  ;;  %v9516_v47 = vcombine.low %v4774_v40, %v4790_v41  ;;  %v5094_v40 = vld [vmem:[%s14775_s15 + $0xf78] sm:$0xff] }
 0xd2b   :  { %v5110_v41 = vld [vmem:[%s14775_s15 + $0xff8] sm:$0xff] }
 0xd2c   :  { %v9836_v26 = vcombine.low %v5094_v40, %v5110_v41 }
 0xd2d   :  { %8395 = vmatpush1.bf16.msra.mxu1 %v9672_v53 }
 0xd2e   :  { %8396 = vmatprep.subr.bf16.mxu1 %v9705_v56 }
 0xd31   :  { %8397 = vmatpush1.bf16.msra.mxu1 %v9704_v59  ;;  %v9581_v59 = vcombine.high %v4838_v50, %v4854_v51 }
 0xd32   :  { %8398 = vmatprep.subr.bf16.mxu1 %v9737_v60 }
 0xd33   :  { %v10970_v4 = vpop.eup %10969 }
 0xd34   :  { %v10972_v7 = vpop.eup %10971  ;;  %8707 = vst [vmem:[%s14779_s17 + $0x90] sm:$0xff] %v10970_v4  ;;  %v4902_v4 = vld [vmem:[%s14775_s15 + $0x978] sm:$0xff] }
 0xd35   :  { %8708 = vst [vmem:[%s14779_s17 + $0x98] sm:$0xff] %v10972_v7  ;;  %8399 = vmatpush1.bf16.msra.mxu1 %v9736_v63  ;;  %v9580_v63 = vcombine.low %v4838_v50, %v4854_v51  ;;  %v9645_v7 = vcombine.high %v4902_v4, %v4918_v0  ;;  %v9644_v14 = vcombine.low %v4902_v4, %v4918_v0 }
 0xd36   :  { %8400 = vmatprep.subr.bf16.mxu1 %v9769_v1  ;;  %v9613_v1 = vcombine.high %v4870_v61, %v4886_v62 }
 0xd39   :  { %8401 = vmatpush1.bf16.msra.mxu1 %v9768_v9  ;;  %v4934_v9 = vld [vmem:[%s14775_s15 + $0xa78] sm:$0xff] }
 0xd3a   :  { %8402 = vmatprep.subr.bf16.mxu1 %v9801_v13  ;;  %v4950_v13 = vld [vmem:[%s14775_s15 + $0xaf8] sm:$0xff] }
 0xd3b   :  { %v9676_v21 = vcombine.low %v4934_v9, %v4950_v13 }
 0xd3d   :  { %8403 = vmatpush1.bf16.msra.mxu1 %v9800_v16  ;;  %v9677_v16 = vcombine.high %v4934_v9, %v4950_v13 }
 0xd3e   :  { %8404 = vmatprep.subr.bf16.mxu1 %v9833_v17 }
 0xd41   :  { %8405 = vmatpush1.bf16.msra.mxu1 %v9832_v19  ;;  %v4982_v19 = vld [vmem:[%s14775_s15 + $0xbf8] sm:$0xff] }
 0xd42   :  { %8456 = vmatprep.subr.bf16.mxu1 %v9357_v20  ;;  %v9709_v22 = vcombine.high %v4966_v2, %v4982_v19  ;;  %v9708_v29 = vcombine.low %v4966_v2, %v4982_v19 }
 0xd44   :  { %8407 = vmatmul.mubr.bf16.vlgmr.msra.gmra.mrb[76].mxu1 %v13205_v55 }
 0xd45   :  { %8457 = vmatpush1.bf16.msra.mxu1 %v9356_v25  ;;  %8488 = vmatprep.mubr.bf16.mxu1 %v13203_v54  ;;  %v4758_v54 = vld [vmem:[%s14775_s15 + $0x4f8] sm:$0xff] }
 0xd46   :  { %8458 = vmatprep.subr.bf16.mxu1 %v9389_v27  ;;  %v9485_v39 = vcombine.high %v4742_v37, %v4758_v54  ;;  %v9484_v42 = vcombine.low %v4742_v37, %v4758_v54  ;;  %v4998_v25 = vld [vmem:[%s14775_s15 + $0xc78] sm:$0xff] }
 0xd47   :  { %v5014_v27 = vld [vmem:[%s14775_s15 + $0xcf8] sm:$0xff] }
 0xd48   :  { %v9741_v31 = vcombine.high %v4998_v25, %v5014_v27  ;;  %v9740_v43 = vcombine.low %v4998_v25, %v5014_v27  ;;  %v5078_v37 = vld [vmem:[%s14775_s15 + $0xef8] sm:$0xff] }
 0xd49   :  { %8459 = vmatpush1.bf16.msra.mxu1 %v9388_v33  ;;  %v5030_v33 = vld [vmem:[%s14775_s15 + $0xd78] sm:$0xff] }
 0xd4a   :  { %8460 = vmatprep.subr.bf16.mxu1 %v9421_v30  ;;  %v5046_v30 = vld [vmem:[%s14775_s15 + $0xdf8] sm:$0xff] }
 0xd4b   :  { %v9773_v34 = vcombine.high %v5030_v33, %v5046_v30 }
 0xd4d   :  { %8461 = vmatpush1.bf16.msra.mxu1 %v9420_v35 }
 0xd4e   :  { %8462 = vmatprep.subr.bf16.mxu1 %v9453_v36  ;;  %v5062_v36 = vld [vmem:[%s14775_s15 + $0xe78] sm:$0xff] }
 0xd51   :  { %8463 = vmatpush1.bf16.msra.mxu1 %v9452_v38  ;;  %v9772_v38 = vcombine.low %v5030_v33, %v5046_v30 }
 0xd52   :  { %8464 = vmatprep.subr.bf16.mxu1 %v9485_v39  ;;  %v9805_v39 = vcombine.high %v5062_v36, %v5078_v37 }
 0xd55   :  { %8465 = vmatpush1.bf16.msra.mxu1 %v9484_v42  ;;  %v9804_v42 = vcombine.low %v5062_v36, %v5078_v37 }
 0xd56   :  { %8466 = vmatprep.subr.bf16.mxu1 %v9517_v24  ;;  %v9837_v24 = vcombine.high %v5094_v40, %v5110_v41 }
 0xd57   :  { %v8285_v49 = vpop.f32.mrb[64].mxu1 }
 0xd58   :  { %v8286_v52 = vadd.f32 %v8285_v49, %v5204_v45  ;;  %v8287_v53 = vpop.f32.mrb[65].mxu1  ;;  %v5216_v45 = vrot.slane %v14436_v23, %v13886_v11  ;;  %v11013_v23 = vld [vmem:[%s14778_s16 + $0x18] sm:$0xff] }
 0xd59   :  { %v8288_v56 = vadd.f32 %v8287_v53, %v5208_v46  ;;  %v8289_v28 = vpop.f32.mrb[66].mxu1  ;;  %8467 = vmatpush1.bf16.msra.mxu1 %v9516_v47 }
 0xd5a   :  { %v9858_v58 = vmul.f32 -1.442695, %v8286_v52  ;;  %v8290_v32 = vpop.f32.mrb[67].mxu1  ;;  %8468 = vmatprep.subr.bf16.mxu1 %v9549_v48 }
 0xd5b   :  { %v9859_v60 = vmul.f32 -1.442695, %v8288_v56 }
 0xd5c   :  { %10973 = vpow2.f32 %v9858_v58 }
 0xd5d   :  { %10975 = vpow2.f32 %v9859_v60  ;;  %8469 = vmatpush1.bf16.msra.mxu1 %v9548_v57  ;;  %v5224_v60 = vrot.slane %v11013_v23, %v12839_v5  ;;  %v5228_v5 = vrot.slane %v11013_v23, %v13661_v10 }
 0xd5e   :  { %8470 = vmatprep.subr.bf16.mxu1 %v9581_v59  ;;  %v5220_v59 = vrot.slane %v11013_v23, %v12833_v3 }
 0xd61   :  { %8471 = vmatpush1.bf16.msra.mxu1 %v9580_v63 }
 0xd62   :  { %8472 = vmatprep.subr.bf16.mxu1 %v9613_v1 }
 0xd65   :  { %8473 = vmatpush1.bf16.msra.mxu1 %v9612_v6 }
 0xd66   :  { %v10974_v15 = vpop.eup %10973  ;;  %8474 = vmatprep.subr.bf16.mxu1 %v9645_v7 }
 0xd67   :  { %v10976_v17 = vpop.eup %10975  ;;  %v8613_v18 = vadd.f32 1.0, %v10974_v15 }
 0xd68   :  { %v8614_v20 = vadd.f32 1.0, %v10976_v17  ;;  %v5232_v17 = vrot.slane %v11013_v23, %v13664_v12  ;;  %v5244_v12 = vrot.slane %v11013_v23, %v13883_v8 }
 0xd69   :  { %10977 = vrcp.f32 %v8613_v18  ;;  %8475 = vmatpush1.bf16.msra.mxu1 %v9644_v14 }
 0xd6a   :  { %10979 = vrcp.f32 %v8614_v20  ;;  %8476 = vmatprep.subr.bf16.mxu1 %v9677_v16 }
 0xd6d   :  { %8477 = vmatpush1.bf16.msra.mxu1 %v9676_v21 }
 0xd6e   :  { %8478 = vmatprep.subr.bf16.mxu1 %v9709_v22 }
 0xd71   :  { %8479 = vmatpush1.bf16.msra.mxu1 %v9708_v29 }
 0xd72   :  { %8480 = vmatprep.subr.bf16.mxu1 %v9741_v31 }
 0xd73   :  { %v10978_v35 = vpop.eup %10977 }
 0xd74   :  { %v10980_v54 = vpop.eup %10979  ;;  %8709 = vst [vmem:[%s14779_s17 + $0xa0] sm:$0xff] %v10978_v35 }
 0xd75   :  { %8710 = vst [vmem:[%s14779_s17 + $0xa8] sm:$0xff] %v10980_v54  ;;  %8481 = vmatpush1.bf16.msra.mxu1 %v9740_v43 }
 0xd76   :  { %8482 = vmatprep.subr.bf16.mxu1 %v9773_v34  ;;  %v5248_v34 = vrot.slane %v11013_v23, %v13886_v11 }
 0xd79   :  { %8483 = vmatpush1.bf16.msra.mxu1 %v9772_v38 }
 0xd7a   :  { %8484 = vmatprep.subr.bf16.mxu1 %v9805_v39 }
 0xd7d   :  { %8485 = vmatpush1.bf16.msra.mxu1 %v9804_v42 }
 0xd7e   :  { %8486 = vmatprep.subr.bf16.mxu1 %v9837_v24 }
 0xd81   :  { %8487 = vmatpush1.bf16.msra.mxu1 %v9836_v26 }
 0xd84   :  { %8489 = vmatmul.mubr.bf16.vlgmr.msra.gmra.mrb[80].mxu1 %v13205_v55 }
 0xd97   :  { %v8326_v46 = vpop.f32.mrb[68].mxu1 }
 0xd98   :  { %v8327_v47 = vadd.f32 %v8326_v46, %v5212_v44  ;;  %v8328_v48 = vpop.f32.mrb[69].mxu1 }
 0xd99   :  { %v8329_v49 = vadd.f32 %v8328_v48, %v5216_v45  ;;  %v8330_v50 = vpop.f32.mrb[70].mxu1 }
 0xd9a   :  { %v9860_v51 = vmul.f32 -1.442695, %v8327_v47  ;;  %v8331_v52 = vpop.f32.mrb[71].mxu1 }
 0xd9b   :  { %v9861_v53 = vmul.f32 -1.442695, %v8329_v49 }
 0xd9c   :  { %10981 = vpow2.f32 %v9860_v51 }
 0xd9d   :  { %10983 = vpow2.f32 %v9861_v53 }
 0xda6   :  { %v10982_v56 = vpop.eup %10981 }
 0xda7   :  { %v10984_v28 = vpop.eup %10983  ;;  %v8615_v57 = vadd.f32 1.0, %v10982_v56 }
 0xda8   :  { %v8616_v55 = vadd.f32 1.0, %v10984_v28 }
 0xda9   :  { %10985 = vrcp.f32 %v8615_v57 }
 0xdaa   :  { %10987 = vrcp.f32 %v8616_v55 }
 0xdb3   :  { %v10986_v58 = vpop.eup %10985 }
 0xdb4   :  { %v10988_v32 = vpop.eup %10987  ;;  %8711 = vst [vmem:[%s14779_s17 + $0xb0] sm:$0xff] %v10986_v58 }
 0xdb5   :  { %8712 = vst [vmem:[%s14779_s17 + $0xb8] sm:$0xff] %v10988_v32 }
 0xdd7   :  { %v8367_v61 = vpop.f32.mrb[72].mxu1 }
 0xdd8   :  { %v8368_v62 = vadd.f32 %v8367_v61, %v5220_v59  ;;  %v8369_v63 = vpop.f32.mrb[73].mxu1 }
 0xdd9   :  { %v8370_v1 = vadd.f32 %v8369_v63, %v5224_v60  ;;  %v8371_v4 = vpop.f32.mrb[74].mxu1 }
 0xdda   :  { %v9862_v0 = vmul.f32 -1.442695, %v8368_v62  ;;  %v8372_v6 = vpop.f32.mrb[75].mxu1 }
 0xddb   :  { %v9863_v7 = vmul.f32 -1.442695, %v8370_v1 }
 0xddc   :  { %10989 = vpow2.f32 %v9862_v0 }
 0xddd   :  { %10991 = vpow2.f32 %v9863_v7 }
 0xde6   :  { %v10990_v9 = vpop.eup %10989 }
 0xde7   :  { %v10992_v13 = vpop.eup %10991  ;;  %v8617_v14 = vadd.f32 1.0, %v10990_v9 }
 0xde8   :  { %v8618_v15 = vadd.f32 1.0, %v10992_v13 }
 0xde9   :  { %10993 = vrcp.f32 %v8617_v14 }
 0xdea   :  { %10995 = vrcp.f32 %v8618_v15 }
 0xdf3   :  { %v10994_v16 = vpop.eup %10993 }
 0xdf4   :  { %v10996_v3 = vpop.eup %10995  ;;  %8713 = vst [vmem:[%s14779_s17 + $0xc0] sm:$0xff] %v10994_v16 }
 0xdf5   :  { %8714 = vst [vmem:[%s14779_s17 + $0xc8] sm:$0xff] %v10996_v3 }
 0xe17   :  { %v8408_v18 = vpop.f32.mrb[76].mxu1 }
 0xe18   :  { %v8409_v2 = vadd.f32 %v8408_v18, %v5228_v5  ;;  %v8410_v19 = vpop.f32.mrb[77].mxu1 }
 0xe19   :  { %v8411_v20 = vadd.f32 %v8410_v19, %v5232_v17  ;;  %v8412_v21 = vpop.f32.mrb[78].mxu1 }
 0xe1a   :  { %v9864_v22 = vmul.f32 -1.442695, %v8409_v2  ;;  %v8413_v25 = vpop.f32.mrb[79].mxu1 }
 0xe1b   :  { %v9865_v27 = vmul.f32 -1.442695, %v8411_v20 }
 0xe1c   :  { %10997 = vpow2.f32 %v9864_v22 }
 0xe1d   :  { %10999 = vpow2.f32 %v9865_v27 }
 0xe26   :  { %v10998_v29 = vpop.eup %10997 }
 0xe27   :  { %v11000_v31 = vpop.eup %10999  ;;  %v8619_v33 = vadd.f32 1.0, %v10998_v29 }
 0xe28   :  { %v8620_v30 = vadd.f32 1.0, %v11000_v31 }
 0xe29   :  { %11001 = vrcp.f32 %v8619_v33 }
 0xe2a   :  { %11003 = vrcp.f32 %v8620_v30 }
 0xe33   :  { %v11002_v43 = vpop.eup %11001 }
 0xe34   :  { %v11004_v10 = vpop.eup %11003  ;;  %8715 = vst [vmem:[%s14779_s17 + $0xd0] sm:$0xff] %v11002_v43 }
 0xe35   :  { %8716 = vst [vmem:[%s14779_s17 + $0xd8] sm:$0xff] %v11004_v10 }
 0xe57   :  { %v8490_v35 = vpop.f32.mrb[80].mxu1 }
 0xe58   :  { %v8491_v36 = vadd.f32 %v8490_v35, %v5244_v12  ;;  %v8492_v37 = vpop.f32.mrb[81].mxu1 }
 0xe59   :  { %v8493_v54 = vadd.f32 %v8492_v37, %v5248_v34  ;;  %v8494_v38 = vpop.f32.mrb[82].mxu1 }
 0xe5a   :  { %v9868_v39 = vmul.f32 -1.442695, %v8491_v36  ;;  %v8495_v40 = vpop.f32.mrb[83].mxu1 }
 0xe5b   :  { %v9869_v41 = vmul.f32 -1.442695, %v8493_v54 }
 0xe5c   :  { %11005 = vpow2.f32 %v9868_v39 }
 0xe5d   :  { %11007 = vpow2.f32 %v9869_v41 }
 0xe66   :  { %v11006_v42 = vpop.eup %11005 }
 0xe67   :  { %v11008_v24 = vpop.eup %11007  ;;  %v8623_v26 = vadd.f32 1.0, %v11006_v42 }
 0xe68   :  { %v8624_v44 = vadd.f32 1.0, %v11008_v24 }
 0xe69   :  { %11009 = vrcp.f32 %v8623_v26 }
 0xe6a   :  { %11011 = vrcp.f32 %v8624_v44 }
 0xe73   :  { %v11010_v45 = vpop.eup %11009 }
 0xe74   :  { %v11012_v8 = vpop.eup %11011  ;;  %8719 = vst [vmem:[%s14779_s17 + $0xf0] sm:$0xff] %v11010_v45 }
 0xe75   :  { %8720 = vst [vmem:[%s14779_s17 + $0xf8] sm:$0xff] %v11012_v8 }

</bundles_post_ra>
